<compile_context>
chip_gen: v6e
topology: v6e:2x2x1
jax: 0.10.0
libtpu: 0.0.40
codegen_flags: <defaults>
</compile_context>

<pallas_src>
import jax
import jax.numpy as jnp
from jax import lax
from jax.experimental import pallas as pl
from jax.experimental.pallas import tpu as pltpu

EPS = 1e-5
MAX_TILE_R = 1024                    # lane tile for the R = N*OH*OW axis
VMEM_LIMIT = 32 * 1024 * 1024        # explicit scoped-VMEM budget (v7x-safe)


# ----------------------------------------------------------------------------
# Pallas kernels
# ----------------------------------------------------------------------------
def conv_stats_kernel(w_ref, p_ref, y_ref, sum_ref, sq_ref):
    """One R-tile of  y^T = W2d @ patches^T, plus per-tile BN partial stats.

    w_ref:  (OC, K)      bf16   (resident: same block every grid step)
    p_ref:  (K, TILE_R)  bf16
    y_ref:  (OC, TILE_R) f32    (lane-dense output tile)
    sum_ref/sq_ref: (1, OC, 1) f32  per-tile sum / sum-of-squares over lanes.
    """
    y = lax.dot_general(
        w_ref[...], p_ref[...],
        dimension_numbers=(((1,), (0,)), ((), ())),
        preferred_element_type=jnp.float32)          # (OC, TILE_R) f32 on MXU
    y_ref[...] = y
    # Per-channel reductions ride the cheap last-axis (lane) path.
    sum_ref[0] = jnp.sum(y, axis=1, keepdims=True)   # (OC, 1)
    sq_ref[0] = jnp.sum(y * y, axis=1, keepdims=True)


def bn_relu_kernel(y_ref, scale_ref, shift_ref, o_ref):
    """Apply precomputed BN scale/shift (global batch stats) + ReLU, per tile.

    y_ref: (OC, TILE_R) f32;  scale/shift: (OC, 1) f32;  o_ref: (OC, TILE_R) bf16
    """
    y = y_ref[...] * scale_ref[...] + shift_ref[...]
    o_ref[...] = jnp.maximum(y, 0.0).astype(o_ref.dtype)


def fc_kernel(x_ref, w_ref, b_ref, o_ref):
    """Linear layer: (N, F) @ (F, OUT) + bias (tiny output; single block)."""
    o_ref[...] = jnp.dot(x_ref[...], w_ref[...],
                         preferred_element_type=jnp.float32) + b_ref[...]


# ----------------------------------------------------------------------------
# pallas_call wrappers
# ----------------------------------------------------------------------------
def _tiling(r, max_tile=MAX_TILE_R):
    """Pick a lane tile (multiple of 128) and padded extent for R rows."""
    r128 = ((r + 127) // 128) * 128
    num = -(-r128 // max_tile)
    tile = ((-(-r128 // num) + 127) // 128) * 128
    return tile, num, tile * num


def conv_call(patches_t, w2d):
    """patches_t: (K, R) bf16, w2d: (OC, K) bf16 -> (y^T (OC,R_pad) f32, stats)."""
    k_dim, r = patches_t.shape
    oc = w2d.shape[0]
    tile, num, r_pad = _tiling(r)
    if r_pad != r:
        patches_t = jnp.pad(patches_t, ((0, 0), (0, r_pad - r)))

    y, sums, sqs = pl.pallas_call(
        conv_stats_kernel,
        out_shape=(jax.ShapeDtypeStruct((oc, r_pad), jnp.float32),
                   jax.ShapeDtypeStruct((num, oc, 1), jnp.float32),
                   jax.ShapeDtypeStruct((num, oc, 1), jnp.float32)),
        grid_spec=pltpu.PrefetchScalarGridSpec(
            num_scalar_prefetch=0,
            grid=(num,),
            in_specs=[pl.BlockSpec((oc, k_dim), lambda i: (0, 0)),
                      pl.BlockSpec((k_dim, tile), lambda i: (0, i))],
            out_specs=[pl.BlockSpec((oc, tile), lambda i: (0, i)),
                       pl.BlockSpec((1, oc, 1), lambda i: (i, 0, 0)),
                       pl.BlockSpec((1, oc, 1), lambda i: (i, 0, 0))]),
        compiler_params=pltpu.CompilerParams(
            dimension_semantics=("parallel",),
            vmem_limit_bytes=VMEM_LIMIT),
        cost_estimate=pl.CostEstimate(
            flops=2 * oc * k_dim * r_pad,
            transcendentals=0,
            bytes_accessed=k_dim * r_pad * 2 + oc * k_dim * 2 + oc * r_pad * 4),
    )(w2d, patches_t)
    return y, sums, sqs, tile, r_pad


def bn_relu_call(y, scale, shift, tile):
    oc, r_pad = y.shape
    num = r_pad // tile
    return pl.pallas_call(
        bn_relu_kernel,
        out_shape=jax.ShapeDtypeStruct((oc, r_pad), jnp.bfloat16),
        grid_spec=pltpu.PrefetchScalarGridSpec(
            num_scalar_prefetch=0,
            grid=(num,),
            in_specs=[pl.BlockSpec((oc, tile), lambda i: (0, i)),
                      pl.BlockSpec((oc, 1), lambda i: (0, 0)),
                      pl.BlockSpec((oc, 1), lambda i: (0, 0))],
            out_specs=pl.BlockSpec((oc, tile), lambda i: (0, i))),
        compiler_params=pltpu.CompilerParams(
            dimension_semantics=("parallel",),
            vmem_limit_bytes=VMEM_LIMIT),
        cost_estimate=pl.CostEstimate(
            flops=2 * oc * r_pad, transcendentals=0,
            bytes_accessed=oc * r_pad * 6),
    )(y, scale, shift)


def fc_call(x, w, b):
    n = x.shape[0]
    out = w.shape[1]
    vspec = pl.BlockSpec(memory_space=pltpu.MemorySpace.VMEM)
    return pl.pallas_call(
        fc_kernel,
        out_shape=jax.ShapeDtypeStruct((n, out), jnp.float32),
        in_specs=[vspec, vspec, vspec],
        out_specs=vspec,
        compiler_params=pltpu.CompilerParams(vmem_limit_bytes=VMEM_LIMIT),
        cost_estimate=pl.CostEstimate(
            flops=2 * n * w.shape[0] * out, transcendentals=0,
            bytes_accessed=n * w.shape[0] * 2 + w.shape[0] * out * 2 + n * out * 4),
    )(x, w, b)


# ----------------------------------------------------------------------------
# JAX glue: im2col in CNHW layout (stride-2, 5x5 kernel, no padding)
# ----------------------------------------------------------------------------
def im2col_cnhw(x, k=5, s=2):
    """x: (C, N, H, W) -> patches^T: (C*k*k, N*OH*OW)  (no large transposes).

    Row ordering is (c, kh, kw), matching PyTorch's (OC, C, kh, kw) weights.
    """
    c, n, h, w = x.shape
    oh = (h - k) // s + 1
    ow = (w - k) // s + 1
    taps = []
    for i in range(k):
        for j in range(k):
            taps.append(x[:, :, i:i + s * oh:s, j:j + s * ow:s])  # (C,N,OH,OW)
    p = jnp.stack(taps, axis=1)                       # (C, k*k, N, OH, OW)
    return p.reshape(c * k * k, n * oh * ow), oh, ow, n * oh * ow


# ----------------------------------------------------------------------------
# DQN forward
# ----------------------------------------------------------------------------
def dqn_forward(x, prep):
    """x: (N, 1, 84, 84) float32 NCHW (like PyTorch). Returns (N, output_dim) f32."""
    n = x.shape[0]
    # CNHW layout; bf16 feed for the MXU (epilogue stays f32).
    a = jnp.transpose(x, (1, 0, 2, 3)).astype(jnp.bfloat16)   # (1, N, 84, 84)

    for name in ("1", "2", "3"):
        w2d = prep["conv%s_w2d" % name]        # (OC, C*25) bf16
        gamma = prep["bn%s_gamma" % name]      # (OC,) f32
        beta = prep["bn%s_beta" % name]        # (OC,) f32
        oc = w2d.shape[0]

        pt, oh, ow, r = im2col_cnhw(a)                        # (K, R) bf16
        y, sums, sqs, tile, _ = conv_call(pt, w2d)            # y: (OC, R_pad) f32

        # Global batch statistics from per-tile partials (padded cols are
        # exactly zero since conv bias was folded out -> sums are exact).
        s1 = jnp.sum(sums[:, :, 0], axis=0)                   # (OC,)
        s2 = jnp.sum(sqs[:, :, 0], axis=0)                    # (OC,)
        mean = s1 / r
        var = jnp.maximum(s2 / r - mean * mean, 0.0)          # biased variance
        scale = gamma * lax.rsqrt(var + EPS)
        shift = beta - mean * scale

        act = bn_relu_call(y, scale.reshape(oc, 1),
                           shift.reshape(oc, 1), tile)        # (OC, R_pad) bf16
        a = act[:, :r].reshape(oc, n, oh, ow)                 # CNHW for next layer

    # torch.flatten(x, 1) on NCHW -> (N, C*H*W); only a tiny final transpose.
    feat = jnp.transpose(a, (1, 0, 2, 3)).reshape(n, -1)      # (N, 3136) bf16
    return fc_call(feat, prep["fc1_wT"], prep["fc1_b"])


# ----------------------------------------------------------------------------
# Parameters: PyTorch-like init + one-time preprocessing (hoisted out of fwd)
# ----------------------------------------------------------------------------
def init_params(key, output_dim):
    ks = jax.random.split(key, 8)
    p = {}
    p["conv1_w"] = 0.1 * jax.random.normal(ks[0], (16, 1, 5, 5), jnp.float32)
    p["conv1_b"] = 0.1 * jax.random.normal(ks[1], (16,), jnp.float32)
    p["conv2_w"] = 0.05 * jax.random.normal(ks[2], (32, 16, 5, 5), jnp.float32)
    p["conv2_b"] = 0.1 * jax.random.normal(ks[3], (32,), jnp.float32)
    p["conv3_w"] = 0.05 * jax.random.normal(ks[4], (64, 32, 5, 5), jnp.float32)
    p["conv3_b"] = 0.1 * jax.random.normal(ks[5], (64,), jnp.float32)
    p["bn1_gamma"] = jnp.ones((16,), jnp.float32)
    p["bn1_beta"] = jnp.zeros((16,), jnp.float32)
    p["bn2_gamma"] = jnp.ones((32,), jnp.float32)
    p["bn2_beta"] = jnp.zeros((32,), jnp.float32)
    p["bn3_gamma"] = jnp.ones((64,), jnp.float32)
    p["bn3_beta"] = jnp.zeros((64,), jnp.float32)
    p["fc1_w"] = 0.02 * jax.random.normal(ks[6], (output_dim, 7 * 7 * 64),
                                          jnp.float32)
    p["fc1_b"] = 0.1 * jax.random.normal(ks[7], (output_dim,), jnp.float32)
    return p


def prepare_params(params):
    """One-time weight layout prep. Conv biases are dropped on purpose:
    BatchNorm subtracts the per-channel mean right after the conv, so a
    per-channel constant bias cancels exactly (zero numerical change)."""
    prep = {}
    for name in ("1", "2", "3"):
        w = params["conv" + name + "_w"]                    # (OC, C, 5, 5)
        oc = w.shape[0]
        prep["conv%s_w2d" % name] = w.reshape(oc, -1).astype(jnp.bfloat16)
        prep["bn%s_gamma" % name] = params["bn" + name + "_gamma"].astype(jnp.float32)
        prep["bn%s_beta" % name] = params["bn" + name + "_beta"].astype(jnp.float32)
    prep["fc1_wT"] = params["fc1_w"].T.astype(jnp.bfloat16)  # (3136, out_dim)
    prep["fc1_b"] = params["fc1_b"].reshape(1, -1).astype(jnp.float32)
    return prep


if __name__ == "__main__":
    key = jax.random.PRNGKey(0)
    k_x, k_p = jax.random.split(key)

    # fc1 expects 7*7*64 features => input spatial 84x84 (84 -> 40 -> 18 -> 7)
    batch = 2
    output_dim = 2  # CartPole action space
    x = jax.random.normal(k_x, (batch, 1, 84, 84), jnp.float32)
    params = init_params(k_p, output_dim)
    prep = jax.tree_util.tree_map(jnp.asarray, prepare_params(params))

    q_values = jax.jit(dqn_forward)(x, prep)
    jax.block_until_ready(q_values)
    assert q_values.shape == (batch, output_dim)
    assert q_values.dtype == jnp.float32
    print("KERNEL_OK")
</pallas_src>

<mosaic_0001>
module attributes {stable_mosaic.version = 11 : i64} {
  func.func @conv_stats_kernel(%arg0: i32, %arg1: memref<16x25xbf16, #tpu.memory_space<vmem>>, %arg2: memref<25x896xbf16, #tpu.memory_space<vmem>>, %arg3: memref<16x896xf32, #tpu.memory_space<vmem>>, %arg4: memref<1x16x1xf32, #tpu.memory_space<vmem>>, %arg5: memref<1x16x1xf32, #tpu.memory_space<vmem>>) attributes {dimension_semantics = [#tpu.dimension_semantics<parallel>], iteration_bounds = array<i64: 4>, scalar_prefetch = 0 : i64, scratch_operands = 0 : i64, tpu.core_type = #tpu.core_type<tc>, window_params = [{pipeline_mode = #tpu.pipeline_mode<synchronous>, transform_indices = @transform_0, window_bounds = array<i64: 16, 25>}, {transform_indices = @transform_1, window_bounds = array<i64: 25, 896>}, {transform_indices = @transform_2, window_bounds = array<i64: 16, 896>}, {transform_indices = @transform_3, window_bounds = array<i64: 1, 16, 1>}, {transform_indices = @transform_4, window_bounds = array<i64: 1, 16, 1>}]} {
    %c0 = arith.constant 0 : index
    %c0_0 = arith.constant 0 : index
    %0 = vector.load %arg1[%c0, %c0_0] : memref<16x25xbf16, #tpu.memory_space<vmem>>, vector<16x25xbf16>
    %c0_1 = arith.constant 0 : index
    %c0_2 = arith.constant 0 : index
    %1 = vector.load %arg2[%c0_1, %c0_2] : memref<25x896xbf16, #tpu.memory_space<vmem>>, vector<25x896xbf16>
    %cst = arith.constant dense<0.000000e+00> : vector<16x896xf32>
    %2 = tpu.matmul %0, %1, %cst {dimension_numbers = #tpu.dot_dimension_numbers<[1], [0], [0], [1], [0, 0, 1, 1], [], []>} : vector<16x25xbf16>, vector<25x896xbf16>, vector<16x896xf32> -> vector<16x896xf32>
    %c0_3 = arith.constant 0 : index
    %c0_4 = arith.constant 0 : index
    %3 = vector.load %arg3[%c0_3, %c0_4] : memref<16x896xf32, #tpu.memory_space<vmem>>, vector<16x896xf32>
    tpu.vector_store %arg3[%c0_3, %c0_4], %2 {strides = array<i32>} : memref<16x896xf32, #tpu.memory_space<vmem>>, vector<16x896xf32>,
    %cst_5 = arith.constant dense<0.000000e+00> : vector<16xf32>
    %4 = vector.multi_reduction <add>, %2, %cst_5 [1] : vector<16x896xf32> to vector<16xf32>
    %5 = vector.shape_cast %4 : vector<16xf32> to vector<16x1xf32>
    %c0_6 = arith.constant 0 : index
    %c0_7 = arith.constant 0 : index
    %c0_8 = arith.constant 0 : index
    %6 = vector.load %arg4[%c0_6, %c0_7, %c0_8] : memref<1x16x1xf32, #tpu.memory_space<vmem>>, vector<1x16x1xf32>
    %7 = vector.shape_cast %6 : vector<1x16x1xf32> to vector<16x1xf32>
    %8 = vector.shape_cast %5 : vector<16x1xf32> to vector<1x16x1xf32>
    tpu.vector_store %arg4[%c0_6, %c0_7, %c0_8], %8 {strides = array<i32>} : memref<1x16x1xf32, #tpu.memory_space<vmem>>, vector<1x16x1xf32>,
    %9 = arith.mulf %2, %2 : vector<16x896xf32>
    %cst_9 = arith.constant dense<0.000000e+00> : vector<16xf32>
    %10 = vector.multi_reduction <add>, %9, %cst_9 [1] : vector<16x896xf32> to vector<16xf32>
    %11 = vector.shape_cast %10 : vector<16xf32> to vector<16x1xf32>
    %c0_10 = arith.constant 0 : index
    %c0_11 = arith.constant 0 : index
    %c0_12 = arith.constant 0 : index
    %12 = vector.load %arg5[%c0_10, %c0_11, %c0_12] : memref<1x16x1xf32, #tpu.memory_space<vmem>>, vector<1x16x1xf32>
    %13 = vector.shape_cast %12 : vector<1x16x1xf32> to vector<16x1xf32>
    %14 = vector.shape_cast %11 : vector<16x1xf32> to vector<1x16x1xf32>
    tpu.vector_store %arg5[%c0_10, %c0_11, %c0_12], %14 {strides = array<i32>} : memref<1x16x1xf32, #tpu.memory_space<vmem>>, vector<1x16x1xf32>,
    return
  }
  func.func @transform_0(%arg0: i32) -> (i32, i32) {
    %c0_i32 = arith.constant 0 : i32
    %c0_i32_0 = arith.constant 0 : i32
    %c0_i32_1 = arith.constant 0 : i32
    return %c0_i32, %c0_i32_0 : i32, i32
  }
  func.func @transform_1(%arg0: i32) -> (i32, i32) {
    %c0_i32 = arith.constant 0 : i32
    %c0_i32_0 = arith.constant 0 : i32
    return %c0_i32, %arg0 : i32, i32
  }
  func.func @transform_2(%arg0: i32) -> (i32, i32) {
    %c0_i32 = arith.constant 0 : i32
    %c0_i32_0 = arith.constant 0 : i32
    return %c0_i32, %arg0 : i32, i32
  }
  func.func @transform_3(%arg0: i32) -> (i32, i32, i32) {
    %c0_i32 = arith.constant 0 : i32
    %c0_i32_0 = arith.constant 0 : i32
    %c0_i32_1 = arith.constant 0 : i32
    return %arg0, %c0_i32, %c0_i32_0 : i32, i32, i32
  }
  func.func @transform_4(%arg0: i32) -> (i32, i32, i32) {
    %c0_i32 = arith.constant 0 : i32
    %c0_i32_0 = arith.constant 0 : i32
    %c0_i32_1 = arith.constant 0 : i32
    return %arg0, %c0_i32, %c0_i32_0 : i32, i32, i32
  }
}

module attributes {stable_mosaic.version = 11 : i64} {
  func.func @bn_relu_kernel(%arg0: i32, %arg1: memref<16x896xf32, #tpu.memory_space<vmem>>, %arg2: memref<16x1xf32, #tpu.memory_space<vmem>>, %arg3: memref<16x1xf32, #tpu.memory_space<vmem>>, %arg4: memref<16x896xbf16, #tpu.memory_space<vmem>>) attributes {dimension_semantics = [#tpu.dimension_semantics<parallel>], iteration_bounds = array<i64: 4>, scalar_prefetch = 0 : i64, scratch_operands = 0 : i64, tpu.core_type = #tpu.core_type<tc>, window_params = [{transform_indices = @transform_0, window_bounds = array<i64: 16, 896>}, {pipeline_mode = #tpu.pipeline_mode<synchronous>, transform_indices = @transform_1, window_bounds = array<i64: 16, 1>}, {pipeline_mode = #tpu.pipeline_mode<synchronous>, transform_indices = @transform_2, window_bounds = array<i64: 16, 1>}, {transform_indices = @transform_3, window_bounds = array<i64: 16, 896>}]} {
    %c0 = arith.constant 0 : index
    %c0_0 = arith.constant 0 : index
    %0 = vector.load %arg1[%c0, %c0_0] : memref<16x896xf32, #tpu.memory_space<vmem>>, vector<16x896xf32>
    %c0_1 = arith.constant 0 : index
    %c0_2 = arith.constant 0 : index
    %1 = vector.load %arg2[%c0_1, %c0_2] : memref<16x1xf32, #tpu.memory_space<vmem>>, vector<16x1xf32>
    %2 = vector.broadcast %1 : vector<16x1xf32> to vector<16x896xf32>
    %3 = arith.mulf %0, %2 : vector<16x896xf32>
    %c0_3 = arith.constant 0 : index
    %c0_4 = arith.constant 0 : index
    %4 = vector.load %arg3[%c0_3, %c0_4] : memref<16x1xf32, #tpu.memory_space<vmem>>, vector<16x1xf32>
    %5 = vector.broadcast %4 : vector<16x1xf32> to vector<16x896xf32>
    %6 = arith.addf %3, %5 : vector<16x896xf32>
    %cst = arith.constant 0.000000e+00 : f32
    %7 = vector.broadcast %cst : f32 to vector<16x896xf32>
    %8 = arith.maximumf %6, %7 : vector<16x896xf32>
    %9 = arith.truncf %8 : vector<16x896xf32> to vector<16x896xbf16>
    %c0_5 = arith.constant 0 : index
    %c0_6 = arith.constant 0 : index
    %10 = vector.load %arg4[%c0_5, %c0_6] : memref<16x896xbf16, #tpu.memory_space<vmem>>, vector<16x896xbf16>
    tpu.vector_store %arg4[%c0_5, %c0_6], %9 {strides = array<i32>} : memref<16x896xbf16, #tpu.memory_space<vmem>>, vector<16x896xbf16>,
    return
  }
  func.func @transform_0(%arg0: i32) -> (i32, i32) {
    %c0_i32 = arith.constant 0 : i32
    %c0_i32_0 = arith.constant 0 : i32
    return %c0_i32, %arg0 : i32, i32
  }
  func.func @transform_1(%arg0: i32) -> (i32, i32) {
    %c0_i32 = arith.constant 0 : i32
    %c0_i32_0 = arith.constant 0 : i32
    %c0_i32_1 = arith.constant 0 : i32
    return %c0_i32, %c0_i32_0 : i32, i32
  }
  func.func @transform_2(%arg0: i32) -> (i32, i32) {
    %c0_i32 = arith.constant 0 : i32
    %c0_i32_0 = arith.constant 0 : i32
    %c0_i32_1 = arith.constant 0 : i32
    return %c0_i32, %c0_i32_0 : i32, i32
  }
  func.func @transform_3(%arg0: i32) -> (i32, i32) {
    %c0_i32 = arith.constant 0 : i32
    %c0_i32_0 = arith.constant 0 : i32
    return %c0_i32, %arg0 : i32, i32
  }
}

module attributes {stable_mosaic.version = 11 : i64} {
  func.func @conv_stats_kernel(%arg0: i32, %arg1: memref<32x400xbf16, #tpu.memory_space<vmem>>, %arg2: memref<400x768xbf16, #tpu.memory_space<vmem>>, %arg3: memref<32x768xf32, #tpu.memory_space<vmem>>, %arg4: memref<1x32x1xf32, #tpu.memory_space<vmem>>, %arg5: memref<1x32x1xf32, #tpu.memory_space<vmem>>) attributes {dimension_semantics = [#tpu.dimension_semantics<parallel>], iteration_bounds = array<i64: 1>, scalar_prefetch = 0 : i64, scratch_operands = 0 : i64, tpu.core_type = #tpu.core_type<tc>, window_params = [{pipeline_mode = #tpu.pipeline_mode<synchronous>, transform_indices = @transform_0, window_bounds = array<i64: 32, 400>}, {transform_indices = @transform_1, window_bounds = array<i64: 400, 768>}, {transform_indices = @transform_2, window_bounds = array<i64: 32, 768>}, {transform_indices = @transform_3, window_bounds = array<i64: 1, 32, 1>}, {transform_indices = @transform_4, window_bounds = array<i64: 1, 32, 1>}]} {
    %c0 = arith.constant 0 : index
    %c0_0 = arith.constant 0 : index
    %0 = vector.load %arg1[%c0, %c0_0] : memref<32x400xbf16, #tpu.memory_space<vmem>>, vector<32x400xbf16>
    %c0_1 = arith.constant 0 : index
    %c0_2 = arith.constant 0 : index
    %1 = vector.load %arg2[%c0_1, %c0_2] : memref<400x768xbf16, #tpu.memory_space<vmem>>, vector<400x768xbf16>
    %cst = arith.constant dense<0.000000e+00> : vector<32x768xf32>
    %2 = tpu.matmul %0, %1, %cst {dimension_numbers = #tpu.dot_dimension_numbers<[1], [0], [0], [1], [0, 0, 1, 1], [], []>} : vector<32x400xbf16>, vector<400x768xbf16>, vector<32x768xf32> -> vector<32x768xf32>
    %c0_3 = arith.constant 0 : index
    %c0_4 = arith.constant 0 : index
    %3 = vector.load %arg3[%c0_3, %c0_4] : memref<32x768xf32, #tpu.memory_space<vmem>>, vector<32x768xf32>
    tpu.vector_store %arg3[%c0_3, %c0_4], %2 {strides = array<i32>} : memref<32x768xf32, #tpu.memory_space<vmem>>, vector<32x768xf32>,
    %cst_5 = arith.constant dense<0.000000e+00> : vector<32xf32>
    %4 = vector.multi_reduction <add>, %2, %cst_5 [1] : vector<32x768xf32> to vector<32xf32>
    %5 = vector.shape_cast %4 : vector<32xf32> to vector<32x1xf32>
    %c0_6 = arith.constant 0 : index
    %c0_7 = arith.constant 0 : index
    %c0_8 = arith.constant 0 : index
    %6 = vector.load %arg4[%c0_6, %c0_7, %c0_8] : memref<1x32x1xf32, #tpu.memory_space<vmem>>, vector<1x32x1xf32>
    %7 = vector.shape_cast %6 : vector<1x32x1xf32> to vector<32x1xf32>
    %8 = vector.shape_cast %5 : vector<32x1xf32> to vector<1x32x1xf32>
    tpu.vector_store %arg4[%c0_6, %c0_7, %c0_8], %8 {strides = array<i32>} : memref<1x32x1xf32, #tpu.memory_space<vmem>>, vector<1x32x1xf32>,
    %9 = arith.mulf %2, %2 : vector<32x768xf32>
    %cst_9 = arith.constant dense<0.000000e+00> : vector<32xf32>
    %10 = vector.multi_reduction <add>, %9, %cst_9 [1] : vector<32x768xf32> to vector<32xf32>
    %11 = vector.shape_cast %10 : vector<32xf32> to vector<32x1xf32>
    %c0_10 = arith.constant 0 : index
    %c0_11 = arith.constant 0 : index
    %c0_12 = arith.constant 0 : index
    %12 = vector.load %arg5[%c0_10, %c0_11, %c0_12] : memref<1x32x1xf32, #tpu.memory_space<vmem>>, vector<1x32x1xf32>
    %13 = vector.shape_cast %12 : vector<1x32x1xf32> to vector<32x1xf32>
    %14 = vector.shape_cast %11 : vector<32x1xf32> to vector<1x32x1xf32>
    tpu.vector_store %arg5[%c0_10, %c0_11, %c0_12], %14 {strides = array<i32>} : memref<1x32x1xf32, #tpu.memory_space<vmem>>, vector<1x32x1xf32>,
    return
  }
  func.func @transform_0(%arg0: i32) -> (i32, i32) {
    %c0_i32 = arith.constant 0 : i32
    %c0_i32_0 = arith.constant 0 : i32
    %c0_i32_1 = arith.constant 0 : i32
    return %c0_i32, %c0_i32_0 : i32, i32
  }
  func.func @transform_1(%arg0: i32) -> (i32, i32) {
    %c0_i32 = arith.constant 0 : i32
    %c0_i32_0 = arith.constant 0 : i32
    return %c0_i32, %arg0 : i32, i32
  }
  func.func @transform_2(%arg0: i32) -> (i32, i32) {
    %c0_i32 = arith.constant 0 : i32
    %c0_i32_0 = arith.constant 0 : i32
    return %c0_i32, %arg0 : i32, i32
  }
  func.func @transform_3(%arg0: i32) -> (i32, i32, i32) {
    %c0_i32 = arith.constant 0 : i32
    %c0_i32_0 = arith.constant 0 : i32
    %c0_i32_1 = arith.constant 0 : i32
    return %arg0, %c0_i32, %c0_i32_0 : i32, i32, i32
  }
  func.func @transform_4(%arg0: i32) -> (i32, i32, i32) {
    %c0_i32 = arith.constant 0 : i32
    %c0_i32_0 = arith.constant 0 : i32
    %c0_i32_1 = arith.constant 0 : i32
    return %arg0, %c0_i32, %c0_i32_0 : i32, i32, i32
  }
}

module attributes {stable_mosaic.version = 11 : i64} {
  func.func @bn_relu_kernel(%arg0: i32, %arg1: memref<32x768xf32, #tpu.memory_space<vmem>>, %arg2: memref<32x1xf32, #tpu.memory_space<vmem>>, %arg3: memref<32x1xf32, #tpu.memory_space<vmem>>, %arg4: memref<32x768xbf16, #tpu.memory_space<vmem>>) attributes {dimension_semantics = [#tpu.dimension_semantics<parallel>], iteration_bounds = array<i64: 1>, scalar_prefetch = 0 : i64, scratch_operands = 0 : i64, tpu.core_type = #tpu.core_type<tc>, window_params = [{transform_indices = @transform_0, window_bounds = array<i64: 32, 768>}, {pipeline_mode = #tpu.pipeline_mode<synchronous>, transform_indices = @transform_1, window_bounds = array<i64: 32, 1>}, {pipeline_mode = #tpu.pipeline_mode<synchronous>, transform_indices = @transform_2, window_bounds = array<i64: 32, 1>}, {transform_indices = @transform_3, window_bounds = array<i64: 32, 768>}]} {
    %c0 = arith.constant 0 : index
    %c0_0 = arith.constant 0 : index
    %0 = vector.load %arg1[%c0, %c0_0] : memref<32x768xf32, #tpu.memory_space<vmem>>, vector<32x768xf32>
    %c0_1 = arith.constant 0 : index
    %c0_2 = arith.constant 0 : index
    %1 = vector.load %arg2[%c0_1, %c0_2] : memref<32x1xf32, #tpu.memory_space<vmem>>, vector<32x1xf32>
    %2 = vector.broadcast %1 : vector<32x1xf32> to vector<32x768xf32>
    %3 = arith.mulf %0, %2 : vector<32x768xf32>
    %c0_3 = arith.constant 0 : index
    %c0_4 = arith.constant 0 : index
    %4 = vector.load %arg3[%c0_3, %c0_4] : memref<32x1xf32, #tpu.memory_space<vmem>>, vector<32x1xf32>
    %5 = vector.broadcast %4 : vector<32x1xf32> to vector<32x768xf32>
    %6 = arith.addf %3, %5 : vector<32x768xf32>
    %cst = arith.constant 0.000000e+00 : f32
    %7 = vector.broadcast %cst : f32 to vector<32x768xf32>
    %8 = arith.maximumf %6, %7 : vector<32x768xf32>
    %9 = arith.truncf %8 : vector<32x768xf32> to vector<32x768xbf16>
    %c0_5 = arith.constant 0 : index
    %c0_6 = arith.constant 0 : index
    %10 = vector.load %arg4[%c0_5, %c0_6] : memref<32x768xbf16, #tpu.memory_space<vmem>>, vector<32x768xbf16>
    tpu.vector_store %arg4[%c0_5, %c0_6], %9 {strides = array<i32>} : memref<32x768xbf16, #tpu.memory_space<vmem>>, vector<32x768xbf16>,
    return
  }
  func.func @transform_0(%arg0: i32) -> (i32, i32) {
    %c0_i32 = arith.constant 0 : i32
    %c0_i32_0 = arith.constant 0 : i32
    return %c0_i32, %arg0 : i32, i32
  }
  func.func @transform_1(%arg0: i32) -> (i32, i32) {
    %c0_i32 = arith.constant 0 : i32
    %c0_i32_0 = arith.constant 0 : i32
    %c0_i32_1 = arith.constant 0 : i32
    return %c0_i32, %c0_i32_0 : i32, i32
  }
  func.func @transform_2(%arg0: i32) -> (i32, i32) {
    %c0_i32 = arith.constant 0 : i32
    %c0_i32_0 = arith.constant 0 : i32
    %c0_i32_1 = arith.constant 0 : i32
    return %c0_i32, %c0_i32_0 : i32, i32
  }
  func.func @transform_3(%arg0: i32) -> (i32, i32) {
    %c0_i32 = arith.constant 0 : i32
    %c0_i32_0 = arith.constant 0 : i32
    return %c0_i32, %arg0 : i32, i32
  }
}

module attributes {stable_mosaic.version = 11 : i64} {
  func.func @conv_stats_kernel(%arg0: i32, %arg1: memref<64x800xbf16, #tpu.memory_space<vmem>>, %arg2: memref<800x128xbf16, #tpu.memory_space<vmem>>, %arg3: memref<64x128xf32, #tpu.memory_space<vmem>>, %arg4: memref<1x64x1xf32, #tpu.memory_space<vmem>>, %arg5: memref<1x64x1xf32, #tpu.memory_space<vmem>>) attributes {dimension_semantics = [#tpu.dimension_semantics<parallel>], iteration_bounds = array<i64: 1>, scalar_prefetch = 0 : i64, scratch_operands = 0 : i64, tpu.core_type = #tpu.core_type<tc>, window_params = [{pipeline_mode = #tpu.pipeline_mode<synchronous>, transform_indices = @transform_0, window_bounds = array<i64: 64, 800>}, {transform_indices = @transform_1, window_bounds = array<i64: 800, 128>}, {transform_indices = @transform_2, window_bounds = array<i64: 64, 128>}, {transform_indices = @transform_3, window_bounds = array<i64: 1, 64, 1>}, {transform_indices = @transform_4, window_bounds = array<i64: 1, 64, 1>}]} {
    %c0 = arith.constant 0 : index
    %c0_0 = arith.constant 0 : index
    %0 = vector.load %arg1[%c0, %c0_0] : memref<64x800xbf16, #tpu.memory_space<vmem>>, vector<64x800xbf16>
    %c0_1 = arith.constant 0 : index
    %c0_2 = arith.constant 0 : index
    %1 = vector.load %arg2[%c0_1, %c0_2] : memref<800x128xbf16, #tpu.memory_space<vmem>>, vector<800x128xbf16>
    %cst = arith.constant dense<0.000000e+00> : vector<64x128xf32>
    %2 = tpu.matmul %0, %1, %cst {dimension_numbers = #tpu.dot_dimension_numbers<[1], [0], [0], [1], [0, 0, 1, 1], [], []>} : vector<64x800xbf16>, vector<800x128xbf16>, vector<64x128xf32> -> vector<64x128xf32>
    %c0_3 = arith.constant 0 : index
    %c0_4 = arith.constant 0 : index
    %3 = vector.load %arg3[%c0_3, %c0_4] : memref<64x128xf32, #tpu.memory_space<vmem>>, vector<64x128xf32>
    tpu.vector_store %arg3[%c0_3, %c0_4], %2 {strides = array<i32>} : memref<64x128xf32, #tpu.memory_space<vmem>>, vector<64x128xf32>,
    %cst_5 = arith.constant dense<0.000000e+00> : vector<64xf32>
    %4 = vector.multi_reduction <add>, %2, %cst_5 [1] : vector<64x128xf32> to vector<64xf32>
    %5 = vector.shape_cast %4 : vector<64xf32> to vector<64x1xf32>
    %c0_6 = arith.constant 0 : index
    %c0_7 = arith.constant 0 : index
    %c0_8 = arith.constant 0 : index
    %6 = vector.load %arg4[%c0_6, %c0_7, %c0_8] : memref<1x64x1xf32, #tpu.memory_space<vmem>>, vector<1x64x1xf32>
    %7 = vector.shape_cast %6 : vector<1x64x1xf32> to vector<64x1xf32>
    %8 = vector.shape_cast %5 : vector<64x1xf32> to vector<1x64x1xf32>
    tpu.vector_store %arg4[%c0_6, %c0_7, %c0_8], %8 {strides = array<i32>} : memref<1x64x1xf32, #tpu.memory_space<vmem>>, vector<1x64x1xf32>,
    %9 = arith.mulf %2, %2 : vector<64x128xf32>
    %cst_9 = arith.constant dense<0.000000e+00> : vector<64xf32>
    %10 = vector.multi_reduction <add>, %9, %cst_9 [1] : vector<64x128xf32> to vector<64xf32>
    %11 = vector.shape_cast %10 : vector<64xf32> to vector<64x1xf32>
    %c0_10 = arith.constant 0 : index
    %c0_11 = arith.constant 0 : index
    %c0_12 = arith.constant 0 : index
    %12 = vector.load %arg5[%c0_10, %c0_11, %c0_12] : memref<1x64x1xf32, #tpu.memory_space<vmem>>, vector<1x64x1xf32>
    %13 = vector.shape_cast %12 : vector<1x64x1xf32> to vector<64x1xf32>
    %14 = vector.shape_cast %11 : vector<64x1xf32> to vector<1x64x1xf32>
    tpu.vector_store %arg5[%c0_10, %c0_11, %c0_12], %14 {strides = array<i32>} : memref<1x64x1xf32, #tpu.memory_space<vmem>>, vector<1x64x1xf32>,
    return
  }
  func.func @transform_0(%arg0: i32) -> (i32, i32) {
    %c0_i32 = arith.constant 0 : i32
    %c0_i32_0 = arith.constant 0 : i32
    %c0_i32_1 = arith.constant 0 : i32
    return %c0_i32, %c0_i32_0 : i32, i32
  }
  func.func @transform_1(%arg0: i32) -> (i32, i32) {
    %c0_i32 = arith.constant 0 : i32
    %c0_i32_0 = arith.constant 0 : i32
    return %c0_i32, %arg0 : i32, i32
  }
  func.func @transform_2(%arg0: i32) -> (i32, i32) {
    %c0_i32 = arith.constant 0 : i32
    %c0_i32_0 = arith.constant 0 : i32
    return %c0_i32, %arg0 : i32, i32
  }
  func.func @transform_3(%arg0: i32) -> (i32, i32, i32) {
    %c0_i32 = arith.constant 0 : i32
    %c0_i32_0 = arith.constant 0 : i32
    %c0_i32_1 = arith.constant 0 : i32
    return %arg0, %c0_i32, %c0_i32_0 : i32, i32, i32
  }
  func.func @transform_4(%arg0: i32) -> (i32, i32, i32) {
    %c0_i32 = arith.constant 0 : i32
    %c0_i32_0 = arith.constant 0 : i32
    %c0_i32_1 = arith.constant 0 : i32
    return %arg0, %c0_i32, %c0_i32_0 : i32, i32, i32
  }
}

module attributes {stable_mosaic.version = 11 : i64} {
  func.func @bn_relu_kernel(%arg0: i32, %arg1: memref<64x128xf32, #tpu.memory_space<vmem>>, %arg2: memref<64x1xf32, #tpu.memory_space<vmem>>, %arg3: memref<64x1xf32, #tpu.memory_space<vmem>>, %arg4: memref<64x128xbf16, #tpu.memory_space<vmem>>) attributes {dimension_semantics = [#tpu.dimension_semantics<parallel>], iteration_bounds = array<i64: 1>, scalar_prefetch = 0 : i64, scratch_operands = 0 : i64, tpu.core_type = #tpu.core_type<tc>, window_params = [{transform_indices = @transform_0, window_bounds = array<i64: 64, 128>}, {pipeline_mode = #tpu.pipeline_mode<synchronous>, transform_indices = @transform_1, window_bounds = array<i64: 64, 1>}, {pipeline_mode = #tpu.pipeline_mode<synchronous>, transform_indices = @transform_2, window_bounds = array<i64: 64, 1>}, {transform_indices = @transform_3, window_bounds = array<i64: 64, 128>}]} {
    %c0 = arith.constant 0 : index
    %c0_0 = arith.constant 0 : index
    %0 = vector.load %arg1[%c0, %c0_0] : memref<64x128xf32, #tpu.memory_space<vmem>>, vector<64x128xf32>
    %c0_1 = arith.constant 0 : index
    %c0_2 = arith.constant 0 : index
    %1 = vector.load %arg2[%c0_1, %c0_2] : memref<64x1xf32, #tpu.memory_space<vmem>>, vector<64x1xf32>
    %2 = vector.broadcast %1 : vector<64x1xf32> to vector<64x128xf32>
    %3 = arith.mulf %0, %2 : vector<64x128xf32>
    %c0_3 = arith.constant 0 : index
    %c0_4 = arith.constant 0 : index
    %4 = vector.load %arg3[%c0_3, %c0_4] : memref<64x1xf32, #tpu.memory_space<vmem>>, vector<64x1xf32>
    %5 = vector.broadcast %4 : vector<64x1xf32> to vector<64x128xf32>
    %6 = arith.addf %3, %5 : vector<64x128xf32>
    %cst = arith.constant 0.000000e+00 : f32
    %7 = vector.broadcast %cst : f32 to vector<64x128xf32>
    %8 = arith.maximumf %6, %7 : vector<64x128xf32>
    %9 = arith.truncf %8 : vector<64x128xf32> to vector<64x128xbf16>
    %c0_5 = arith.constant 0 : index
    %c0_6 = arith.constant 0 : index
    %10 = vector.load %arg4[%c0_5, %c0_6] : memref<64x128xbf16, #tpu.memory_space<vmem>>, vector<64x128xbf16>
    tpu.vector_store %arg4[%c0_5, %c0_6], %9 {strides = array<i32>} : memref<64x128xbf16, #tpu.memory_space<vmem>>, vector<64x128xbf16>,
    return
  }
  func.func @transform_0(%arg0: i32) -> (i32, i32) {
    %c0_i32 = arith.constant 0 : i32
    %c0_i32_0 = arith.constant 0 : i32
    return %c0_i32, %arg0 : i32, i32
  }
  func.func @transform_1(%arg0: i32) -> (i32, i32) {
    %c0_i32 = arith.constant 0 : i32
    %c0_i32_0 = arith.constant 0 : i32
    %c0_i32_1 = arith.constant 0 : i32
    return %c0_i32, %c0_i32_0 : i32, i32
  }
  func.func @transform_2(%arg0: i32) -> (i32, i32) {
    %c0_i32 = arith.constant 0 : i32
    %c0_i32_0 = arith.constant 0 : i32
    %c0_i32_1 = arith.constant 0 : i32
    return %c0_i32, %c0_i32_0 : i32, i32
  }
  func.func @transform_3(%arg0: i32) -> (i32, i32) {
    %c0_i32 = arith.constant 0 : i32
    %c0_i32_0 = arith.constant 0 : i32
    return %c0_i32, %arg0 : i32, i32
  }
}

module attributes {stable_mosaic.version = 11 : i64} {
  func.func @fc_kernel(%arg0: memref<2x3136xbf16, #tpu.memory_space<vmem>>, %arg1: memref<3136x2xbf16, #tpu.memory_space<vmem>>, %arg2: memref<1x2xf32, #tpu.memory_space<vmem>>, %arg3: memref<2x2xf32, #tpu.memory_space<vmem>>) attributes {dimension_semantics = [], scalar_prefetch = 0 : i64, scratch_operands = 0 : i64, tpu.core_type = #tpu.core_type<tc>} {
    %c0 = arith.constant 0 : index
    %c0_0 = arith.constant 0 : index
    %0 = vector.load %arg0[%c0, %c0_0] : memref<2x3136xbf16, #tpu.memory_space<vmem>>, vector<2x3136xbf16>
    %c0_1 = arith.constant 0 : index
    %c0_2 = arith.constant 0 : index
    %1 = vector.load %arg1[%c0_1, %c0_2] : memref<3136x2xbf16, #tpu.memory_space<vmem>>, vector<3136x2xbf16>
    %cst = arith.constant dense<0.000000e+00> : vector<2x2xf32>
    %2 = tpu.matmul %0, %1, %cst {dimension_numbers = #tpu.dot_dimension_numbers<[1], [0], [0], [1], [0, 0, 1, 1], [], []>} : vector<2x3136xbf16>, vector<3136x2xbf16>, vector<2x2xf32> -> vector<2x2xf32>
    %c0_3 = arith.constant 0 : index
    %c0_4 = arith.constant 0 : index
    %3 = vector.load %arg2[%c0_3, %c0_4] : memref<1x2xf32, #tpu.memory_space<vmem>>, vector<1x2xf32>
    %4 = vector.broadcast %3 : vector<1x2xf32> to vector<2x2xf32>
    %5 = arith.addf %2, %4 : vector<2x2xf32>
    %c0_5 = arith.constant 0 : index
    %c0_6 = arith.constant 0 : index
    %6 = vector.load %arg3[%c0_5, %c0_6] : memref<2x2xf32, #tpu.memory_space<vmem>>, vector<2x2xf32>
    tpu.vector_store %arg3[%c0_5, %c0_6], %5 {strides = array<i32>} : memref<2x2xf32, #tpu.memory_space<vmem>>, vector<2x2xf32>,
    return
  }
}

</mosaic_0001>

<bundles_post_ra>
// kernel: dqn_forward.8
= control target key start
LH: loop header
LB: loop body
LE: loop exit
PB: predicated region body
PF: predicated region fallthrough
CT: control target
= control target key end

     0   :  { %s562_s12 = smov 0   ;;  %s564_s13 = smov 0   ;;  %s671_s0 = inlined_call_operand.vmem [shape: f32[16,3584], index: 0, kind: input, shape index: {}]   ;;  %s672_s1 = inlined_call_operand.vmem [shape: f32[16,1], index: 1, kind: input, shape index: {}]   ;;  %s673_s2 = inlined_call_operand.vmem [shape: f32[16,1], index: 2, kind: input, shape index: {}]   ;;  %s674_s3 = inlined_call_operand.vmem [shape: bf16[16,3584], index: 3, kind: output, shape index: {}]  }
   0x1   :  { %s566_s14 = smov 0  }
   0x2 LB: > { %s456_s15 = sadd.s32 4294967295, %s539_s14   ;;  %s579_s16 = sadd.s32 1, %s539_s14   ;;  %s539_s14 = sphi %s566_s14, %s678_s14   ;;  %s535_s13 = sphi %s564_s13, %s677_s13   ;;  %s531_s12 = sphi %s562_s12, %s676_s12  }
   0x3   : > { %s17_s17 = ssub.s32 %s539_s14, %s579_s16  ;;  %s20_s18 = sadd.s32 1, %s535_s13 }
   0x4   : > { %p18_p0 = scmp.eq.s32.totalorder %s17_s17, 0  ;;  %p27_p1 = scmp.ne.s32.totalorder %s535_s13, %s531_s12 }
   0x5   : > { %p28_p2 = scmp.eq.s32.totalorder %s539_s14, 0  ;;  %p99_p3 = scmp.eq.s32.totalorder %s456_s15, 3 }
   0x6   : > { %s590_s19 = scalar_select %p18_p0, %s535_s13, %s20_s18  }
   0x7   : > { %p29_p4 = por %p28_p2, %p27_p1  ;;  %p592_p5 = por %p99_p3, %p27_p1 }
   0x8   : > { %p459_p6 = scmp.ge.s32.totalorder %s539_s14, 4 }
   0xa   : > { %127 = sbr.rel (%p459_p6) target bundleno = 27 (0x1b), region = 24 }
   0xf   : > { %130 = sbr.rel (!%p29_p4) target bundleno = 27 (0x1b), region = 28  ;;  %s132_s21 = sand.u32 (%p29_p4), 1, %s535_s13  }
  0x10   : > { %s477_s22 = smul.u32 (%p29_p4), 56, %s539_s14 }
  0x11   : > { %s487_s23 = smul.u32 (%p29_p4), 112, %s132_s21 }
  0x12   : > { %s137_s26 = scalar_lea.vmem (%p29_p4), %s671_s0, %s477_s22 }
  0x13   : > { %v150_v0 = vld [vmem:[%s137_s26] sm:$0xff] (%p29_p4)  ;;  %v152_v1 = vld [vmem:[%s137_s26 + $0x8] sm:$0xff] (%p29_p4)  ;;  %v154_v2 = vld [vmem:[%s137_s26 + $0x10] sm:$0xff] (%p29_p4)  ;;  %s134_s27 = scalar_lea.vmem (%p29_p4), [#allocation2], %s487_s23 }
  0x14   : > { %151 = vst [vmem:[%s134_s27] sm:$0xff] %v150_v0  ;;  %153 = vst [vmem:[%s134_s27 + $0x8] sm:$0xff] %v152_v1  ;;  %v156_v3 = vld [vmem:[%s137_s26 + $0x18] sm:$0xff]  ;;  %v158_v4 = vld [vmem:[%s137_s26 + $0x20] sm:$0xff] }
  0x15   : > { %155 = vst [vmem:[%s134_s27 + $0x10] sm:$0xff] %v154_v2  ;;  %v160_v5 = vld [vmem:[%s137_s26 + $0x28] sm:$0xff]  ;;  %157 = vst [vmem:[%s134_s27 + $0x18] sm:$0xff] %v156_v3  ;;  %v162_v6 = vld [vmem:[%s137_s26 + $0x30] sm:$0xff] }
  0x16   : > { %159 = vst [vmem:[%s134_s27 + $0x20] sm:$0xff] %v158_v4  ;;  %161 = vst [vmem:[%s134_s27 + $0x28] sm:$0xff] %v160_v5  ;;  %v164_v7 = vld [vmem:[%s137_s26 + $0xe0] sm:$0xff]  ;;  %v166_v8 = vld [vmem:[%s137_s26 + $0xe8] sm:$0xff] }
  0x17   : > { %163 = vst [vmem:[%s134_s27 + $0x30] sm:$0xff] %v162_v6  ;;  %165 = vst [vmem:[%s134_s27 + $0x38] sm:$0xff] %v164_v7  ;;  %v168_v9 = vld [vmem:[%s137_s26 + $0xf0] sm:$0xff]  ;;  %v170_v10 = vld [vmem:[%s137_s26 + $0xf8] sm:$0xff] }
  0x18   : > { %167 = vst [vmem:[%s134_s27 + $0x40] sm:$0xff] %v166_v8  ;;  %v172_v11 = vld [vmem:[%s137_s26 + $0x100] sm:$0xff]  ;;  %169 = vst [vmem:[%s134_s27 + $0x48] sm:$0xff] %v168_v9  ;;  %v174_v12 = vld [vmem:[%s137_s26 + $0x108] sm:$0xff] }
  0x19   : > { %171 = vst [vmem:[%s134_s27 + $0x50] sm:$0xff] %v170_v10  ;;  %173 = vst [vmem:[%s134_s27 + $0x58] sm:$0xff] %v172_v11  ;;  %v176_v13 = vld [vmem:[%s137_s26 + $0x110] sm:$0xff] }
  0x1a   : > { %175 = vst [vmem:[%s134_s27 + $0x60] sm:$0xff] %v174_v12  ;;  %177 = vst [vmem:[%s134_s27 + $0x68] sm:$0xff] %v176_v13 }
  0x1b PF: > { %p461_p7 = scmp.ge.s32.totalorder %s539_s14, 1  ;;  %p182_p8 = scmp.lt.s32.totalorder %s539_s14, 5 }
  0x1d   : > { %p183_p9 = pnand %p461_p7, %p182_p8 }
  0x1e   : > { %s189_s9 = sand.u32 (!%p183_p9), 1, %s531_s12  }
  0x1f   : > { %186 = sbr.rel (%p183_p9) target bundleno = 187 (0xbb), region = 51 }
  0x20   : > { %s488_s10 = smul.u32 (!%p183_p9), 112, %s189_s9 }
  0x21   : > { %s626_s12 = smul.u32 (!%p183_p9), 56, %s189_s9 }
  0x22   : > { %s617_s11 = scalar_lea.vmem (!%p183_p9), [#allocation2], %s488_s10 }
  0x23   : > { %s636_s17 = scalar_lea.vmem (!%p183_p9), [#allocation3], %s626_s12 }
  0x24   : > { %v253_v14 = vld [vmem:[%s673_s2] sm:$0xff]  ;;  %v541_v16 = vmov 0   ;;  %v254_v17 = vld [vmem:[%s673_s2 + $0x8] sm:$0xff]  ;;  %s486_s18 = smul.u32 (%p592_p5), 28, %s456_s15 }
  0x25   : > { %v227_v15 = vld [vmem:[%s672_s1] sm:$0xff]  ;;  %516 = vset.pattern.permute.xlu1 %v541_v16  ;;  %515 = vset.pattern.permute.xlu0 %v541_v16  ;;  %v228_v18 = vld [vmem:[%s672_s1 + $0x8] sm:$0xff] }
  0x26   : > { %257 = vperm.xlu1 %516, %v253_v14   ;;  %231 = vperm.xlu0 %515, %v227_v15   ;;  %v213_v19 = vld [vmem:[%s617_s11] sm:$0xff]  ;;  %v214_v20 = vld [vmem:[%s617_s11 + $0x8] sm:$0xff]  ;;  %v215_v21 = vld [vmem:[%s617_s11 + $0x10] sm:$0xff]  ;;  %s354_s22 = scalar_lea.vmem (%p592_p5), %s674_s3, %s486_s18 }
  0x27   : > { %v216_v22 = vld [vmem:[%s617_s11 + $0x18] sm:$0xff]  ;;  %v217_v23 = vld [vmem:[%s617_s11 + $0x20] sm:$0xff]  ;;  %v218_v24 = vld [vmem:[%s617_s11 + $0x28] sm:$0xff] }
  0x28   : > { %v219_v25 = vld [vmem:[%s617_s11 + $0x30] sm:$0xff]  ;;  %v220_v39 = vld [vmem:[%s617_s11 + $0x38] sm:$0xff]  ;;  %v221_v44 = vld [vmem:[%s617_s11 + $0x40] sm:$0xff] }
  0x29   : > { %v222_v45 = vld [vmem:[%s617_s11 + $0x48] sm:$0xff]  ;;  %v223_v50 = vld [vmem:[%s617_s11 + $0x50] sm:$0xff]  ;;  %v224_v51 = vld [vmem:[%s617_s11 + $0x58] sm:$0xff] }
  0x2a   : > { %262 = vperm.xlu1 %516, %v254_v17   ;;  %236 = vperm.xlu0 %515, %v228_v18   ;;  %v225_v55 = vld [vmem:[%s617_s11 + $0x60] sm:$0xff]  ;;  %v226_v56 = vld [vmem:[%s617_s11 + $0x68] sm:$0xff] }
  0xa1   : > { %v232_v26 = vpop.permute.xlu0 %231  ;;  %v258_v31 = vpop.permute.xlu1 %257 }
  0xa2   : > { %v239_v27 = vmul.f32 %v232_v26, %v213_v19  ;;  %v240_v28 = vmul.f32 %v232_v26, %v214_v20  ;;  %v241_v29 = vmul.f32 %v232_v26, %v215_v21  ;;  %v242_v30 = vmul.f32 %v232_v26, %v216_v22 }
  0xa3   : > { %v243_v32 = vmul.f32 %v232_v26, %v217_v23  ;;  %v244_v33 = vmul.f32 %v232_v26, %v218_v24  ;;  %v245_v34 = vmul.f32 %v232_v26, %v219_v25 }
  0xa4   : > { %v265_v35 = vadd.f32 %v258_v31, %v239_v27  ;;  %v266_v36 = vadd.f32 %v258_v31, %v240_v28  ;;  %v267_v37 = vadd.f32 %v258_v31, %v241_v29  ;;  %v268_v38 = vadd.f32 %v258_v31, %v242_v30 }
  0xa5   : > { %v269_v40 = vadd.f32 %v258_v31, %v243_v32  ;;  %v270_v41 = vadd.f32 %v258_v31, %v244_v33  ;;  %v271_v42 = vadd.f32 %v258_v31, %v245_v34  ;;  %v237_v43 = vpop.permute.xlu0 %236  ;;  %v263_v0 = vpop.permute.xlu1 %262 }
  0xa6   : > { %v279_v46 = vmax.f32 %v265_v35, 0.0  ;;  %v280_v47 = vmax.f32 %v266_v36, 0.0  ;;  %v281_v48 = vmax.f32 %v267_v37, 0.0  ;;  %v282_v49 = vmax.f32 %v268_v38, 0.0 }
  0xa7   : > { %v283_v52 = vmax.f32 %v269_v40, 0.0  ;;  %v284_v53 = vmax.f32 %v270_v41, 0.0  ;;  %v285_v54 = vmax.f32 %v271_v42, 0.0  ;;  %v246_v57 = vmul.f32 %v237_v43, %v220_v39 }
  0xa8   : > { %v478_v58 = vpack.c.bf16 %v280_v47, %v279_v46  ;;  %v479_v59 = vpack.c.bf16 %v282_v49, %v281_v48  ;;  %v247_v60 = vmul.f32 %v237_v43, %v221_v44  ;;  %v248_v61 = vmul.f32 %v237_v43, %v222_v45 }
  0xa9   : > { %v480_v62 = vpack.c.bf16 %v284_v53, %v283_v52  ;;  %v481_v63 = vpack.c.bf16 %v285_v54, %v285_v54  ;;  %v249_v1 = vmul.f32 %v237_v43, %v223_v50  ;;  %v250_v2 = vmul.f32 %v237_v43, %v224_v51 }
  0xaa   : > { %337 = vst [vmem:[%s636_s17] sm:$0xff] %v478_v58  ;;  %338 = vst [vmem:[%s636_s17 + $0x8] sm:$0xff] %v479_v59  ;;  %v251_v3 = vmul.f32 %v237_v43, %v225_v55  ;;  %v252_v4 = vmul.f32 %v237_v43, %v226_v56  ;;  %v272_v5 = vadd.f32 %v263_v0, %v246_v57 }
  0xab   : > { %v273_v6 = vadd.f32 %v263_v0, %v247_v60  ;;  %339 = vst [vmem:[%s636_s17 + $0x10] sm:$0xff] %v480_v62  ;;  %340 = vst [vmem:[%s636_s17 + $0x18] sm:$0xf] %v481_v63  ;;  %v274_v7 = vadd.f32 %v263_v0, %v248_v61  ;;  %v275_v8 = vadd.f32 %v263_v0, %v249_v1 }
  0xac   : > { %v276_v9 = vadd.f32 %v263_v0, %v250_v2  ;;  %v277_v10 = vadd.f32 %v263_v0, %v251_v3  ;;  %v278_v11 = vadd.f32 %v263_v0, %v252_v4  ;;  %v286_v12 = vmax.f32 %v272_v5, 0.0 }
  0xad   : > { %v287_v13 = vmax.f32 %v273_v6, 0.0  ;;  %v288_v14 = vmax.f32 %v274_v7, 0.0  ;;  %v289_v15 = vmax.f32 %v275_v8, 0.0 }
  0xae   : > { %v290_v16 = vmax.f32 %v276_v9, 0.0  ;;  %v291_v17 = vmax.f32 %v277_v10, 0.0  ;;  %v292_v18 = vmax.f32 %v278_v11, 0.0  ;;  %351 = sbr.rel (!%p592_p5) target bundleno = 187 (0xbb), region = 59 }
  0xaf   : > { %v482_v19 = vpack.c.bf16 %v287_v13, %v286_v12  ;;  %v483_v20 = vpack.c.bf16 %v289_v15, %v288_v14 }
  0xb0   : > { %v484_v21 = vpack.c.bf16 %v291_v17, %v290_v16  ;;  %v485_v22 = vpack.c.bf16 %v292_v18, %v292_v18 }
  0xb1   : > { %341 = vst [vmem:[%s636_s17 + $0x1c] sm:$0xff] %v482_v19  ;;  %342 = vst [vmem:[%s636_s17 + $0x24] sm:$0xff] %v483_v20  ;;  %v369_v23 = vld [vmem:[%s636_s17] sm:$0xff] (%p592_p5)  ;;  %v371_v24 = vld [vmem:[%s636_s17 + $0x8] sm:$0xff] (%p592_p5) }
  0xb2   : > { %343 = vst [vmem:[%s636_s17 + $0x2c] sm:$0xff] %v484_v21  ;;  %344 = vst [vmem:[%s636_s17 + $0x34] sm:$0xf] %v485_v22  ;;  %v373_v25 = vld [vmem:[%s636_s17 + $0x10] sm:$0xff] (%p592_p5)  ;;  %v471_v29 = vld [vmem:[%s636_s17 + $0x18] sm:$0xf] (%p592_p5) }
  0xb3   : > { %370 = vst [vmem:[%s354_s22] sm:$0xff] %v369_v23  ;;  %372 = vst [vmem:[%s354_s22 + $0x8] sm:$0xff] %v371_v24 }
  0xb4   : > { %374 = vst [vmem:[%s354_s22 + $0x10] sm:$0xff] %v373_v25  ;;  %472 = vst [vmem:[%s354_s22 + $0x18] sm:$0xf] %v471_v29 }
  0xb8   : > { %v375_v26 = vld [vmem:[%s636_s17 + $0x1c] sm:$0xff]  ;;  %v377_v27 = vld [vmem:[%s636_s17 + $0x24] sm:$0xff] }
  0xb9   : > { %v379_v28 = vld [vmem:[%s636_s17 + $0x2c] sm:$0xff]  ;;  %v473_v30 = vld [vmem:[%s636_s17 + $0x34] sm:$0xf]  ;;  %376 = vst [vmem:[%s354_s22 + $0x70] sm:$0xff] %v375_v26  ;;  %378 = vst [vmem:[%s354_s22 + $0x78] sm:$0xff] %v377_v27 }
  0xba   : > { %380 = vst [vmem:[%s354_s22 + $0x80] sm:$0xff] %v379_v28  ;;  %474 = vst [vmem:[%s354_s22 + $0x88] sm:$0xf] %v473_v30 }
  0xbb PF: > { %p10_p10 = scmp.ge.s32.totalorder %s579_s16, 6   ;;  %s676_s12 = smov %s535_s13 }
  0xbc   : > { %s677_s13 = smov %s590_s19  ;;  %s678_s14 = smov %s579_s16 }
  0xbd   :  { %12 = sbr.rel (!%p10_p10) target bundleno = 2 (0x2), region = 122 }

// kernel: dqn_forward.7
= control target key start
LH: loop header
LB: loop body
LE: loop exit
PB: predicated region body
PF: predicated region fallthrough
CT: control target
= control target key end

     0   :  { %10 = vsyncpa [#allocation3], 0  ;;  %s1045_s15 = smov 0   ;;  %s1047_s16 = smov 0   ;;  %s1209_s0 = inlined_call_operand.hbm [shape: bf16[16,25], index: 0, kind: input, shape index: {}]   ;;  %s1210_s1 = inlined_call_operand.vmem [shape: bf16[25,3584], index: 1, kind: input, shape index: {}]   ;;  %s1211_s2 = inlined_call_operand.vmem [shape: f32[16,3584], index: 2, kind: output, shape index: {0}]   ;;  %s1212_s3 = inlined_call_operand.vmem [shape: f32[4,16,1], index: 3, kind: output, shape index: {1}]   ;;  %s1213_s4 = inlined_call_operand.vmem [shape: f32[4,16,1], index: 4, kind: output, shape index: {2}]  }
   0x1   :  { %s1049_s17 = smov 0  }
   0x2 LB: > { %s1061_s18 = sadd.s32 4294967295, %s1011_s17   ;;  %s1064_s19 = sadd.s32 1, %s1011_s17   ;;  %s1011_s17 = sphi %s1049_s17, %s1220_s17   ;;  %s1007_s16 = sphi %s1047_s16, %s1219_s16   ;;  %s1003_s15 = sphi %s1045_s15, %s1218_s15  }
   0x3   : > { %s41_s20 = ssub.s32 %s1011_s17, %s1064_s19  ;;  %s44_s21 = sadd.s32 1, %s1007_s16 }
   0x4   : > { %p42_p0 = scmp.eq.s32.totalorder %s41_s20, 0  ;;  %p51_p1 = scmp.ne.s32.totalorder %s1007_s16, %s1003_s15 }
   0x5   : > { %p52_p2 = scmp.eq.s32.totalorder %s1011_s17, 0  ;;  %p81_p3 = scmp.eq.s32.totalorder %s1061_s18, 3 }
   0x6   : > { %s1074_s22 = scalar_select %p42_p0, %s1007_s16, %s44_s21  }
   0x7   : > { %p1076_p4 = por %p52_p2, %p51_p1  ;;  %p1080_p5 = por %p81_p3, %p51_p1 }
   0x8   : > { %p840_p6 = scmp.ge.s32.totalorder %s1011_s17, 1  ;;  %p146_p7 = scmp.lt.s32.totalorder %s1011_s17, 5 }
   0x9   : > { %s1215_s24 = scalar_select %p1080_p5, 1, 0 }
   0xa   : > { %p905_p8 = scmp.eq.s32.totalorder %s1061_s18, 0  ;;  %p1087_p9 = pnand %p840_p6, %p146_p7 }
   0xb   : > { %s1013_s26 = smov [#allocation2]  }
   0xc   : > { %s158_s27 = sshll.u32 %s1013_s26, 4  ;;  %p901_p10 = pneg %p1087_p9  ;;  %s159_s27 = int_to_ptr.vmem [resolvable:$true] %s158_s27 }
   0xd   : > { %s970_s28 = scalar_lea.vmem %s159_s27, 128  ;;  %p978_p2 = scmp.lt.s32.totalorder %s159_s27, %s159_s27 }
   0xe   : > { %p902_p11 = pnand %p905_p8, %p901_p10  ;;  %p971_p13 = scmp.ne.s32.totalorder %s159_s27, %s970_s28 }
   0xf   : > { %p979_p3 = scmp.lt.s32.totalorder %s970_s28, %s970_s28 }
  0x10   : > { %p961_p12 = pneg %p902_p11 }
  0x11   : > { %p980_p5 = por %p979_p3, %p978_p2 }
  0x12   : > { %p973_p0 = pnand %p971_p13, %p961_p12 }
  0x14   : > { %p974_p1 = pneg %p973_p0 }
  0x16   : > { %p981_p6 = pnand %p980_p5, %p974_p1 }
  0x18   : > { %984 = shalt.err (!%p981_p6)
}
  0x19   : > { %s1014_s29 = smov 64   ;;  %s1015_s30 = smov 4  }
  0x1a   : > { %904 = dma.hbm_to_vmem [thread:$0]  (!%p902_p11), %s1209_s0, 128, %s159_s27, [#allocation3], %s1014_s29, %s1014_s29, %s1015_s30  }
  0x1b   : > { %p842_p7 = scmp.ge.s32.totalorder %s1011_s17, 4 }
  0x1d   : > { %168 = sbr.rel (%p842_p7) target bundleno = 47 (0x2f), region = 20 }
  0x22   : > { %171 = sbr.rel (!%p1076_p4) target bundleno = 47 (0x2f), region = 24  ;;  %s173_s7 = sand.u32 (%p1076_p4), 1, %s1007_s16  }
  0x23   : > { %s880_s8 = smul.u32 (%p1076_p4), 28, %s1011_s17 }
  0x24   : > { %s895_s9 = smul.u32 (%p1076_p4), 112, %s173_s7 }
  0x25   : > { %s1106_s12 = scalar_lea.vmem (%p1076_p4), %s1210_s1, %s880_s8 }
  0x26   : > { %v193_v0 = vld [vmem:[%s1106_s12] sm:$0xff] (%p1076_p4)  ;;  %v195_v1 = vld [vmem:[%s1106_s12 + $0x8] sm:$0xff] (%p1076_p4)  ;;  %v197_v2 = vld [vmem:[%s1106_s12 + $0x10] sm:$0xff] (%p1076_p4)  ;;  %s175_s13 = scalar_lea.vmem (%p1076_p4), [#allocation4], %s895_s9 }
  0x27   : > { %194 = vst [vmem:[%s175_s13] sm:$0xff] %v193_v0  ;;  %196 = vst [vmem:[%s175_s13 + $0x8] sm:$0xff] %v195_v1  ;;  %v199_v3 = vld [vmem:[%s1106_s12 + $0x70] sm:$0xff]  ;;  %v201_v4 = vld [vmem:[%s1106_s12 + $0x78] sm:$0xff] }
  0x28   : > { %198 = vst [vmem:[%s175_s13 + $0x10] sm:$0xff] %v197_v2  ;;  %v203_v5 = vld [vmem:[%s1106_s12 + $0x80] sm:$0xff]  ;;  %200 = vst [vmem:[%s175_s13 + $0x1c] sm:$0xff] %v199_v3  ;;  %v207_v7 = vld [vmem:[%s1106_s12 + $0xe8] sm:$0xff] }
  0x29   : > { %202 = vst [vmem:[%s175_s13 + $0x24] sm:$0xff] %v201_v4  ;;  %204 = vst [vmem:[%s175_s13 + $0x2c] sm:$0xff] %v203_v5  ;;  %v205_v6 = vld [vmem:[%s1106_s12 + $0xe0] sm:$0xff]  ;;  %v209_v8 = vld [vmem:[%s1106_s12 + $0xf0] sm:$0xff] }
  0x2a   : > { %206 = vst [vmem:[%s175_s13 + $0x38] sm:$0xff] %v205_v6  ;;  %208 = vst [vmem:[%s175_s13 + $0x40] sm:$0xff] %v207_v7  ;;  %v211_v9 = vld [vmem:[%s1106_s12 + $0x150] sm:$0xff]  ;;  %v213_v10 = vld [vmem:[%s1106_s12 + $0x158] sm:$0xff] }
  0x2b   : > { %210 = vst [vmem:[%s175_s13 + $0x48] sm:$0xff] %v209_v8  ;;  %v215_v11 = vld [vmem:[%s1106_s12 + $0x160] sm:$0xff]  ;;  %212 = vst [vmem:[%s175_s13 + $0x54] sm:$0xff] %v211_v9  ;;  %v844_v12 = vld [vmem:[%s1106_s12 + $0x18] sm:$0xf] }
  0x2c   : > { %214 = vst [vmem:[%s175_s13 + $0x5c] sm:$0xff] %v213_v10  ;;  %216 = vst [vmem:[%s175_s13 + $0x64] sm:$0xff] %v215_v11  ;;  %v846_v13 = vld [vmem:[%s1106_s12 + $0x88] sm:$0xf]  ;;  %v848_v14 = vld [vmem:[%s1106_s12 + $0xf8] sm:$0xf] }
  0x2d   : > { %845 = vst [vmem:[%s175_s13 + $0x18] sm:$0xf] %v844_v12  ;;  %847 = vst [vmem:[%s175_s13 + $0x34] sm:$0xf] %v846_v13  ;;  %v850_v15 = vld [vmem:[%s1106_s12 + $0x168] sm:$0xf] }
  0x2e   : > { %849 = vst [vmem:[%s175_s13 + $0x50] sm:$0xf] %v848_v14  ;;  %851 = vst [vmem:[%s175_s13 + $0x6c] sm:$0xf] %v850_v15 }
  0x2f PF: > { %241 = sbr.rel (%p1087_p9) target bundleno = 421 (0x1a5), region = 50 }
  0x34   : > { %998 = dma.done.wait (%p905_p8), [#allocation3], 128  }
  0x35   : > { %1000 = vsyncadd (%p905_p8), [#allocation3], 4294967168  ;;  %s248_s14 = sand.u32 1, %s1003_s15   ;;  %vm387_vm0 = vcmask 1043456   ;;  %v1016_v16 = vmov 0   ;;  %vm388_vm1 = vcmask 1044480  }
  0x36   : > { %s1131_s17 = smul.u32 112, %s248_s14  ;;  %444 = vmatprep.mubr.bf16.mxu0 %v1016_v16  ;;  %487 = vmatprep.mubr.bf16.mxu1 %v1016_v16  ;;  %v1017_v17 = vmov 65535   ;;  %v950_v34 = vld [vmem:[#allocation2] sm:$0xff]   ;;  %vm383_vm2 = vcmask 203776   ;;  %v1018_v38 = vmov 0.0   ;;  %vm1019_vm3 = vmmov 0  }
  0x37   : > { %v389_v18 = vsel %vm387_vm0, 4294967295, %v1017_v17  ;;  %p284_p4 = scmp.lt.s32.totalorder %s1061_s18, 3  ;;  %vm612_vm4 = vcmask 7168   ;;  %p1217_p5 = scmp.ne.s32.totalorder %s1215_s24, 0 }
  0x38   : > { %v390_v19 = vsel %vm388_vm1, %v389_v18, 0  ;;  %s1134_s20 = scalar_lea.vmem [#allocation4], %s1131_s17  ;;  %s1155_s15 = scalar_lea.vmem [#allocation5], %s1131_s17 }
  0x39   : > { %v938_v20 = vld [vmem:[%s1134_s20 + $0x3c] ss:$28 sps:$4 sm:$0x1f]   ;;  %v940_v21 = vld [vmem:[%s1134_s20 + $0x44] ss:$28 sps:$4 sm:$0x1f]  }
  0x3a   : > { %v395_v22 = vand.u32 %v938_v20, %v390_v19  ;;  %v942_v23 = vld [vmem:[%s1134_s20 + $0x38] ss:$28 sps:$4 sm:$0x1f]   ;;  %v943_v24 = vld [vmem:[%s1134_s20 + $0x40] ss:$28 sps:$4 sm:$0x1f]   ;;  %v401_v25 = vand.u32 %v940_v21, %v390_v19 }
  0x3b   : > { %v944_v26 = vld [vmem:[%s1134_s20 + $0x4] ss:$28 sps:$4 sm:$0xff]   ;;  %v392_v27 = vand.u32 %v942_v23, %v390_v19  ;;  %v398_v28 = vand.u32 %v943_v24, %v390_v19  ;;  %v946_v29 = vld [vmem:[%s1134_s20 + $0xc] ss:$28 sps:$4 sm:$0xff]   ;;  %v957_v40 = vld [vmem:[%s1134_s20 + $0x14] ss:$28 sps:$4 sm:$0xff]  }
  0x3c   : > { %424 = vmatprep.subr.bf16.mxu0 %v395_v22  ;;  %467 = vmatprep.subr.bf16.mxu1 %v401_v25  ;;  %v948_v30 = vld [vmem:[%s1134_s20] ss:$28 sps:$4 sm:$0xff]   ;;  %v949_v31 = vld [vmem:[%s1134_s20 + $0x8] ss:$28 sps:$4 sm:$0xff]   ;;  %v955_v41 = vld [vmem:[%s1134_s20 + $0x10] ss:$28 sps:$4 sm:$0xff]  }
  0x3d   : > { %425 = vmatpush1.bf16.msra.mxu0 %v392_v27  ;;  %468 = vmatpush1.bf16.msra.mxu1 %v398_v28  ;;  %v951_v32 = vld [vmem:[%s1134_s20 + $0x48] ss:$28 sps:$4 sm:$0x1f]   ;;  %v954_v35 = vld [vmem:[%s1134_s20 + $0x50] ss:$28 sps:$4 sm:$0x1f]  }
  0x3e   : > { %426 = vmatprep.subr.bf16.mxu0 %v944_v26  ;;  %469 = vmatprep.subr.bf16.mxu1 %v946_v29  ;;  %v953_v33 = vld [vmem:[%s1134_s20 + $0x4c] ss:$28 sps:$4 sm:$0x1f]   ;;  %v404_v37 = vand.u32 %v951_v32, %v390_v19  ;;  %v410_v39 = vand.u32 %v954_v35, %v390_v19  ;;  %v958_v42 = vld [vmem:[%s1134_s20 + $0x18] ss:$28 sps:$4 sm:$0xff]   ;;  %s285_s21 = scalar_select %p284_p4, %s1061_s18, 3 }
  0x3f   : > { %v407_v36 = vand.u32 %v953_v33, %v390_v19  ;;  %s883_s5 = smul.u32 (%p1217_p5), 56, %s1061_s18 }
  0x40   : > { %s881_s23 = sshll.u32 %s285_s21, 4 }
  0x41   : > { %427 = vmatpush1.bf16.msra.mxu0 %v948_v30  ;;  %470 = vmatpush1.bf16.msra.mxu1 %v949_v31  ;;  %s288_s27 = scalar_lea.vmem %s1212_s3, %s881_s23  ;;  %s293_s30 = scalar_lea.vmem %s1213_s4, %s881_s23 }
  0x42   : > { %887 = vmatprep.subr.bf16.mxu1 %v1018_v38  ;;  %510 = vmatprep.subr.bf16.mxu0 %v407_v36  ;;  %s666_s7 = scalar_lea.vmem (%p1217_p5), %s1211_s2, %s883_s5 }
  0x44   : > { %873 = vmatmul.mubr.msk.bf16.vlgmr.msra.gmra.mxu0 %vm383_vm2, %v950_v34  ;;  %874 = vmatmul.mubr.msk.bf16.vlgmr.msra.gmra.mxu1 %vm383_vm2, %v950_v34 }
  0x45   : > { %511 = vmatpush1.bf16.msra.mxu0 %v404_v37  ;;  %888 = vmatpush3.bf16.msra.mxu1 %v410_v39 }
  0x46   : > { %512 = vmatprep.subr.bf16.mxu0 %v957_v40  ;;  %889 = vmatprep.subr.bf16.mxu1 %v1018_v38 }
  0x47   : > { %530 = vmatprep.mubr.bf16.mxu0 %v1016_v16  ;;  %891 = vmatprep.mubr.msk.bf16.mxu1 %vm1019_vm3, %v1018_v38 }
  0x49   : > { %513 = vmatpush1.bf16.msra.mxu0 %v955_v41  ;;  %890 = vmatpush3.bf16.msra.mxu1 %v958_v42 }
  0x4c   : > { %875 = vmatmul.mubr.msk.bf16.vlgmr.msra.gmra.mxu0 %vm383_vm2, %v950_v34  ;;  %892 = vmatmul.mubr.msk.bf16.vlgmr.msra.gmra.mxu1 %vm383_vm2, %v950_v34 }
 0x104   : > { %v446_v43 = vpop.f32.mrf.mxu0  ;;  %v489_v44 = vpop.f32.mrf.mxu1 }
 0x105   : > { %582 = vst [vmem:[%s1155_s15] sm:$0xff] %v446_v43  ;;  %584 = vst [vmem:[%s1155_s15 + $0x10] sm:$0xff] %v489_v44  ;;  %v615_v47 = vmul.f32 %v446_v43, %v446_v43  ;;  %v617_v48 = vmul.f32 %v489_v44, %v489_v44 }
 0x106   : > { %v448_v45 = vpop.f32.mrf.mxu0  ;;  %v491_v46 = vpop.f32.mrf.mxu1 }
 0x107   : > { %583 = vst [vmem:[%s1155_s15 + $0x8] sm:$0xff] %v448_v45  ;;  %v596_v49 = vadd.f32 %v448_v45, %v446_v43  ;;  %v616_v50 = vmul.f32 %v448_v45, %v448_v45  ;;  %585 = vst [vmem:[%s1155_s15 + $0x18] sm:$0xff] %v491_v46  ;;  %v618_v55 = vmul.f32 %v491_v46, %v491_v46 }
 0x108   : > { %v450_v51 = vpop.f32.mrf.mxu0  ;;  %v493_v52 = vpop.f32.mrf.mxu1 }
 0x109   : > { %v629_v53 = vadd.f32 %v616_v50, %v615_v47  ;;  %v597_v54 = vadd.f32 %v596_v49, %v489_v44  ;;  %589 = vst [vmem:[%s1155_s15 + $0x38] sm:$0xff] %v450_v51  ;;  %591 = vst [vmem:[%s1155_s15 + $0x48] sm:$0xff] %v493_v52  ;;  %v622_v56 = vmul.f32 %v450_v51, %v450_v51 }
 0x10a   : > { %v452_v57 = vpop.f32.mrf.mxu0  ;;  %v495_v58 = vpop.f32.mrf.mxu1  ;;  %v624_v63 = vmul.f32 %v493_v52, %v493_v52 }
 0x10b   : > { %v598_v59 = vadd.f32 %v597_v54, %v491_v46  ;;  %v630_v60 = vadd.f32 %v629_v53, %v617_v48  ;;  %590 = vst [vmem:[%s1155_s15 + $0x40] sm:$0xff] %v452_v57  ;;  %v604_v61 = vadd.f32 %v452_v57, %v450_v51  ;;  %v623_v62 = vmul.f32 %v452_v57, %v452_v57 }
 0x10c   : > { %592 = vst [vmem:[%s1155_s15 + $0x50] sm:$0xff] %v495_v58  ;;  %v532_v0 = vpop.f32.mrf.mxu0  ;;  %v575_v1 = vpop.f32.mrf.mxu1  ;;  %v625_v6 = vmul.f32 %v495_v58, %v495_v58  ;;  %v679_v37 = vld [vmem:[%s1155_s15] sm:$0xff] (%p1217_p5)  ;;  %v683_v39 = vld [vmem:[%s1155_s15 + $0x10] sm:$0xff] (%p1217_p5) }
 0x10d   : > { %v631_v2 = vadd.f32 %v630_v60, %v618_v55  ;;  %v637_v3 = vadd.f32 %v623_v62, %v622_v56  ;;  %v605_v4 = vadd.f32 %v604_v61, %v493_v52  ;;  %586 = vst [vmem:[%s1155_s15 + $0x20] sm:$0xff] %v532_v0  ;;  %v599_v5 = vadd.f32 %v598_v59, %v532_v0 }
 0x10e   : > { %588 = vst [vmem:[%s1155_s15 + $0x30] sm:$0xff] %v575_v1  ;;  %v619_v7 = vmul.f32 %v532_v0, %v532_v0  ;;  %v534_v8 = vpop.f32.mrf.mxu0  ;;  %v893_v9 = vpop.f32.mrf.mxu1  ;;  %v621_v16 = vmul.f32 %v575_v1, %v575_v1  ;;  %v681_v38 = vld [vmem:[%s1155_s15 + $0x8] sm:$0xff] (%p1217_p5)  ;;  %v685_v40 = vld [vmem:[%s1155_s15 + $0x18] sm:$0xff] (%p1217_p5)  ;;  %680 = vst [vmem:[%s666_s7] sm:$0xff] (%p1217_p5), %v679_v37 }
 0x10f   : > { %v606_v10 = vadd.f32 %v605_v4, %v495_v58  ;;  %v638_v11 = vadd.f32 %v637_v3, %v624_v63  ;;  %587 = vst [vmem:[%s1155_s15 + $0x28] sm:$0xff] %v534_v8  ;;  %v620_v12 = vmul.f32 %v534_v8, %v534_v8  ;;  %v600_v13 = vadd.f32 %v599_v5, %v534_v8 }
 0x110   : > { %v536_v14 = vpop.f32.mrf.mxu0  ;;  %v578_v15 = vpop.f32.mrf.mxu1  ;;  %v632_v17 = vadd.f32 %v631_v2, %v619_v7  ;;  %v693_v44 = vld [vmem:[%s1155_s15 + $0x38] sm:$0xff] (%p1217_p5)  ;;  %682 = vst [vmem:[%s666_s7 + $0x8] sm:$0xff] (%p1217_p5), %v681_v38  ;;  %684 = vst [vmem:[%s666_s7 + $0x10] sm:$0xff] (%p1217_p5), %v683_v39  ;;  %v697_v46 = vld [vmem:[%s1155_s15 + $0x48] sm:$0xff] (%p1217_p5) }
 0x111   : > { %v639_v18 = vadd.f32 %v638_v11, %v625_v6  ;;  %593 = vst [vmem:[%s1155_s15 + $0x58] sm:$0xff] %v536_v14  ;;  %v607_v19 = vadd.f32 %v606_v10, %v536_v14  ;;  %v626_v20 = vmul.f32 %v536_v14, %v536_v14  ;;  %595 = vst [vmem:[%s1155_s15 + $0x68] sm:$0xff] %v578_v15 }
 0x112   : > { %v601_v21 = vadd.f32 %v600_v13, %v575_v1  ;;  %v538_v22 = vpop.f32.mrf.mxu0  ;;  %v894_v23 = vpop.f32.mrf.mxu1  ;;  %v633_v24 = vadd.f32 %v632_v17, %v620_v12  ;;  %v628_v30 = vmul.f32 %v578_v15, %v578_v15  ;;  %v695_v45 = vld [vmem:[%s1155_s15 + $0x40] sm:$0xff] (%p1217_p5)  ;;  %686 = vst [vmem:[%s666_s7 + $0x18] sm:$0xff] (%p1217_p5), %v685_v40  ;;  %694 = vst [vmem:[%s666_s7 + $0xe0] sm:$0xff] (%p1217_p5), %v693_v44 }
 0x113   : > { %594 = vst [vmem:[%s1155_s15 + $0x60] sm:$0xff] %v538_v22  ;;  %v608_v25 = vadd.f32 %v607_v19, %v538_v22  ;;  %v627_v26 = vmul.f32 %v538_v22, %v538_v22  ;;  %v640_v27 = vadd.f32 %v639_v18, %v626_v20  ;;  %696 = vst [vmem:[%s666_s7 + $0xe8] sm:$0xff] (%p1217_p5), %v695_v45  ;;  %v699_v47 = vld [vmem:[%s1155_s15 + $0x50] sm:$0xff] (%p1217_p5) }
 0x114   : > { %602 = vadd.xlane.f32.xlu0 %v601_v21  ;;  %v634_v28 = vadd.f32 %v633_v24, %v621_v16  ;;  %v687_v41 = vld [vmem:[%s1155_s15 + $0x20] sm:$0xff] (%p1217_p5)  ;;  %698 = vst [vmem:[%s666_s7 + $0xf0] sm:$0xff] (%p1217_p5), %v697_v46  ;;  %700 = vst [vmem:[%s666_s7 + $0xf8] sm:$0xff] (%p1217_p5), %v699_v47 }
 0x115   : > { %v609_v29 = vadd.f32 %v608_v25, %v578_v15  ;;  %v641_v31 = vadd.f32 %v640_v27, %v627_v26  ;;  %v691_v43 = vld [vmem:[%s1155_s15 + $0x30] sm:$0xff] (%p1217_p5)  ;;  %688 = vst [vmem:[%s666_s7 + $0x20] sm:$0xff] (%p1217_p5), %v687_v41 }
 0x116   : > { %635 = vadd.xlane.f32.xlu1 %v634_v28  ;;  %v689_v42 = vld [vmem:[%s1155_s15 + $0x28] sm:$0xff] (%p1217_p5)  ;;  %692 = vst [vmem:[%s666_s7 + $0x30] sm:$0xff] (%p1217_p5), %v691_v43 }
 0x117   : > { %v642_v32 = vadd.f32 %v641_v31, %v628_v30  ;;  %690 = vst [vmem:[%s666_s7 + $0x28] sm:$0xff] (%p1217_p5), %v689_v42 }
 0x118   : > { %610 = vadd.xlane.f32.xlu0 %v609_v29  ;;  %v701_v48 = vld [vmem:[%s1155_s15 + $0x58] sm:$0xff] (%p1217_p5)  ;;  %v705_v50 = vld [vmem:[%s1155_s15 + $0x68] sm:$0xff] (%p1217_p5) }
 0x119   : > { %702 = vst [vmem:[%s666_s7 + $0x100] sm:$0xff] (%p1217_p5), %v701_v48  ;;  %706 = vst [vmem:[%s666_s7 + $0x110] sm:$0xff] (%p1217_p5), %v705_v50 }
 0x11a   : > { %643 = vadd.xlane.f32.xlu1 %v642_v32  ;;  %v703_v49 = vld [vmem:[%s1155_s15 + $0x60] sm:$0xff] (%p1217_p5) }
 0x11b   : > { %704 = vst [vmem:[%s666_s7 + $0x108] sm:$0xff] (%p1217_p5), %v703_v49 }
 0x19d   : > { %v603_v33 = vpop.xlane.xlu0 %602 }
 0x19e   : > { %613 = vst.msk [vmem:[%s288_s27] sm:$0xff] %vm612_vm4, %v603_v33 }
 0x19f   : > { %v636_v34 = vpop.xlane.xlu1 %635 }
 0x1a0   : > { %645 = vst.msk [vmem:[%s293_s30] sm:$0xff] %vm612_vm4, %v636_v34  ;;  %663 = sbr.rel (!%p1217_p5) target bundleno = 421 (0x1a5), region = 62 }
 0x1a1   : > { %v611_v35 = vpop.xlane.xlu0 %610 }
 0x1a2   : > { %614 = vst.msk [vmem:[%s288_s27 + $0x8] sm:$0xff] %vm612_vm4, %v611_v35 }
 0x1a3   : > { %v644_v36 = vpop.xlane.xlu1 %643 }
 0x1a4   : > { %646 = vst.msk [vmem:[%s293_s30 + $0x8] sm:$0xff] %vm612_vm4, %v644_v36 }
 0x1a5 PF: > { %p13_p8 = scmp.ge.s32.totalorder %s1064_s19, 6   ;;  %s1218_s15 = smov %s1007_s16 }
 0x1a6   : > { %s1219_s16 = smov %s1074_s22  ;;  %s1220_s17 = smov %s1064_s19 }
 0x1a7   :  { %15 = sbr.rel (!%p13_p8) target bundleno = 2 (0x2), region = 147 }
 0x1ac   :  { %744 = vsyncpa [#allocation3], 1 }
 0x1ad   :  { %746 = vsyncpa [#allocation3 + $0x1], 1 }

// kernel: dqn_forward.9
= control target key start
LH: loop header
LB: loop body
LE: loop exit
PB: predicated region body
PF: predicated region fallthrough
CT: control target
= control target key end

     0   :  { %vm961_vm0 = vcmask 130048   ;;  %vm1338_vm1 = vcmask 7168   ;;  %s2485_s1 = inlined_call_operand.vmem [shape: bf16[400,768], index: 1, kind: input, shape index: {}]   ;;  %s2486_s0 = inlined_call_operand.vmem [shape: bf16[32,400], index: 0, kind: input, shape index: {}]   ;;  %s2487_s2 = inlined_call_operand.vmem [shape: f32[32,768], index: 2, kind: output, shape index: {0}]   ;;  %s2488_s3 = inlined_call_operand.vmem [shape: f32[1,32,1], index: 3, kind: output, shape index: {1}]   ;;  %s2489_s4 = inlined_call_operand.vmem [shape: f32[1,32,1], index: 4, kind: output, shape index: {2}]  }
   0x1   :  { %v1575_v0 = vld [vmem:[%s2485_s1 + $0x154] ss:$24 sps:$4 sm:$0xff]   ;;  %v1579_v2 = vld [vmem:[%s2485_s1 + $0x150] ss:$24 sps:$4 sm:$0xff]   ;;  %v1581_v4 = vld [vmem:[%s2485_s1 + $0x124] ss:$24 sps:$4 sm:$0xff]  }
   0x2   :  { %v1577_v1 = vld [vmem:[%s2485_s1 + $0x454] ss:$24 sps:$4 sm:$0xff]   ;;  %968 = vmatprep.subr.bf16.mxu0 %v1575_v0  ;;  %v1580_v3 = vld [vmem:[%s2485_s1 + $0x450] ss:$24 sps:$4 sm:$0xff]   ;;  %v1583_v5 = vld [vmem:[%s2485_s1 + $0x424] ss:$24 sps:$4 sm:$0xff]  }
   0x3   :  { %1021 = vmatprep.subr.bf16.mxu1 %v1577_v1  ;;  %969 = vmatpush1.bf16.msra.mxu0 %v1579_v2  ;;  %v1585_v6 = vld [vmem:[%s2485_s1 + $0x120] ss:$24 sps:$4 sm:$0xff]   ;;  %v1587_v8 = vld [vmem:[%s2485_s1 + $0xf4] ss:$24 sps:$4 sm:$0xff]   ;;  %v1591_v10 = vld [vmem:[%s2485_s1 + $0xf0] ss:$24 sps:$4 sm:$0xff]  }
   0x4   :  { %1022 = vmatpush1.bf16.msra.mxu1 %v1580_v3  ;;  %970 = vmatprep.subr.bf16.mxu0 %v1581_v4  ;;  %v1586_v7 = vld [vmem:[%s2485_s1 + $0x420] ss:$24 sps:$4 sm:$0xff]   ;;  %v1589_v9 = vld [vmem:[%s2485_s1 + $0x3f4] ss:$24 sps:$4 sm:$0xff]   ;;  %v1592_v11 = vld [vmem:[%s2485_s1 + $0x3f0] ss:$24 sps:$4 sm:$0xff]  }
   0x5   :  { %1023 = vmatprep.subr.bf16.mxu1 %v1583_v5  ;;  %v1593_v12 = vld [vmem:[%s2485_s1 + $0xc4] ss:$24 sps:$4 sm:$0xff]   ;;  %v1597_v14 = vld [vmem:[%s2485_s1 + $0xc0] ss:$24 sps:$4 sm:$0xff]   ;;  %v1599_v16 = vld [vmem:[%s2485_s1 + $0x94] ss:$24 sps:$4 sm:$0xff]  }
   0x6   :  { %v1595_v13 = vld [vmem:[%s2485_s1 + $0x3c4] ss:$24 sps:$4 sm:$0xff]   ;;  %v1598_v15 = vld [vmem:[%s2485_s1 + $0x3c0] ss:$24 sps:$4 sm:$0xff]   ;;  %v1601_v17 = vld [vmem:[%s2485_s1 + $0x394] ss:$24 sps:$4 sm:$0xff]  }
   0x7   :  { %971 = vmatpush1.bf16.msra.mxu0 %v1585_v6  ;;  %v1603_v18 = vld [vmem:[%s2485_s1 + $0x90] ss:$24 sps:$4 sm:$0xff]   ;;  %v1605_v20 = vld [vmem:[%s2485_s1 + $0x64] ss:$24 sps:$4 sm:$0xff]   ;;  %v1609_v22 = vld [vmem:[%s2485_s1 + $0x60] ss:$24 sps:$4 sm:$0xff]  }
   0x8   :  { %1024 = vmatpush1.bf16.msra.mxu1 %v1586_v7  ;;  %972 = vmatprep.subr.bf16.mxu0 %v1587_v8  ;;  %v1604_v19 = vld [vmem:[%s2485_s1 + $0x390] ss:$24 sps:$4 sm:$0xff]   ;;  %v1607_v21 = vld [vmem:[%s2485_s1 + $0x364] ss:$24 sps:$4 sm:$0xff]   ;;  %v1610_v23 = vld [vmem:[%s2485_s1 + $0x360] ss:$24 sps:$4 sm:$0xff]  }
   0x9   :  { %1025 = vmatprep.subr.bf16.mxu1 %v1589_v9  ;;  %v1611_v24 = vld [vmem:[%s2485_s1 + $0x34] ss:$24 sps:$4 sm:$0xff]   ;;  %v1615_v26 = vld [vmem:[%s2485_s1 + $0x30] ss:$24 sps:$4 sm:$0xff]   ;;  %v1617_v28 = vld [vmem:[%s2485_s1 + $0x4] ss:$24 sps:$4 sm:$0xff]  }
   0xa   :  { %v1613_v25 = vld [vmem:[%s2485_s1 + $0x334] ss:$24 sps:$4 sm:$0xff]   ;;  %v1616_v27 = vld [vmem:[%s2485_s1 + $0x330] ss:$24 sps:$4 sm:$0xff]   ;;  %v1619_v29 = vld [vmem:[%s2485_s1 + $0x304] ss:$24 sps:$4 sm:$0xff]  }
   0xb   :  { %973 = vmatpush1.bf16.msra.mxu0 %v1591_v10  ;;  %v1930_v30 = vld [vmem:[%s2486_s0 + $0xc] ss:$16 sps:$4 sm:$0xff]   ;;  %v1621_v31 = vld [vmem:[%s2485_s1] ss:$24 sps:$4 sm:$0xff]   ;;  %v1627_v35 = vld [vmem:[%s2485_s1 + $0x2d0] ss:$24 sps:$4 sm:$0xff]  }
   0xc   :  { %1026 = vmatpush1.bf16.msra.mxu1 %v1592_v11  ;;  %974 = vmatprep.subr.bf16.mxu0 %v1593_v12  ;;  %v1622_v32 = vld [vmem:[%s2485_s1 + $0x300] ss:$24 sps:$4 sm:$0xff]   ;;  %v1623_v33 = vld [vmem:[%s2485_s1 + $0x2d4] ss:$24 sps:$4 sm:$0xff]   ;;  %v1625_v34 = vld [vmem:[%s2485_s1 + $0x484] ss:$24 sps:$4 sm:$0xff]  }
   0xd   :  { %1027 = vmatprep.subr.bf16.mxu1 %v1595_v13  ;;  %1569 = vmatprep.mubr.msk.bf16.mxu1 %vm961_vm0, %v1930_v30  ;;  %v1628_v36 = vld [vmem:[%s2485_s1 + $0x480] ss:$24 sps:$4 sm:$0xff]   ;;  %v1629_v37 = vld [vmem:[%s2485_s1 + $0x2a4] ss:$24 sps:$4 sm:$0xff]   ;;  %v1638_v42 = vld [vmem:[%s2485_s1 + $0x274] ss:$24 sps:$4 sm:$0xff]  }
   0xe   :  { %v1635_v38 = vld [vmem:[%s2485_s1 + $0x15c] ss:$24 sps:$4 sm:$0xff]   ;;  %v1633_v39 = vld [vmem:[%s2485_s1 + $0x158] ss:$24 sps:$4 sm:$0xff]   ;;  %v1642_v43 = vld [vmem:[%s2485_s1 + $0x12c] ss:$24 sps:$4 sm:$0xff]  }
   0xf   :  { %975 = vmatpush1.bf16.msra.mxu0 %v1597_v14  ;;  %v1636_v40 = vld [vmem:[%s2485_s1 + $0x2a0] ss:$24 sps:$4 sm:$0xff]   ;;  %v1643_v45 = vld [vmem:[%s2485_s1 + $0x270] ss:$24 sps:$4 sm:$0xff]   ;;  %v1644_v46 = vld [vmem:[%s2485_s1 + $0x244] ss:$24 sps:$4 sm:$0xff]  }
  0x10   :  { %1028 = vmatpush1.bf16.msra.mxu1 %v1598_v15  ;;  %976 = vmatprep.subr.bf16.mxu0 %v1599_v16  ;;  %v1967_v41 = vld [vmem:[%s2486_s0 + $0x8] ss:$16 sps:$4 sm:$0xff]   ;;  %v1648_v47 = vld [vmem:[%s2485_s1 + $0xfc] ss:$24 sps:$4 sm:$0xff]   ;;  %v1654_v52 = vld [vmem:[%s2485_s1 + $0xcc] ss:$24 sps:$4 sm:$0xff]  }
  0x11   :  { %1029 = vmatprep.subr.bf16.mxu1 %v1601_v17  ;;  %v1640_v44 = vld [vmem:[%s2485_s1 + $0x128] ss:$24 sps:$4 sm:$0xff]   ;;  %v1646_v48 = vld [vmem:[%s2485_s1 + $0xf8] ss:$24 sps:$4 sm:$0xff]   ;;  %v1650_v50 = vld [vmem:[%s2485_s1 + $0x214] ss:$24 sps:$4 sm:$0xff]  }
  0x12   :  { %v1649_v49 = vld [vmem:[%s2485_s1 + $0x240] ss:$24 sps:$4 sm:$0xff]   ;;  %v2000_v51 = vld [vmem:[%s2486_s0 + $0x4] ss:$16 sps:$4 sm:$0xff]   ;;  %v1655_v54 = vld [vmem:[%s2485_s1 + $0x210] ss:$24 sps:$4 sm:$0xff]  }
  0x13   :  { %977 = vmatpush1.bf16.msra.mxu0 %v1603_v18  ;;  %1000 = vmatprep.mubr.bf16.mxu0 %v2000_v51  ;;  %v1652_v53 = vld [vmem:[%s2485_s1 + $0xc8] ss:$24 sps:$4 sm:$0xff]   ;;  %v1656_v55 = vld [vmem:[%s2485_s1 + $0x1e4] ss:$24 sps:$4 sm:$0xff]   ;;  %v1658_v57 = vld [vmem:[%s2485_s1 + $0x98] ss:$24 sps:$4 sm:$0xff]  }
  0x14   :  { %1030 = vmatpush1.bf16.msra.mxu1 %v1604_v19  ;;  %978 = vmatprep.subr.bf16.mxu0 %v1605_v20  ;;  %v1660_v56 = vld [vmem:[%s2485_s1 + $0x9c] ss:$24 sps:$4 sm:$0xff]   ;;  %v1661_v58 = vld [vmem:[%s2485_s1 + $0x1e0] ss:$24 sps:$4 sm:$0xff]   ;;  %v1666_v60 = vld [vmem:[%s2485_s1 + $0x6c] ss:$24 sps:$4 sm:$0xff]  }
  0x15   :  { %1031 = vmatprep.subr.bf16.mxu1 %v1607_v21  ;;  %v1662_v59 = vld [vmem:[%s2485_s1 + $0x1b4] ss:$24 sps:$4 sm:$0xff]   ;;  %v1664_v61 = vld [vmem:[%s2485_s1 + $0x68] ss:$24 sps:$4 sm:$0xff]   ;;  %v1668_v63 = vld [vmem:[%s2485_s1 + $0x184] ss:$24 sps:$4 sm:$0xff]  }
  0x16   :  { %v1667_v62 = vld [vmem:[%s2485_s1 + $0x1b0] ss:$24 sps:$4 sm:$0xff]   ;;  %v1672_v0 = vld [vmem:[%s2485_s1 + $0x3c] ss:$24 sps:$4 sm:$0xff]   ;;  %v1673_v2 = vld [vmem:[%s2485_s1 + $0x180] ss:$24 sps:$4 sm:$0xff]  }
  0x17   :  { %979 = vmatpush1.bf16.msra.mxu0 %v1609_v22  ;;  %v1670_v1 = vld [vmem:[%s2485_s1 + $0x38] ss:$24 sps:$4 sm:$0xff]   ;;  %v1679_v3 = vld [vmem:[%s2485_s1 + $0xc] ss:$24 sps:$4 sm:$0xff]   ;;  %v1682_v5 = vld [vmem:[%s2485_s1 + $0x45c] ss:$24 sps:$4 sm:$0xff]  }
  0x18   :  { %1032 = vmatpush1.bf16.msra.mxu1 %v1610_v23  ;;  %980 = vmatprep.subr.bf16.mxu0 %v1611_v24  ;;  %v2054_v4 = vld [vmem:[%s2486_s0] ss:$16 sps:$4 sm:$0xff]   ;;  %v2068_v8 = vld [vmem:[%s2486_s0 + $0x2c] ss:$16 sps:$4 sm:$0xff]   ;;  %v2073_v9 = vld [vmem:[%s2486_s0 + $0x28] ss:$16 sps:$4 sm:$0xff]  }
  0x19   :  { %1033 = vmatprep.subr.bf16.mxu1 %v1613_v25  ;;  %v1677_v6 = vld [vmem:[%s2485_s1 + $0x8] ss:$24 sps:$4 sm:$0xff]   ;;  %v1680_v7 = vld [vmem:[%s2485_s1 + $0x458] ss:$24 sps:$4 sm:$0xff]   ;;  %v1685_v10 = vld [vmem:[%s2485_s1 + $0x2dc] ss:$24 sps:$4 sm:$0xff]  }
  0x1a   :  { %v1688_v11 = vld [vmem:[%s2485_s1 + $0x42c] ss:$24 sps:$4 sm:$0xff]   ;;  %v1683_v13 = vld [vmem:[%s2485_s1 + $0x2d8] ss:$24 sps:$4 sm:$0xff]   ;;  %v1686_v14 = vld [vmem:[%s2485_s1 + $0x428] ss:$24 sps:$4 sm:$0xff]  }
  0x1b   :  { %981 = vmatpush1.bf16.msra.mxu0 %v1615_v26  ;;  %v2084_v12 = vld [vmem:[%s2486_s0 + $0x24] ss:$16 sps:$4 sm:$0xff]   ;;  %v1689_v17 = vld [vmem:[%s2485_s1 + $0x2a8] ss:$24 sps:$4 sm:$0xff]   ;;  %v1692_v18 = vld [vmem:[%s2485_s1 + $0x3f8] ss:$24 sps:$4 sm:$0xff]  }
  0x1c   :  { %1034 = vmatpush1.bf16.msra.mxu1 %v1616_v27  ;;  %982 = vmatprep.subr.bf16.mxu0 %v1617_v28  ;;  %v1691_v15 = vld [vmem:[%s2485_s1 + $0x2ac] ss:$24 sps:$4 sm:$0xff]   ;;  %v1694_v16 = vld [vmem:[%s2485_s1 + $0x3fc] ss:$24 sps:$4 sm:$0xff]   ;;  %v2113_v19 = vld [vmem:[%s2486_s0 + $0x20] ss:$16 sps:$4 sm:$0xff]  }
  0x1d   :  { %1035 = vmatprep.subr.bf16.mxu1 %v1619_v29  ;;  %v1697_v20 = vld [vmem:[%s2485_s1 + $0x27c] ss:$24 sps:$4 sm:$0xff]   ;;  %v1700_v21 = vld [vmem:[%s2485_s1 + $0x3cc] ss:$24 sps:$4 sm:$0xff]   ;;  %v1695_v22 = vld [vmem:[%s2485_s1 + $0x278] ss:$24 sps:$4 sm:$0xff]  }
  0x1e   :  { %v1698_v23 = vld [vmem:[%s2485_s1 + $0x3c8] ss:$24 sps:$4 sm:$0xff]   ;;  %v1703_v24 = vld [vmem:[%s2485_s1 + $0x24c] ss:$24 sps:$4 sm:$0xff]   ;;  %v1706_v25 = vld [vmem:[%s2485_s1 + $0x39c] ss:$24 sps:$4 sm:$0xff]  }
  0x1f   :  { %983 = vmatpush1.bf16.msra.mxu0 %v1621_v31  ;;  %v1701_v26 = vld [vmem:[%s2485_s1 + $0x248] ss:$24 sps:$4 sm:$0xff]   ;;  %v1704_v27 = vld [vmem:[%s2485_s1 + $0x398] ss:$24 sps:$4 sm:$0xff]   ;;  %v1709_v28 = vld [vmem:[%s2485_s1 + $0x21c] ss:$24 sps:$4 sm:$0xff]  }
  0x20   :  { %1036 = vmatpush1.bf16.msra.mxu1 %v1622_v32  ;;  %984 = vmatprep.subr.bf16.mxu0 %v1623_v33  ;;  %v1712_v29 = vld [vmem:[%s2485_s1 + $0x36c] ss:$24 sps:$4 sm:$0xff]   ;;  %v1707_v31 = vld [vmem:[%s2485_s1 + $0x218] ss:$24 sps:$4 sm:$0xff]   ;;  %v1710_v32 = vld [vmem:[%s2485_s1 + $0x368] ss:$24 sps:$4 sm:$0xff]  }
  0x21   :  { %1051 = vmatprep.subr.bf16.mxu1 %v1625_v34  ;;  %v1721_v33 = vld [vmem:[%s2485_s1 + $0x1ec] ss:$24 sps:$4 sm:$0xff]   ;;  %v1724_v34 = vld [vmem:[%s2485_s1 + $0x33c] ss:$24 sps:$4 sm:$0xff]  }
  0x23   :  { %985 = vmatpush2.bf16.msra.mxu0 %v1627_v35  ;;  %v1719_v35 = vld [vmem:[%s2485_s1 + $0x1e8] ss:$24 sps:$4 sm:$0xff]  }
  0x24   :  { %1052 = vmatpush2.bf16.msra.mxu1 %v1628_v36  ;;  %986 = vmatprep.subr.bf16.mxu0 %v1629_v37  ;;  %v1722_v36 = vld [vmem:[%s2485_s1 + $0x338] ss:$24 sps:$4 sm:$0xff]   ;;  %v1727_v37 = vld [vmem:[%s2485_s1 + $0x1bc] ss:$24 sps:$4 sm:$0xff]  }
  0x25   :  { %1074 = vmatprep.subr.bf16.mxu1 %v1635_v38  ;;  %v1730_v38 = vld [vmem:[%s2485_s1 + $0x30c] ss:$24 sps:$4 sm:$0xff]  }
  0x27   :  { %1054 = vmatmul.mubr.bf16.vlgmr.msra.gmra.mxu1 %v1967_v41  ;;  %987 = vmatpush2.bf16.msra.mxu0 %v1636_v40  ;;  %v1728_v40 = vld [vmem:[%s2485_s1 + $0x308] ss:$24 sps:$4 sm:$0xff]  }
  0x28   :  { %1075 = vmatpush1.bf16.msra.mxu1 %v1633_v39  ;;  %988 = vmatprep.subr.bf16.mxu0 %v1638_v42  ;;  %v1725_v39 = vld [vmem:[%s2485_s1 + $0x1b8] ss:$24 sps:$4 sm:$0xff]   ;;  %v1733_v42 = vld [vmem:[%s2485_s1 + $0x18c] ss:$24 sps:$4 sm:$0xff]  }
  0x29   :  { %1076 = vmatprep.subr.bf16.mxu1 %v1642_v43  ;;  %1570 = vmatprep.mubr.msk.bf16.mxu1 %vm961_vm0, %v2068_v8  ;;  %v1736_v43 = vld [vmem:[%s2485_s1 + $0x48c] ss:$24 sps:$4 sm:$0xff]  }
  0x2b   :  { %989 = vmatpush2.bf16.msra.mxu0 %v1643_v45  ;;  %v1734_v45 = vld [vmem:[%s2485_s1 + $0x488] ss:$24 sps:$4 sm:$0xff]  }
  0x2c   :  { %1077 = vmatpush1.bf16.msra.mxu1 %v1640_v44  ;;  %990 = vmatprep.subr.bf16.mxu0 %v1644_v46  ;;  %v1731_v44 = vld [vmem:[%s2485_s1 + $0x188] ss:$24 sps:$4 sm:$0xff]   ;;  %v1739_v46 = vld [vmem:[%s2485_s1 + $0x164] ss:$24 sps:$4 sm:$0xff]  }
  0x2d   :  { %1078 = vmatprep.subr.bf16.mxu1 %v1648_v47  ;;  %v1757_v47 = vld [vmem:[%s2485_s1 + $0x464] ss:$24 sps:$4 sm:$0xff]  }
  0x2f   :  { %991 = vmatpush2.bf16.msra.mxu0 %v1649_v49  ;;  %1064 = vmatmul.mubr.bf16.gmra.mxu1 %v2073_v9  ;;  %v1742_v49 = vld [vmem:[%s2485_s1 + $0x134] ss:$24 sps:$4 sm:$0xff]  }
  0x30   :  { %1079 = vmatpush1.bf16.msra.mxu1 %v1646_v48  ;;  %992 = vmatprep.subr.bf16.mxu0 %v1650_v50  ;;  %v1737_v48 = vld [vmem:[%s2485_s1 + $0x160] ss:$24 sps:$4 sm:$0xff]  }
  0x31   :  { %1080 = vmatprep.subr.bf16.mxu1 %v1654_v52  ;;  %1106 = vmatprep.mubr.bf16.mxu1 %v2000_v51  ;;  %v1755_v50 = vld [vmem:[%s2485_s1 + $0x460] ss:$24 sps:$4 sm:$0xff]   ;;  %v1763_v52 = vld [vmem:[%s2485_s1 + $0x434] ss:$24 sps:$4 sm:$0xff]  }
  0x33   :  { %993 = vmatpush2.bf16.msra.mxu0 %v1655_v54  ;;  %v1745_v54 = vld [vmem:[%s2485_s1 + $0x104] ss:$24 sps:$4 sm:$0xff]  }
  0x34   :  { %1081 = vmatpush1.bf16.msra.mxu1 %v1652_v53  ;;  %994 = vmatprep.subr.bf16.mxu0 %v1656_v55  ;;  %v1740_v53 = vld [vmem:[%s2485_s1 + $0x130] ss:$24 sps:$4 sm:$0xff]  }
  0x35   :  { %1082 = vmatprep.subr.bf16.mxu1 %v1660_v56  ;;  %v1761_v55 = vld [vmem:[%s2485_s1 + $0x430] ss:$24 sps:$4 sm:$0xff]   ;;  %v1743_v56 = vld [vmem:[%s2485_s1 + $0x100] ss:$24 sps:$4 sm:$0xff]  }
  0x37   :  { %995 = vmatpush2.bf16.msra.mxu0 %v1661_v58  ;;  %v1748_v58 = vld [vmem:[%s2485_s1 + $0xd4] ss:$24 sps:$4 sm:$0xff]  }
  0x38   :  { %1083 = vmatpush1.bf16.msra.mxu1 %v1658_v57  ;;  %996 = vmatprep.subr.bf16.mxu0 %v1662_v59  ;;  %v1769_v57 = vld [vmem:[%s2485_s1 + $0x404] ss:$24 sps:$4 sm:$0xff]   ;;  %v1767_v59 = vld [vmem:[%s2485_s1 + $0x400] ss:$24 sps:$4 sm:$0xff]  }
  0x39   :  { %1084 = vmatprep.subr.bf16.mxu1 %v1666_v60  ;;  %v1775_v60 = vld [vmem:[%s2485_s1 + $0x3d4] ss:$24 sps:$4 sm:$0xff]  }
  0x3b   :  { %997 = vmatpush2.bf16.msra.mxu0 %v1667_v62  ;;  %v1751_v62 = vld [vmem:[%s2485_s1 + $0xa4] ss:$24 sps:$4 sm:$0xff]  }
  0x3c   :  { %1085 = vmatpush1.bf16.msra.mxu1 %v1664_v61  ;;  %998 = vmatprep.subr.bf16.mxu0 %v1668_v63  ;;  %v1746_v61 = vld [vmem:[%s2485_s1 + $0xd0] ss:$24 sps:$4 sm:$0xff]  }
  0x3d   :  { %1086 = vmatprep.subr.bf16.mxu1 %v1672_v0  ;;  %v1773_v63 = vld [vmem:[%s2485_s1 + $0x3d0] ss:$24 sps:$4 sm:$0xff]   ;;  %v1781_v0 = vld [vmem:[%s2485_s1 + $0x3a4] ss:$24 sps:$4 sm:$0xff]  }
  0x3f   :  { %999 = vmatpush2.bf16.msra.mxu0 %v1673_v2  ;;  %v1787_v2 = vld [vmem:[%s2485_s1 + $0x374] ss:$24 sps:$4 sm:$0xff]  }
  0x40   :  { %1087 = vmatpush1.bf16.msra.mxu1 %v1670_v1  ;;  %1127 = vmatprep.subr.bf16.mxu0 %v1682_v5  ;;  %v1749_v1 = vld [vmem:[%s2485_s1 + $0xa0] ss:$24 sps:$4 sm:$0xff]   ;;  %v1760_v5 = vld [vmem:[%s2485_s1 + $0x44] ss:$24 sps:$4 sm:$0xff]  }
  0x41   :  { %1088 = vmatprep.subr.bf16.mxu1 %v1679_v3  ;;  %v1752_v3 = vld [vmem:[%s2485_s1 + $0x70] ss:$24 sps:$4 sm:$0xff]  }
  0x42   :  { %1001 = vmatmul.mubr.bf16.vlgmr.msra.gmra.mxu0 %v2054_v4 }
  0x43   :  { %1128 = vmatpush1.bf16.msra.mxu0 %v1680_v7  ;;  %1010 = vmatprep.mubr.bf16.mxu0 %v2084_v12  ;;  %v1793_v7 = vld [vmem:[%s2485_s1 + $0x344] ss:$24 sps:$4 sm:$0xff]  }
  0x44   :  { %1089 = vmatpush1.bf16.msra.mxu1 %v1677_v6  ;;  %1129 = vmatprep.subr.bf16.mxu0 %v1688_v11  ;;  %v1785_v6 = vld [vmem:[%s2485_s1 + $0x370] ss:$24 sps:$4 sm:$0xff]   ;;  %v1766_v11 = vld [vmem:[%s2485_s1 + $0x14] ss:$24 sps:$4 sm:$0xff]  }
  0x45   :  { %1090 = vmatprep.subr.bf16.mxu1 %v1685_v10  ;;  %v1758_v10 = vld [vmem:[%s2485_s1 + $0x40] ss:$24 sps:$4 sm:$0xff]  }
  0x47   :  { %1130 = vmatpush1.bf16.msra.mxu0 %v1686_v14  ;;  %v1799_v14 = vld [vmem:[%s2485_s1 + $0x314] ss:$24 sps:$4 sm:$0xff]  }
  0x48   :  { %1091 = vmatpush2.bf16.msra.mxu1 %v1683_v13  ;;  %1131 = vmatprep.subr.bf16.mxu0 %v1694_v16  ;;  %v1791_v13 = vld [vmem:[%s2485_s1 + $0x340] ss:$24 sps:$4 sm:$0xff]   ;;  %v1772_v16 = vld [vmem:[%s2485_s1 + $0x2e4] ss:$24 sps:$4 sm:$0xff]  }
  0x49   :  { %1092 = vmatprep.subr.bf16.mxu1 %v1691_v15  ;;  %v1764_v15 = vld [vmem:[%s2485_s1 + $0x10] ss:$24 sps:$4 sm:$0xff]  }
  0x4a   :  { %1011 = vmatmul.mubr.bf16.gmra.mxu0 %v2113_v19 }
  0x4b   :  { %1132 = vmatpush1.bf16.msra.mxu0 %v1692_v18  ;;  %1571 = vmatprep.mubr.msk.bf16.mxu0 %vm961_vm0, %v1930_v30  ;;  %v1805_v18 = vld [vmem:[%s2485_s1 + $0x494] ss:$24 sps:$4 sm:$0xff]  }
  0x4c   :  { %1093 = vmatpush2.bf16.msra.mxu1 %v1689_v17  ;;  %1133 = vmatprep.subr.bf16.mxu0 %v1700_v21  ;;  %v1797_v17 = vld [vmem:[%s2485_s1 + $0x310] ss:$24 sps:$4 sm:$0xff]   ;;  %v1778_v21 = vld [vmem:[%s2485_s1 + $0x2b4] ss:$24 sps:$4 sm:$0xff]  }
  0x4d   :  { %1094 = vmatprep.subr.bf16.mxu1 %v1697_v20  ;;  %v1770_v20 = vld [vmem:[%s2485_s1 + $0x2e0] ss:$24 sps:$4 sm:$0xff]  }
  0x4f   :  { %1134 = vmatpush1.bf16.msra.mxu0 %v1698_v23  ;;  %v1776_v23 = vld [vmem:[%s2485_s1 + $0x2b0] ss:$24 sps:$4 sm:$0xff]  }
  0x50   :  { %1095 = vmatpush2.bf16.msra.mxu1 %v1695_v22  ;;  %1135 = vmatprep.subr.bf16.mxu0 %v1706_v25  ;;  %v1803_v22 = vld [vmem:[%s2485_s1 + $0x490] ss:$24 sps:$4 sm:$0xff]   ;;  %v1782_v25 = vld [vmem:[%s2485_s1 + $0x280] ss:$24 sps:$4 sm:$0xff]  }
  0x51   :  { %1096 = vmatprep.subr.bf16.mxu1 %v1703_v24  ;;  %v1784_v24 = vld [vmem:[%s2485_s1 + $0x284] ss:$24 sps:$4 sm:$0xff]  }
  0x53   :  { %1136 = vmatpush1.bf16.msra.mxu0 %v1704_v27  ;;  %v1788_v27 = vld [vmem:[%s2485_s1 + $0x250] ss:$24 sps:$4 sm:$0xff]  }
  0x54   :  { %1097 = vmatpush2.bf16.msra.mxu1 %v1701_v26  ;;  %1137 = vmatprep.subr.bf16.mxu0 %v1712_v29  ;;  %v1790_v26 = vld [vmem:[%s2485_s1 + $0x254] ss:$24 sps:$4 sm:$0xff]   ;;  %v1794_v29 = vld [vmem:[%s2485_s1 + $0x220] ss:$24 sps:$4 sm:$0xff]  }
  0x55   :  { %1098 = vmatprep.subr.bf16.mxu1 %v1709_v28  ;;  %v1796_v28 = vld [vmem:[%s2485_s1 + $0x224] ss:$24 sps:$4 sm:$0xff]  }
  0x57   :  { %1138 = vmatpush1.bf16.msra.mxu0 %v1710_v32  ;;  %v1806_v32 = vld [vmem:[%s2485_s1 + $0x1c0] ss:$24 sps:$4 sm:$0xff]  }
  0x58   :  { %1099 = vmatpush2.bf16.msra.mxu1 %v1707_v31  ;;  %1139 = vmatprep.subr.bf16.mxu0 %v1724_v34  ;;  %v1808_v31 = vld [vmem:[%s2485_s1 + $0x1c4] ss:$24 sps:$4 sm:$0xff]  }
  0x59   :  { %1100 = vmatprep.subr.bf16.mxu1 %v1721_v33  ;;  %v1809_v33 = vld [vmem:[%s2485_s1 + $0x190] ss:$24 sps:$4 sm:$0xff]  }
  0x5b   :  { %1140 = vmatpush1.bf16.msra.mxu0 %v1722_v36 }
  0x5c   :  { %1101 = vmatpush2.bf16.msra.mxu1 %v1719_v35  ;;  %1141 = vmatprep.subr.bf16.mxu0 %v1730_v38 }
  0x5d   :  { %1102 = vmatprep.subr.bf16.mxu1 %v1727_v37 }
  0x5f   :  { %1142 = vmatpush1.bf16.msra.mxu0 %v1728_v40 }
  0x60   :  { %1103 = vmatpush2.bf16.msra.mxu1 %v1725_v39  ;;  %1157 = vmatprep.subr.bf16.mxu0 %v1736_v43 }
  0x61   :  { %1104 = vmatprep.subr.bf16.mxu1 %v1733_v42 }
  0x63   :  { %1158 = vmatpush2.bf16.msra.mxu0 %v1734_v45 }
  0x64   :  { %1105 = vmatpush2.bf16.msra.mxu1 %v1731_v44  ;;  %1180 = vmatprep.subr.bf16.mxu0 %v1739_v46 }
  0x65   :  { %1233 = vmatprep.subr.bf16.mxu1 %v1757_v47 }
  0x66   :  { %1160 = vmatmul.mubr.bf16.vlgmr.msra.gmra.mxu0 %v1967_v41 }
  0x67   :  { %1107 = vmatmul.mubr.bf16.vlgmr.msra.gmra.mxu1 %v2054_v4  ;;  %1181 = vmatpush1.bf16.msra.mxu0 %v1737_v48 }
  0x68   :  { %1116 = vmatprep.mubr.bf16.mxu1 %v2084_v12  ;;  %1182 = vmatprep.subr.bf16.mxu0 %v1742_v49 }
  0x69   :  { %1572 = vmatprep.mubr.msk.bf16.mxu0 %vm961_vm0, %v2068_v8  ;;  %1234 = vmatpush1.bf16.msra.mxu1 %v1755_v50 }
  0x6a   :  { %1235 = vmatprep.subr.bf16.mxu1 %v1763_v52 }
  0x6b   :  { %1183 = vmatpush1.bf16.msra.mxu0 %v1740_v53 }
  0x6c   :  { %1184 = vmatprep.subr.bf16.mxu0 %v1745_v54 }
  0x6d   :  { %1236 = vmatpush1.bf16.msra.mxu1 %v1761_v55 }
  0x6e   :  { %1170 = vmatmul.mubr.bf16.gmra.mxu0 %v2073_v9  ;;  %1237 = vmatprep.subr.bf16.mxu1 %v1769_v57 }
  0x6f   :  { %1117 = vmatmul.mubr.bf16.gmra.mxu1 %v2113_v19  ;;  %1185 = vmatpush1.bf16.msra.mxu0 %v1743_v56 }
  0x70   :  { %1186 = vmatprep.subr.bf16.mxu0 %v1748_v58  ;;  %1573 = vmatprep.mubr.msk.bf16.mxu1 %vm961_vm0, %v1930_v30  ;;  %v1754_v30 = vld [vmem:[%s2485_s1 + $0x74] ss:$24 sps:$4 sm:$0xff]  }
  0x71   :  { %1238 = vmatpush1.bf16.msra.mxu1 %v1767_v59  ;;  %1212 = vmatprep.mubr.bf16.mxu0 %v2000_v51  ;;  %v1779_v51 = vld [vmem:[%s2485_s1 + $0x3a0] ss:$24 sps:$4 sm:$0xff]  }
  0x72   :  { %1239 = vmatprep.subr.bf16.mxu1 %v1775_v60 }
  0x73   :  { %1187 = vmatpush1.bf16.msra.mxu0 %v1746_v61 }
  0x74   :  { %1188 = vmatprep.subr.bf16.mxu0 %v1751_v62 }
  0x75   :  { %1240 = vmatpush1.bf16.msra.mxu1 %v1773_v63 }
  0x76   :  { %1241 = vmatprep.subr.bf16.mxu1 %v1781_v0 }
  0x77   :  { %1189 = vmatpush1.bf16.msra.mxu0 %v1749_v1 }
  0x78   :  { %1190 = vmatprep.subr.bf16.mxu0 %v1754_v30 }
  0x79   :  { %1242 = vmatpush1.bf16.msra.mxu1 %v1779_v51 }
  0x7a   :  { %1243 = vmatprep.subr.bf16.mxu1 %v1787_v2 }
  0x7b   :  { %1191 = vmatpush1.bf16.msra.mxu0 %v1752_v3 }
  0x7c   :  { %1192 = vmatprep.subr.bf16.mxu0 %v1760_v5 }
  0x7d   :  { %1244 = vmatpush1.bf16.msra.mxu1 %v1785_v6 }
  0x7e   :  { %1245 = vmatprep.subr.bf16.mxu1 %v1793_v7 }
  0x7f   :  { %1193 = vmatpush1.bf16.msra.mxu0 %v1758_v10 }
  0x80   :  { %1194 = vmatprep.subr.bf16.mxu0 %v1766_v11 }
  0x81   :  { %1246 = vmatpush1.bf16.msra.mxu1 %v1791_v13 }
  0x82   :  { %1247 = vmatprep.subr.bf16.mxu1 %v1799_v14 }
  0x83   :  { %1195 = vmatpush1.bf16.msra.mxu0 %v1764_v15 }
  0x84   :  { %1196 = vmatprep.subr.bf16.mxu0 %v1772_v16 }
  0x85   :  { %1248 = vmatpush1.bf16.msra.mxu1 %v1797_v17 }
  0x86   :  { %1263 = vmatprep.subr.bf16.mxu1 %v1805_v18 }
  0x87   :  { %1197 = vmatpush2.bf16.msra.mxu0 %v1770_v20 }
  0x88   :  { %1198 = vmatprep.subr.bf16.mxu0 %v1778_v21 }
  0x89   :  { %1264 = vmatpush2.bf16.msra.mxu1 %v1803_v22 }
  0x8b   :  { %1199 = vmatpush2.bf16.msra.mxu0 %v1776_v23 }
  0x8c   :  { %1200 = vmatprep.subr.bf16.mxu0 %v1784_v24  ;;  %1266 = vmatmul.mubr.bf16.vlgmr.msra.gmra.mxu1 %v1967_v41  ;;  %v1802_v41 = vld [vmem:[%s2485_s1 + $0x1f4] ss:$24 sps:$4 sm:$0xff]  }
  0x8d   :  { %1574 = vmatprep.mubr.msk.bf16.mxu1 %vm961_vm0, %v2068_v8  ;;  %v1800_v8 = vld [vmem:[%s2485_s1 + $0x1f0] ss:$24 sps:$4 sm:$0xff]  }
  0x8f   :  { %1201 = vmatpush2.bf16.msra.mxu0 %v1782_v25 }
  0x90   :  { %1202 = vmatprep.subr.bf16.mxu0 %v1790_v26 }
  0x93   :  { %1203 = vmatpush2.bf16.msra.mxu0 %v1788_v27 }
  0x94   :  { %1204 = vmatprep.subr.bf16.mxu0 %v1796_v28  ;;  %1276 = vmatmul.mubr.bf16.gmra.mxu1 %v2073_v9  ;;  %v1811_v9 = vld [vmem:[%s2485_s1 + $0x194] ss:$24 sps:$4 sm:$0xff]  }
  0x97   :  { %1205 = vmatpush2.bf16.msra.mxu0 %v1794_v29 }
  0x98   :  { %1206 = vmatprep.subr.bf16.mxu0 %v1802_v41 }
  0x9b   :  { %1207 = vmatpush2.bf16.msra.mxu0 %v1800_v8 }
  0x9c   :  { %1208 = vmatprep.subr.bf16.mxu0 %v1808_v31 }
  0x9f   :  { %1209 = vmatpush2.bf16.msra.mxu0 %v1806_v32 }
  0xa0   :  { %1210 = vmatprep.subr.bf16.mxu0 %v1811_v9 }
  0xa3   :  { %1211 = vmatpush2.bf16.msra.mxu0 %v1809_v33 }
  0xa6   :  { %1213 = vmatmul.mubr.bf16.vlgmr.msra.gmra.mxu0 %v2054_v4 }
  0xa7   :  { %1222 = vmatprep.mubr.bf16.mxu0 %v2084_v12 }
  0xae   :  { %1223 = vmatmul.mubr.bf16.gmra.mxu0 %v2113_v19 }
  0xe7   :  { %v1055_v34 = vpop.f32.mrf.mxu1 }
  0xe9   :  { %v1057_v35 = vpop.f32.mrf.mxu1 }
  0xeb   :  { %v1059_v36 = vpop.f32.mrf.mxu1 }
  0xed   :  { %v1061_v37 = vpop.f32.mrf.mxu1 }
  0xef   :  { %v1065_v39 = vpop.f32.mrf.mxu1 }
  0xf1   :  { %v1067_v4 = vpop.f32.mrf.mxu1 }
  0xf3   :  { %v1069_v52 = vpop.f32.mrf.mxu1 }
  0xf5   :  { %v1071_v62 = vpop.f32.mrf.mxu1 }
 0x102   :  { %v1002_v38 = vpop.f32.mrf.mxu0 }
 0x103   :  { %v1056_v40 = vadd.f32 %v1055_v34, %v1002_v38 }
 0x104   :  { %v1004_v42 = vpop.f32.mrf.mxu0 }
 0x105   :  { %1286 = vst [vmem:[%s2487_s2] sm:$0xff] %v1056_v40  ;;  %v1343_v43 = vmul.f32 %v1056_v40, %v1056_v40  ;;  %v1058_v44 = vadd.f32 %v1057_v35, %v1004_v42 }
 0x106   :  { %v1006_v45 = vpop.f32.mrf.mxu0 }
 0x107   :  { %1287 = vst [vmem:[%s2487_s2 + $0x8] sm:$0xff] %v1058_v44  ;;  %v2363_v12 = vadd.f32 %v1058_v44, %v1056_v40  ;;  %v1344_v19 = vmul.f32 %v1058_v44, %v1058_v44  ;;  %v1060_v46 = vadd.f32 %v1059_v36, %v1006_v45 }
 0x108   :  { %v1008_v47 = vpop.f32.mrf.mxu0 }
 0x109   :  { %v2365_v48 = vadd.f32 %v1344_v19, %v1343_v43  ;;  %1292 = vst [vmem:[%s2487_s2 + $0x30] sm:$0xff] %v1060_v46  ;;  %v1062_v49 = vadd.f32 %v1061_v37, %v1008_v47  ;;  %v1349_v53 = vmul.f32 %v1060_v46, %v1060_v46 }
 0x10a   :  { %v1012_v50 = vpop.f32.mrf.mxu0 }
 0x10b   :  { %1293 = vst [vmem:[%s2487_s2 + $0x38] sm:$0xff] %v1062_v49  ;;  %v1317_v54 = vadd.f32 %v1062_v49, %v1060_v46  ;;  %v1350_v55 = vmul.f32 %v1062_v49, %v1062_v49  ;;  %v1066_v56 = vadd.f32 %v1065_v39, %v1012_v50 }
 0x10c   :  { %v1014_v57 = vpop.f32.mrf.mxu0 }
 0x10d   :  { %v2373_v58 = vadd.f32 %v1350_v55, %v1349_v53  ;;  %1298 = vst [vmem:[%s2487_s2 + $0x60] sm:$0xff] %v1066_v56  ;;  %v1355_v59 = vmul.f32 %v1066_v56, %v1066_v56  ;;  %v1068_v60 = vadd.f32 %v1067_v4, %v1014_v57 }
 0x10e   :  { %v1016_v61 = vpop.f32.mrf.mxu0 }
 0x10f   :  { %1299 = vst [vmem:[%s2487_s2 + $0x68] sm:$0xff] %v1068_v60  ;;  %v2381_v63 = vadd.f32 %v1068_v60, %v1066_v56  ;;  %v1356_v0 = vmul.f32 %v1068_v60, %v1068_v60  ;;  %v1070_v1 = vadd.f32 %v1069_v52, %v1016_v61 }
 0x110   :  { %v1018_v30 = vpop.f32.mrf.mxu0 }
 0x111   :  { %v2383_v51 = vadd.f32 %v1356_v0, %v1355_v59  ;;  %1304 = vst [vmem:[%s2487_s2 + $0x90] sm:$0xff] %v1070_v1  ;;  %v1361_v2 = vmul.f32 %v1070_v1, %v1070_v1  ;;  %v1072_v3 = vadd.f32 %v1071_v62, %v1018_v30 }
 0x113   :  { %1305 = vst [vmem:[%s2487_s2 + $0x98] sm:$0xff] %v1072_v3  ;;  %v2391_v5 = vadd.f32 %v1072_v3, %v1070_v1  ;;  %v1362_v6 = vmul.f32 %v1072_v3, %v1072_v3 }
 0x115   :  { %v1388_v7 = vadd.f32 %v1362_v6, %v1361_v2 }
 0x126   :  { %v1161_v11 = vpop.f32.mrf.mxu0 }
 0x127   :  { %v1108_v10 = vpop.f32.mrf.mxu1 }
 0x128   :  { %v1162_v13 = vadd.f32 %v1161_v11, %v1108_v10  ;;  %v1163_v15 = vpop.f32.mrf.mxu0 }
 0x129   :  { %v1110_v14 = vpop.f32.mrf.mxu1 }
 0x12a   :  { %1288 = vst [vmem:[%s2487_s2 + $0x10] sm:$0xff] %v1162_v13  ;;  %v1164_v16 = vadd.f32 %v1163_v15, %v1110_v14  ;;  %v1165_v18 = vpop.f32.mrf.mxu0  ;;  %v1345_v43 = vmul.f32 %v1162_v13, %v1162_v13  ;;  %v1311_v45 = vadd.f32 %v2363_v12, %v1162_v13 }
 0x12b   :  { %v1112_v17 = vpop.f32.mrf.mxu1 }
 0x12c   :  { %1289 = vst [vmem:[%s2487_s2 + $0x18] sm:$0xff] %v1164_v16  ;;  %v1166_v20 = vadd.f32 %v1165_v18, %v1112_v17  ;;  %v1167_v22 = vpop.f32.mrf.mxu0  ;;  %v1368_v4 = vadd.f32 %v2365_v48, %v1345_v43  ;;  %v1346_v19 = vmul.f32 %v1164_v16, %v1164_v16  ;;  %v1312_v52 = vadd.f32 %v1311_v45, %v1164_v16 }
 0x12d   :  { %v1114_v21 = vpop.f32.mrf.mxu1 }
 0x12e   :  { %1294 = vst [vmem:[%s2487_s2 + $0x40] sm:$0xff] %v1166_v20  ;;  %v1318_v23 = vadd.f32 %v1317_v54, %v1166_v20  ;;  %v1168_v24 = vadd.f32 %v1167_v22, %v1114_v21  ;;  %v1171_v26 = vpop.f32.mrf.mxu0  ;;  %v1351_v46 = vmul.f32 %v1166_v20, %v1166_v20  ;;  %v1369_v57 = vadd.f32 %v1368_v4, %v1346_v19 }
 0x12f   :  { %v1118_v25 = vpop.f32.mrf.mxu1 }
 0x130   :  { %1295 = vst [vmem:[%s2487_s2 + $0x48] sm:$0xff] %v1168_v24  ;;  %v2405_v27 = vadd.f32 %v1318_v23, %v1168_v24  ;;  %v1172_v28 = vadd.f32 %v1171_v26, %v1118_v25  ;;  %v1173_v41 = vpop.f32.mrf.mxu0  ;;  %v1352_v53 = vmul.f32 %v1168_v24, %v1168_v24  ;;  %v1375_v48 = vadd.f32 %v2373_v58, %v1351_v46 }
 0x131   :  { %v1120_v29 = vpop.f32.mrf.mxu1 }
 0x132   :  { %1300 = vst [vmem:[%s2487_s2 + $0x70] sm:$0xff] %v1172_v28  ;;  %v1174_v8 = vadd.f32 %v1173_v41, %v1120_v29  ;;  %v1175_v32 = vpop.f32.mrf.mxu0  ;;  %v1357_v54 = vmul.f32 %v1172_v28, %v1172_v28  ;;  %v1325_v61 = vadd.f32 %v2381_v63, %v1172_v28  ;;  %v1376_v11 = vadd.f32 %v1375_v48, %v1352_v53 }
 0x133   :  { %v1122_v31 = vpop.f32.mrf.mxu1 }
 0x134   :  { %1301 = vst [vmem:[%s2487_s2 + $0x78] sm:$0xff] %v1174_v8  ;;  %v1176_v9 = vadd.f32 %v1175_v32, %v1122_v31  ;;  %v1177_v34 = vpop.f32.mrf.mxu0  ;;  %v1382_v3 = vadd.f32 %v2383_v51, %v1357_v54  ;;  %v1358_v6 = vmul.f32 %v1174_v8, %v1174_v8  ;;  %v1326_v13 = vadd.f32 %v1325_v61, %v1174_v8 }
 0x135   :  { %v1124_v33 = vpop.f32.mrf.mxu1 }
 0x136   :  { %1306 = vst [vmem:[%s2487_s2 + $0xa0] sm:$0xff] %v1176_v9  ;;  %v1363_v35 = vmul.f32 %v1176_v9, %v1176_v9  ;;  %v1178_v36 = vadd.f32 %v1177_v34, %v1124_v33  ;;  %v1332_v14 = vadd.f32 %v2391_v5, %v1176_v9  ;;  %v1383_v23 = vadd.f32 %v1382_v3, %v1358_v6 }
 0x138   :  { %v1389_v37 = vadd.f32 %v1388_v7, %v1363_v35  ;;  %1307 = vst [vmem:[%s2487_s2 + $0xa8] sm:$0xff] %v1178_v36  ;;  %v1364_v38 = vmul.f32 %v1178_v36, %v1178_v36  ;;  %v1333_v28 = vadd.f32 %v1332_v14, %v1178_v36 }
 0x13a   :  { %v2419_v39 = vadd.f32 %v1389_v37, %v1364_v38 }
 0x14c   :  { %v1267_v40 = vpop.f32.mrf.mxu1 }
 0x14e   :  { %v1269_v42 = vpop.f32.mrf.mxu1 }
 0x150   :  { %v1271_v44 = vpop.f32.mrf.mxu1 }
 0x152   :  { %v1273_v49 = vpop.f32.mrf.mxu1 }
 0x154   :  { %v1277_v56 = vpop.f32.mrf.mxu1 }
 0x156   :  { %v1279_v10 = vpop.f32.mrf.mxu1 }
 0x158   :  { %v1281_v21 = vpop.f32.mrf.mxu1 }
 0x15a   :  { %v1283_v32 = vpop.f32.mrf.mxu1 }
 0x166   :  { %v1214_v47 = vpop.f32.mrf.mxu0 }
 0x167   :  { %v1268_v50 = vadd.f32 %v1267_v40, %v1214_v47 }
 0x168   :  { %v1216_v55 = vpop.f32.mrf.mxu0 }
 0x169   :  { %1290 = vst [vmem:[%s2487_s2 + $0x20] sm:$0xff] %v1268_v50  ;;  %v1347_v59 = vmul.f32 %v1268_v50, %v1268_v50  ;;  %v1270_v60 = vadd.f32 %v1269_v42, %v1216_v55  ;;  %v1313_v12 = vadd.f32 %v1312_v52, %v1268_v50 }
 0x16a   :  { %v1218_v62 = vpop.f32.mrf.mxu0 }
 0x16b   :  { %1291 = vst [vmem:[%s2487_s2 + $0x28] sm:$0xff] %v1270_v60  ;;  %v1272_v0 = vadd.f32 %v1271_v44, %v1218_v62  ;;  %v1314_v1 = vadd.f32 %v1313_v12, %v1270_v60  ;;  %v1348_v30 = vmul.f32 %v1270_v60, %v1270_v60  ;;  %v1370_v2 = vadd.f32 %v1369_v57, %v1347_v59 }
 0x16c   :  { %v1220_v7 = vpop.f32.mrf.mxu0 }
 0x16d   :  { %1296 = vst [vmem:[%s2487_s2 + $0x50] sm:$0xff] %v1272_v0  ;;  %v1274_v58 = vadd.f32 %v1273_v49, %v1220_v7  ;;  %1315 = vadd.xlane.f32.xlu0 %v1314_v1  ;;  %v1353_v63 = vmul.f32 %v1272_v0, %v1272_v0  ;;  %v1371_v16 = vadd.f32 %v1370_v2, %v1348_v30 }
 0x16e   :  { %v1224_v15 = vpop.f32.mrf.mxu0  ;;  %v1320_v20 = vadd.f32 %v2405_v27, %v1272_v0 }
 0x16f   :  { %1297 = vst [vmem:[%s2487_s2 + $0x58] sm:$0xff] %v1274_v58  ;;  %v1278_v51 = vadd.f32 %v1277_v56, %v1224_v15  ;;  %v1354_v17 = vmul.f32 %v1274_v58, %v1274_v58  ;;  %v1377_v18 = vadd.f32 %v1376_v11, %v1353_v63 }
 0x170   :  { %v1226_v22 = vpop.f32.mrf.mxu0  ;;  %v1321_v27 = vadd.f32 %v1320_v20, %v1274_v58 }
 0x171   :  { %1302 = vst [vmem:[%s2487_s2 + $0x80] sm:$0xff] %v1278_v51  ;;  %v1359_v24 = vmul.f32 %v1278_v51, %v1278_v51  ;;  %v1280_v5 = vadd.f32 %v1279_v10, %v1226_v22  ;;  %1372 = vadd.xlane.f32.xlu0 %v1371_v16  ;;  %v1378_v25 = vadd.f32 %v1377_v18, %v1354_v17 }
 0x172   :  { %v1327_v26 = vadd.f32 %v1326_v13, %v1278_v51  ;;  %v1228_v29 = vpop.f32.mrf.mxu0 }
 0x173   :  { %1303 = vst [vmem:[%s2487_s2 + $0x88] sm:$0xff] %v1280_v5  ;;  %v1282_v41 = vadd.f32 %v1281_v21, %v1228_v29  ;;  %1379 = vadd.xlane.f32.xlu1 %v1378_v25  ;;  %v1360_v8 = vmul.f32 %v1280_v5, %v1280_v5  ;;  %v1384_v31 = vadd.f32 %v1383_v23, %v1359_v24 }
 0x174   :  { %v1230_v9 = vpop.f32.mrf.mxu0  ;;  %v1328_v35 = vadd.f32 %v1327_v26, %v1280_v5 }
 0x175   :  { %1308 = vst [vmem:[%s2487_s2 + $0xb0] sm:$0xff] %v1282_v41  ;;  %v1365_v33 = vmul.f32 %v1282_v41, %v1282_v41  ;;  %v1284_v34 = vadd.f32 %v1283_v32, %v1230_v9  ;;  %1322 = vadd.xlane.f32.xlu0 %v1321_v27  ;;  %v1334_v36 = vadd.f32 %v1333_v28, %v1282_v41 }
 0x176   :  { %v1385_v37 = vadd.f32 %v1384_v31, %v1360_v8 }
 0x177   :  { %1309 = vst [vmem:[%s2487_s2 + $0xb8] sm:$0xff] %v1284_v34  ;;  %1329 = vadd.xlane.f32.xlu1 %v1328_v35  ;;  %v1335_v38 = vadd.f32 %v1334_v36, %v1284_v34  ;;  %v1366_v40 = vmul.f32 %v1284_v34, %v1284_v34  ;;  %v1391_v42 = vadd.f32 %v2419_v39, %v1365_v33 }
 0x179   :  { %1386 = vadd.xlane.f32.xlu0 %v1385_v37  ;;  %v1392_v43 = vadd.f32 %v1391_v42, %v1366_v40 }
 0x17b   :  { %1336 = vadd.xlane.f32.xlu1 %v1335_v38 }
 0x17f   :  { %1393 = vadd.xlane.f32.xlu1 %v1392_v43 }
 0x1f6   :  { %v1316_v44 = vpop.xlane.xlu0 %1315 }
 0x1f7   :  { %1339 = vst.msk [vmem:[%s2488_s3] sm:$0xff] %vm1338_vm1, %v1316_v44 }
 0x1fa   :  { %v1373_v45 = vpop.xlane.xlu0 %1372 }
 0x1fb   :  { %1395 = vst.msk [vmem:[%s2489_s4] sm:$0xff] %vm1338_vm1, %v1373_v45 }
 0x1fc   :  { %v1380_v4 = vpop.xlane.xlu1 %1379 }
 0x1fd   :  { %1396 = vst.msk [vmem:[%s2489_s4 + $0x8] sm:$0xff] %vm1338_vm1, %v1380_v4 }
 0x1fe   :  { %v1323_v39 = vpop.xlane.xlu0 %1322 }
 0x1ff   :  { %1340 = vst.msk [vmem:[%s2488_s3 + $0x8] sm:$0xff] %vm1338_vm1, %v1323_v39 }
 0x200   :  { %v1330_v19 = vpop.xlane.xlu1 %1329 }
 0x201   :  { %1341 = vst.msk [vmem:[%s2488_s3 + $0x10] sm:$0xff] %vm1338_vm1, %v1330_v19 }
 0x202   :  { %v1387_v46 = vpop.xlane.xlu0 %1386 }
 0x203   :  { %1397 = vst.msk [vmem:[%s2489_s4 + $0x10] sm:$0xff] %vm1338_vm1, %v1387_v46 }
 0x204   :  { %v1337_v47 = vpop.xlane.xlu1 %1336 }
 0x205   :  { %1342 = vst.msk [vmem:[%s2488_s3 + $0x18] sm:$0xff] %vm1338_vm1, %v1337_v47 }
 0x208   :  { %v1394_v49 = vpop.xlane.xlu1 %1393 }
 0x209   :  { %1398 = vst.msk [vmem:[%s2489_s4 + $0x18] sm:$0xff] %vm1338_vm1, %v1394_v49 }

// kernel: dqn_forward.10
= control target key start
LH: loop header
LB: loop body
LE: loop exit
PB: predicated region body
PF: predicated region fallthrough
CT: control target
= control target key end

     0   :  { %v273_v0 = vmov 0   ;;  %s444_s1 = inlined_call_operand.vmem [shape: f32[32,1], index: 1, kind: input, shape index: {}]   ;;  %s445_s2 = inlined_call_operand.vmem [shape: f32[32,1], index: 2, kind: input, shape index: {}]   ;;  %s446_s0 = inlined_call_operand.vmem [shape: f32[32,768], index: 0, kind: input, shape index: {}]   ;;  %s447_s3 = inlined_call_operand.vmem [shape: bf16[32,768], index: 3, kind: output, shape index: {}]  }
   0x1   :  { %272 = vset.pattern.permute.xlu1 %v273_v0  ;;  %271 = vset.pattern.permute.xlu0 %v273_v0  ;;  %v40_v1 = vld [vmem:[%s444_s1 + $0x10] sm:$0xff]  ;;  %v38_v2 = vld [vmem:[%s444_s1] sm:$0xff]  ;;  %v41_v3 = vld [vmem:[%s444_s1 + $0x18] sm:$0xff] }
   0x2   :  { %54 = vperm.xlu1 %272, %v40_v1   ;;  %44 = vperm.xlu0 %271, %v38_v2   ;;  %v39_v4 = vld [vmem:[%s444_s1 + $0x8] sm:$0xff]  ;;  %v86_v6 = vld [vmem:[%s445_s2] sm:$0xff]  ;;  %v89_v7 = vld [vmem:[%s445_s2 + $0x18] sm:$0xff] }
   0x3   :  { %v87_v5 = vld [vmem:[%s445_s2 + $0x8] sm:$0xff]  ;;  %v88_v8 = vld [vmem:[%s445_s2 + $0x10] sm:$0xff]  ;;  %v14_v9 = vld [vmem:[%s446_s0] sm:$0xff] }
   0x4   :  { %v15_v10 = vld [vmem:[%s446_s0 + $0x8] sm:$0xff]  ;;  %v16_v11 = vld [vmem:[%s446_s0 + $0x10] sm:$0xff]  ;;  %v17_v14 = vld [vmem:[%s446_s0 + $0x18] sm:$0xff] }
   0x5   :  { %v18_v15 = vld [vmem:[%s446_s0 + $0x20] sm:$0xff]  ;;  %v19_v16 = vld [vmem:[%s446_s0 + $0x28] sm:$0xff]  ;;  %v20_v17 = vld [vmem:[%s446_s0 + $0x30] sm:$0xff] }
   0x6   :  { %59 = vperm.xlu1 %272, %v41_v3   ;;  %49 = vperm.xlu0 %271, %v39_v4   ;;  %v21_v18 = vld [vmem:[%s446_s0 + $0x38] sm:$0xff]  ;;  %v22_v19 = vld [vmem:[%s446_s0 + $0x40] sm:$0xff]  ;;  %v27_v21 = vld [vmem:[%s446_s0 + $0x68] sm:$0xff] }
   0x7   :  { %v26_v20 = vld [vmem:[%s446_s0 + $0x60] sm:$0xff]  ;;  %v28_v22 = vld [vmem:[%s446_s0 + $0x70] sm:$0xff]  ;;  %v29_v23 = vld [vmem:[%s446_s0 + $0x78] sm:$0xff] }
   0x8   :  { %v30_v24 = vld [vmem:[%s446_s0 + $0x80] sm:$0xff]  ;;  %v31_v25 = vld [vmem:[%s446_s0 + $0x88] sm:$0xff]  ;;  %v24_v31 = vld [vmem:[%s446_s0 + $0x50] sm:$0xff] }
   0x9   :  { %v23_v30 = vld [vmem:[%s446_s0 + $0x48] sm:$0xff]  ;;  %v25_v32 = vld [vmem:[%s446_s0 + $0x58] sm:$0xff]  ;;  %v32_v37 = vld [vmem:[%s446_s0 + $0x90] sm:$0xff] }
   0xa   :  { %97 = vperm.xlu1 %272, %v87_v5   ;;  %92 = vperm.xlu0 %271, %v86_v6   ;;  %v33_v38 = vld [vmem:[%s446_s0 + $0x98] sm:$0xff]  ;;  %v34_v39 = vld [vmem:[%s446_s0 + $0xa0] sm:$0xff]  ;;  %v35_v42 = vld [vmem:[%s446_s0 + $0xa8] sm:$0xff] }
   0xb   :  { %v36_v43 = vld [vmem:[%s446_s0 + $0xb0] sm:$0xff]  ;;  %v37_v44 = vld [vmem:[%s446_s0 + $0xb8] sm:$0xff] }
   0xe   :  { %107 = vperm.xlu1 %272, %v89_v7   ;;  %102 = vperm.xlu0 %271, %v88_v8  }
  0x7d   :  { %v55_v12 = vpop.permute.xlu1 %54  ;;  %v45_v13 = vpop.permute.xlu0 %44 }
  0x7e   :  { %v62_v26 = vmul.f32 %v45_v13, %v14_v9  ;;  %v63_v27 = vmul.f32 %v45_v13, %v15_v10  ;;  %v64_v28 = vmul.f32 %v45_v13, %v16_v11  ;;  %v65_v29 = vmul.f32 %v45_v13, %v17_v14 }
  0x7f   :  { %v66_v33 = vmul.f32 %v45_v13, %v18_v15  ;;  %v67_v34 = vmul.f32 %v45_v13, %v19_v16  ;;  %v381_v40 = vmul.f32 %v55_v12, %v26_v20  ;;  %v383_v41 = vmul.f32 %v55_v12, %v27_v21 }
  0x80   :  { %v394_v45 = vmul.f32 %v55_v12, %v28_v22  ;;  %v396_v46 = vmul.f32 %v55_v12, %v29_v23  ;;  %v398_v47 = vmul.f32 %v55_v12, %v30_v24  ;;  %v400_v48 = vmul.f32 %v55_v12, %v31_v25 }
  0x81   :  { %v60_v35 = vpop.permute.xlu1 %59  ;;  %v50_v36 = vpop.permute.xlu0 %49 }
  0x82   :  { %v68_v49 = vmul.f32 %v50_v36, %v20_v17  ;;  %v69_v50 = vmul.f32 %v50_v36, %v21_v18  ;;  %v70_v51 = vmul.f32 %v50_v36, %v22_v19  ;;  %v71_v52 = vmul.f32 %v50_v36, %v23_v30 }
  0x83   :  { %v72_v53 = vmul.f32 %v50_v36, %v24_v31  ;;  %v73_v54 = vmul.f32 %v50_v36, %v25_v32  ;;  %v80_v55 = vmul.f32 %v60_v35, %v32_v37  ;;  %v81_v56 = vmul.f32 %v60_v35, %v33_v38 }
  0x84   :  { %v82_v59 = vmul.f32 %v60_v35, %v34_v39  ;;  %v83_v60 = vmul.f32 %v60_v35, %v35_v42  ;;  %v84_v61 = vmul.f32 %v60_v35, %v36_v43  ;;  %v85_v62 = vmul.f32 %v60_v35, %v37_v44 }
  0x85   :  { %v98_v57 = vpop.permute.xlu1 %97  ;;  %v93_v58 = vpop.permute.xlu0 %92 }
  0x86   :  { %v116_v63 = vadd.f32 %v98_v57, %v68_v49  ;;  %v117_v0 = vadd.f32 %v98_v57, %v69_v50  ;;  %v118_v1 = vadd.f32 %v98_v57, %v70_v51  ;;  %v119_v2 = vadd.f32 %v98_v57, %v71_v52 }
  0x87   :  { %v120_v3 = vadd.f32 %v98_v57, %v72_v53  ;;  %v121_v4 = vadd.f32 %v98_v57, %v73_v54  ;;  %v110_v5 = vadd.f32 %v93_v58, %v62_v26  ;;  %v111_v6 = vadd.f32 %v93_v58, %v63_v27 }
  0x88   :  { %v140_v7 = vmax.f32 %v116_v63, 0.0  ;;  %v141_v8 = vmax.f32 %v117_v0, 0.0  ;;  %v142_v9 = vmax.f32 %v118_v1, 0.0  ;;  %v143_v10 = vmax.f32 %v119_v2, 0.0 }
  0x89   :  { %v144_v11 = vmax.f32 %v120_v3, 0.0  ;;  %v145_v12 = vmax.f32 %v121_v4, 0.0  ;;  %v112_v13 = vadd.f32 %v93_v58, %v64_v28  ;;  %v113_v14 = vadd.f32 %v93_v58, %v65_v29  ;;  %v108_v15 = vpop.permute.xlu1 %107  ;;  %v103_v32 = vpop.permute.xlu0 %102 }
  0x8a   :  { %v261_v16 = vpack.c.bf16 %v141_v8, %v140_v7  ;;  %v262_v17 = vpack.c.bf16 %v143_v10, %v142_v9  ;;  %v114_v18 = vadd.f32 %v93_v58, %v66_v33  ;;  %v115_v19 = vadd.f32 %v93_v58, %v67_v34 }
  0x8b   :  { %v263_v20 = vpack.c.bf16 %v145_v12, %v144_v11  ;;  %v134_v21 = vmax.f32 %v110_v5, 0.0  ;;  %v135_v22 = vmax.f32 %v111_v6, 0.0  ;;  %v136_v23 = vmax.f32 %v112_v13, 0.0 }
  0x8c   :  { %233 = vst [vmem:[%s447_s3 + $0x18] sm:$0xff] %v261_v16  ;;  %234 = vst [vmem:[%s447_s3 + $0x20] sm:$0xff] %v262_v17  ;;  %v137_v24 = vmax.f32 %v113_v14, 0.0  ;;  %v138_v25 = vmax.f32 %v114_v18, 0.0  ;;  %v139_v26 = vmax.f32 %v115_v19, 0.0  ;;  %v128_v27 = vadd.f32 %v108_v15, %v80_v55 }
  0x8d   :  { %235 = vst [vmem:[%s447_s3 + $0x28] sm:$0xff] %v263_v20  ;;  %v258_v28 = vpack.c.bf16 %v135_v22, %v134_v21  ;;  %v129_v29 = vadd.f32 %v108_v15, %v81_v56  ;;  %v130_v30 = vadd.f32 %v108_v15, %v82_v59  ;;  %v131_v31 = vadd.f32 %v108_v15, %v83_v60 }
  0x8e   :  { %v259_v33 = vpack.c.bf16 %v137_v24, %v136_v23  ;;  %v260_v34 = vpack.c.bf16 %v139_v26, %v138_v25  ;;  %v132_v35 = vadd.f32 %v108_v15, %v84_v61  ;;  %v133_v36 = vadd.f32 %v108_v15, %v85_v62 }
  0x8f   :  { %230 = vst [vmem:[%s447_s3] sm:$0xff] %v258_v28  ;;  %v152_v37 = vmax.f32 %v128_v27, 0.0  ;;  %v153_v38 = vmax.f32 %v129_v29, 0.0  ;;  %v154_v39 = vmax.f32 %v130_v30, 0.0  ;;  %v155_v42 = vmax.f32 %v131_v31, 0.0 }
  0x90   :  { %231 = vst [vmem:[%s447_s3 + $0x8] sm:$0xff] %v259_v33  ;;  %232 = vst [vmem:[%s447_s3 + $0x10] sm:$0xff] %v260_v34  ;;  %v156_v43 = vmax.f32 %v132_v35, 0.0  ;;  %v157_v44 = vmax.f32 %v133_v36, 0.0  ;;  %v122_v49 = vadd.f32 %v103_v32, %v381_v40  ;;  %v123_v50 = vadd.f32 %v103_v32, %v383_v41 }
  0x91   :  { %v267_v51 = vpack.c.bf16 %v153_v38, %v152_v37  ;;  %v268_v52 = vpack.c.bf16 %v155_v42, %v154_v39  ;;  %v124_v53 = vadd.f32 %v103_v32, %v394_v45  ;;  %v125_v54 = vadd.f32 %v103_v32, %v396_v46 }
  0x92   :  { %v269_v55 = vpack.c.bf16 %v157_v44, %v156_v43  ;;  %v126_v56 = vadd.f32 %v103_v32, %v398_v47  ;;  %v127_v57 = vadd.f32 %v103_v32, %v400_v48  ;;  %v146_v58 = vmax.f32 %v122_v49, 0.0 }
  0x93   :  { %239 = vst [vmem:[%s447_s3 + $0x48] sm:$0xff] %v267_v51  ;;  %240 = vst [vmem:[%s447_s3 + $0x50] sm:$0xff] %v268_v52  ;;  %v147_v40 = vmax.f32 %v123_v50, 0.0  ;;  %v148_v41 = vmax.f32 %v124_v53, 0.0  ;;  %v149_v59 = vmax.f32 %v125_v54, 0.0 }
  0x94   :  { %241 = vst [vmem:[%s447_s3 + $0x58] sm:$0xff] %v269_v55  ;;  %v150_v45 = vmax.f32 %v126_v56, 0.0  ;;  %v151_v46 = vmax.f32 %v127_v57, 0.0 }
  0x95   :  { %v264_v47 = vpack.c.bf16 %v147_v40, %v146_v58  ;;  %v265_v48 = vpack.c.bf16 %v149_v59, %v148_v41 }
  0x96   :  { %v266_v60 = vpack.c.bf16 %v151_v46, %v150_v45 }
  0x97   :  { %236 = vst [vmem:[%s447_s3 + $0x30] sm:$0xff] %v264_v47  ;;  %237 = vst [vmem:[%s447_s3 + $0x38] sm:$0xff] %v265_v48 }
  0x98   :  { %238 = vst [vmem:[%s447_s3 + $0x40] sm:$0xff] %v266_v60 }

// kernel: dqn_forward.12
= control target key start
LH: loop header
LB: loop body
LE: loop exit
PB: predicated region body
PF: predicated region fallthrough
CT: control target
= control target key end

     0   :  { %v228_v0 = vmov 0   ;;  %s333_s1 = inlined_call_operand.vmem [shape: f32[64,1], index: 1, kind: input, shape index: {}]   ;;  %s334_s2 = inlined_call_operand.vmem [shape: f32[64,1], index: 2, kind: input, shape index: {}]   ;;  %s335_s0 = inlined_call_operand.vmem [shape: f32[64,128], index: 0, kind: input, shape index: {}]   ;;  %s336_s3 = inlined_call_operand.vmem [shape: bf16[64,128], index: 3, kind: output, shape index: {}]  }
   0x1   :  { %227 = vset.pattern.permute.xlu1 %v228_v0  ;;  %226 = vset.pattern.permute.xlu0 %v228_v0  ;;  %v24_v1 = vld [vmem:[%s333_s1 + $0x10] sm:$0xff]  ;;  %v22_v2 = vld [vmem:[%s333_s1] sm:$0xff]  ;;  %v25_v3 = vld [vmem:[%s333_s1 + $0x18] sm:$0xff] }
   0x2   :  { %42 = vperm.xlu1 %227, %v24_v1   ;;  %32 = vperm.xlu0 %226, %v22_v2   ;;  %v23_v4 = vld [vmem:[%s333_s1 + $0x8] sm:$0xff]  ;;  %v26_v6 = vld [vmem:[%s333_s1 + $0x20] sm:$0xff]  ;;  %v29_v7 = vld [vmem:[%s333_s1 + $0x38] sm:$0xff] }
   0x3   :  { %v27_v5 = vld [vmem:[%s333_s1 + $0x28] sm:$0xff]  ;;  %v28_v8 = vld [vmem:[%s333_s1 + $0x30] sm:$0xff]  ;;  %v78_v10 = vld [vmem:[%s334_s2] sm:$0xff] }
   0x4   :  { %v79_v9 = vld [vmem:[%s334_s2 + $0x8] sm:$0xff]  ;;  %v81_v11 = vld [vmem:[%s334_s2 + $0x18] sm:$0xff]  ;;  %v80_v12 = vld [vmem:[%s334_s2 + $0x10] sm:$0xff] }
   0x5   :  { %v83_v13 = vld [vmem:[%s334_s2 + $0x28] sm:$0xff]  ;;  %v82_v14 = vld [vmem:[%s334_s2 + $0x20] sm:$0xff]  ;;  %v85_v15 = vld [vmem:[%s334_s2 + $0x38] sm:$0xff] }
   0x6   :  { %47 = vperm.xlu1 %227, %v25_v3   ;;  %37 = vperm.xlu0 %226, %v23_v4   ;;  %v84_v16 = vld [vmem:[%s334_s2 + $0x30] sm:$0xff]  ;;  %v14_v23 = vld [vmem:[%s335_s0] sm:$0xff]  ;;  %v15_v24 = vld [vmem:[%s335_s0 + $0x8] sm:$0xff] }
   0x7   :  { %v16_v29 = vld [vmem:[%s335_s0 + $0x10] sm:$0xff]  ;;  %v17_v30 = vld [vmem:[%s335_s0 + $0x18] sm:$0xff]  ;;  %v19_v39 = vld [vmem:[%s335_s0 + $0x28] sm:$0xff] }
   0x8   :  { %v18_v40 = vld [vmem:[%s335_s0 + $0x20] sm:$0xff]  ;;  %v21_v50 = vld [vmem:[%s335_s0 + $0x38] sm:$0xff]  ;;  %v20_v51 = vld [vmem:[%s335_s0 + $0x30] sm:$0xff] }
   0xa   :  { %57 = vperm.xlu1 %227, %v27_v5   ;;  %52 = vperm.xlu0 %226, %v26_v6  }
   0xe   :  { %67 = vperm.xlu1 %227, %v29_v7   ;;  %62 = vperm.xlu0 %226, %v28_v8  }
  0x12   :  { %93 = vperm.xlu1 %227, %v79_v9   ;;  %88 = vperm.xlu0 %226, %v78_v10  }
  0x16   :  { %103 = vperm.xlu1 %227, %v81_v11   ;;  %98 = vperm.xlu0 %226, %v80_v12  }
  0x1a   :  { %113 = vperm.xlu1 %227, %v83_v13   ;;  %108 = vperm.xlu0 %226, %v82_v14  }
  0x1e   :  { %123 = vperm.xlu1 %227, %v85_v15   ;;  %118 = vperm.xlu0 %226, %v84_v16  }
  0x7d   :  { %v43_v17 = vpop.permute.xlu1 %42  ;;  %v33_v18 = vpop.permute.xlu0 %32 }
  0x7e   :  { %v70_v27 = vmul.f32 %v33_v18, %v14_v23  ;;  %v72_v35 = vmul.f32 %v43_v17, %v16_v29 }
  0x81   :  { %v48_v19 = vpop.permute.xlu1 %47  ;;  %v38_v20 = vpop.permute.xlu0 %37 }
  0x82   :  { %v71_v28 = vmul.f32 %v38_v20, %v15_v24  ;;  %v73_v36 = vmul.f32 %v48_v19, %v17_v30 }
  0x85   :  { %v58_v21 = vpop.permute.xlu1 %57  ;;  %v53_v22 = vpop.permute.xlu0 %52 }
  0x86   :  { %v75_v46 = vmul.f32 %v58_v21, %v19_v39  ;;  %v74_v47 = vmul.f32 %v53_v22, %v18_v40 }
  0x89   :  { %v68_v25 = vpop.permute.xlu1 %67  ;;  %v63_v26 = vpop.permute.xlu0 %62 }
  0x8a   :  { %v77_v57 = vmul.f32 %v68_v25, %v21_v50  ;;  %v76_v58 = vmul.f32 %v63_v26, %v20_v51 }
  0x8d   :  { %v94_v31 = vpop.permute.xlu1 %93  ;;  %v89_v32 = vpop.permute.xlu0 %88 }
  0x8e   :  { %v127_v33 = vadd.f32 %v94_v31, %v71_v28  ;;  %v126_v34 = vadd.f32 %v89_v32, %v70_v27 }
  0x90   :  { %v135_v37 = vmax.f32 %v127_v33, 0.0  ;;  %v134_v38 = vmax.f32 %v126_v34, 0.0 }
  0x91   :  { %v104_v41 = vpop.permute.xlu1 %103  ;;  %v99_v42 = vpop.permute.xlu0 %98 }
  0x92   :  { %v205_v43 = vpack.c.bf16 %v135_v37, %v134_v38  ;;  %v129_v44 = vadd.f32 %v104_v41, %v73_v36  ;;  %v128_v45 = vadd.f32 %v99_v42, %v72_v35 }
  0x94   :  { %206 = vst [vmem:[%s336_s3] sm:$0xff] %v205_v43   ;;  %v137_v48 = vmax.f32 %v129_v44, 0.0  ;;  %v136_v49 = vmax.f32 %v128_v45, 0.0 }
  0x95   :  { %v114_v52 = vpop.permute.xlu1 %113  ;;  %v109_v53 = vpop.permute.xlu0 %108 }
  0x96   :  { %v210_v54 = vpack.c.bf16 %v137_v48, %v136_v49  ;;  %v131_v55 = vadd.f32 %v114_v52, %v75_v46  ;;  %v130_v56 = vadd.f32 %v109_v53, %v74_v47 }
  0x98   :  { %222 = vst [vmem:[%s336_s3 + $0x8] sm:$0xff] %v210_v54   ;;  %v139_v59 = vmax.f32 %v131_v55, 0.0  ;;  %v138_v60 = vmax.f32 %v130_v56, 0.0 }
  0x99   :  { %v124_v61 = vpop.permute.xlu1 %123  ;;  %v119_v62 = vpop.permute.xlu0 %118 }
  0x9a   :  { %v215_v63 = vpack.c.bf16 %v139_v59, %v138_v60  ;;  %v133_v0 = vadd.f32 %v124_v61, %v77_v57  ;;  %v132_v1 = vadd.f32 %v119_v62, %v76_v58 }
  0x9c   :  { %223 = vst [vmem:[%s336_s3 + $0x10] sm:$0xff] %v215_v63   ;;  %v141_v2 = vmax.f32 %v133_v0, 0.0  ;;  %v140_v3 = vmax.f32 %v132_v1, 0.0 }
  0x9e   :  { %v220_v4 = vpack.c.bf16 %v141_v2, %v140_v3 }
  0xa0   :  { %224 = vst [vmem:[%s336_s3 + $0x18] sm:$0xff] %v220_v4  }

// kernel: dqn_forward.11
= control target key start
LH: loop header
LB: loop body
LE: loop exit
PB: predicated region body
PF: predicated region fallthrough
CT: control target
= control target key end

     0   :  { %vm587_vm0 = vcmask 261120   ;;  %vm884_vm1 = vcmask 7168   ;;  %s1626_s1 = inlined_call_operand.vmem [shape: bf16[800,128], index: 1, kind: input, shape index: {}]   ;;  %s1627_s0 = inlined_call_operand.vmem [shape: bf16[64,800], index: 0, kind: input, shape index: {}]   ;;  %s1628_s2 = inlined_call_operand.vmem [shape: f32[64,128], index: 2, kind: output, shape index: {0}]   ;;  %s1629_s3 = inlined_call_operand.vmem [shape: f32[1,64,1], index: 3, kind: output, shape index: {1}]   ;;  %s1630_s4 = inlined_call_operand.vmem [shape: f32[1,64,1], index: 4, kind: output, shape index: {2}]  }
   0x1   :  { %v1173_v0 = vld [vmem:[%s1626_s1 + $0x78] sm:$0xff]   ;;  %v1177_v4 = vld [vmem:[%s1626_s1 + $0x70] sm:$0xff]   ;;  %v1181_v8 = vld [vmem:[%s1626_s1 + $0x68] sm:$0xff]  }
   0x2   :  { %v1174_v1 = vld [vmem:[%s1626_s1 + $0xf8] sm:$0xff]   ;;  %1019 = vmatprep.subr.bf16.mxu0 %v1173_v0  ;;  %v1178_v5 = vld [vmem:[%s1626_s1 + $0xf0] sm:$0xff]   ;;  %v1182_v9 = vld [vmem:[%s1626_s1 + $0xe8] sm:$0xff]  }
   0x3   :  { %v1175_v2 = vld [vmem:[%s1626_s1 + $0x38] sm:$0xff]   ;;  %1059 = vmatprep.subr.bf16.mxu1 %v1174_v1  ;;  %v1179_v6 = vld [vmem:[%s1626_s1 + $0x30] sm:$0xff]   ;;  %v1183_v10 = vld [vmem:[%s1626_s1 + $0x28] sm:$0xff]  }
   0x4   :  { %v1176_v3 = vld [vmem:[%s1626_s1 + $0xb8] sm:$0xff]   ;;  %1020 = vmatpush3.bf16.msra.mxu0 %v1175_v2  ;;  %v1180_v7 = vld [vmem:[%s1626_s1 + $0xb0] sm:$0xff]   ;;  %v1184_v11 = vld [vmem:[%s1626_s1 + $0xa8] sm:$0xff]  }
   0x5   :  { %1060 = vmatpush3.bf16.msra.mxu1 %v1176_v3  ;;  %1021 = vmatprep.subr.bf16.mxu0 %v1177_v4  ;;  %v1185_v12 = vld [vmem:[%s1626_s1 + $0x60] sm:$0xff]   ;;  %v1189_v16 = vld [vmem:[%s1626_s1 + $0x58] sm:$0xff]   ;;  %v1193_v20 = vld [vmem:[%s1626_s1 + $0x50] sm:$0xff]  }
   0x6   :  { %1061 = vmatprep.subr.bf16.mxu1 %v1178_v5  ;;  %v1186_v13 = vld [vmem:[%s1626_s1 + $0xe0] sm:$0xff]   ;;  %v1190_v17 = vld [vmem:[%s1626_s1 + $0xd8] sm:$0xff]   ;;  %v1194_v21 = vld [vmem:[%s1626_s1 + $0xd0] sm:$0xff]  }
   0x7   :  { %v1187_v14 = vld [vmem:[%s1626_s1 + $0x20] sm:$0xff]   ;;  %v1191_v18 = vld [vmem:[%s1626_s1 + $0x18] sm:$0xff]   ;;  %v1195_v22 = vld [vmem:[%s1626_s1 + $0x10] sm:$0xff]  }
   0x8   :  { %1022 = vmatpush3.bf16.msra.mxu0 %v1179_v6  ;;  %v1188_v15 = vld [vmem:[%s1626_s1 + $0xa0] sm:$0xff]   ;;  %v1192_v19 = vld [vmem:[%s1626_s1 + $0x98] sm:$0xff]   ;;  %v1196_v23 = vld [vmem:[%s1626_s1 + $0x90] sm:$0xff]  }
   0x9   :  { %1062 = vmatpush3.bf16.msra.mxu1 %v1180_v7  ;;  %1023 = vmatprep.subr.bf16.mxu0 %v1181_v8  ;;  %v1197_v24 = vld [vmem:[%s1626_s1 + $0x48] sm:$0xff]   ;;  %v1201_v28 = vld [vmem:[%s1626_s1 + $0x40] sm:$0xff]   ;;  %v1211_v36 = vld [vmem:[%s1626_s1 + $0x178] sm:$0xff]  }
   0xa   :  { %1063 = vmatprep.subr.bf16.mxu1 %v1182_v9  ;;  %v1198_v25 = vld [vmem:[%s1626_s1 + $0xc8] sm:$0xff]   ;;  %v1202_v29 = vld [vmem:[%s1626_s1 + $0xc0] sm:$0xff]   ;;  %v1212_v37 = vld [vmem:[%s1626_s1 + $0x138] sm:$0xff]  }
   0xb   :  { %v1199_v26 = vld [vmem:[%s1626_s1 + $0x8] sm:$0xff]   ;;  %v1203_v30 = vld [vmem:[%s1626_s1] sm:$0xff]   ;;  %v1213_v38 = vld [vmem:[%s1626_s1 + $0x170] sm:$0xff]  }
   0xc   :  { %1024 = vmatpush3.bf16.msra.mxu0 %v1183_v10  ;;  %v1200_v27 = vld [vmem:[%s1626_s1 + $0x88] sm:$0xff]   ;;  %v1204_v31 = vld [vmem:[%s1626_s1 + $0x80] sm:$0xff]   ;;  %v1214_v39 = vld [vmem:[%s1626_s1 + $0x130] sm:$0xff]  }
   0xd   :  { %1064 = vmatpush3.bf16.msra.mxu1 %v1184_v11  ;;  %1025 = vmatprep.subr.bf16.mxu0 %v1185_v12  ;;  %v1205_v32 = vld [vmem:[%s1627_s0] ss:$28 sps:$4 sm:$0xff]   ;;  %v1208_v34 = vld [vmem:[%s1627_s0 + $0x8] ss:$28 sps:$4 sm:$0xff]   ;;  %v1219_v42 = vld [vmem:[%s1627_s0 + $0x38] ss:$28 sps:$4 sm:$0xff]  }
   0xe   :  { %1065 = vmatprep.subr.bf16.mxu1 %v1186_v13  ;;  %v1207_v33 = vld [vmem:[%s1627_s0 + $0x4] ss:$28 sps:$4 sm:$0xff]   ;;  %v1210_v35 = vld [vmem:[%s1627_s0 + $0xc] ss:$28 sps:$4 sm:$0xff]   ;;  %v1215_v40 = vld [vmem:[%s1627_s0 + $0x3c] ss:$28 sps:$4 sm:$0xff]  }
   0xf   :  { %632 = vmatprep.mubr.bf16.mxu0 %v1207_v33  ;;  %697 = vmatprep.mubr.bf16.mxu1 %v1210_v35  ;;  %v1217_v41 = vld [vmem:[%s1627_s0 + $0x44] ss:$28 sps:$4 sm:$0xff]   ;;  %v1221_v44 = vld [vmem:[%s1626_s1 + $0x168] sm:$0xff]   ;;  %v1225_v48 = vld [vmem:[%s1627_s0 + $0x74] ss:$28 sps:$4 sm:$0xff]  }
  0x10   :  { %1026 = vmatpush3.bf16.msra.mxu0 %v1187_v14  ;;  %v1220_v43 = vld [vmem:[%s1627_s0 + $0x40] ss:$28 sps:$4 sm:$0xff]   ;;  %v1222_v45 = vld [vmem:[%s1626_s1 + $0x128] sm:$0xff]   ;;  %v1230_v52 = vld [vmem:[%s1627_s0 + $0x78] ss:$28 sps:$4 sm:$0xff]  }
  0x11   :  { %1066 = vmatpush3.bf16.msra.mxu1 %v1188_v15  ;;  %1027 = vmatprep.subr.bf16.mxu0 %v1189_v16  ;;  %v1223_v46 = vld [vmem:[%s1626_s1 + $0x160] sm:$0xff]   ;;  %v1227_v49 = vld [vmem:[%s1627_s0 + $0x7c] ss:$28 sps:$4 sm:$0xff]   ;;  %v1229_v50 = vld [vmem:[%s1627_s0 + $0x70] ss:$28 sps:$4 sm:$0xff]  }
  0x12   :  { %1067 = vmatprep.subr.bf16.mxu1 %v1190_v17  ;;  %v1224_v47 = vld [vmem:[%s1626_s1 + $0x120] sm:$0xff]   ;;  %v1231_v51 = vld [vmem:[%s1626_s1 + $0x158] sm:$0xff]   ;;  %v1233_v54 = vld [vmem:[%s1626_s1 + $0x150] sm:$0xff]  }
  0x13   :  { %v1232_v53 = vld [vmem:[%s1626_s1 + $0x118] sm:$0xff]   ;;  %v1235_v55 = vld [vmem:[%s1627_s0 + $0xac] ss:$28 sps:$4 sm:$0xff]   ;;  %v1237_v56 = vld [vmem:[%s1627_s0 + $0xb4] ss:$28 sps:$4 sm:$0xff]  }
  0x14   :  { %1028 = vmatpush3.bf16.msra.mxu0 %v1191_v18  ;;  %v1234_v57 = vld [vmem:[%s1626_s1 + $0x110] sm:$0xff]   ;;  %v1241_v58 = vld [vmem:[%s1626_s1 + $0x148] sm:$0xff]   ;;  %v1243_v62 = vld [vmem:[%s1626_s1 + $0x140] sm:$0xff]  }
  0x15   :  { %1068 = vmatpush3.bf16.msra.mxu1 %v1192_v19  ;;  %1029 = vmatprep.subr.bf16.mxu0 %v1193_v20  ;;  %v1239_v59 = vld [vmem:[%s1627_s0 + $0xa8] ss:$28 sps:$4 sm:$0xff]   ;;  %v1240_v60 = vld [vmem:[%s1627_s0 + $0xb0] ss:$28 sps:$4 sm:$0xff]   ;;  %v1250_v0 = vld [vmem:[%s1627_s0 + $0xbc] ss:$28 sps:$4 sm:$0xff]  }
  0x16   :  { %1069 = vmatprep.subr.bf16.mxu1 %v1194_v21  ;;  %v1242_v61 = vld [vmem:[%s1626_s1 + $0x108] sm:$0xff]   ;;  %v1247_v63 = vld [vmem:[%s1627_s0 + $0x14] ss:$28 sps:$4 sm:$0xff]   ;;  %v1244_v1 = vld [vmem:[%s1626_s1 + $0x100] sm:$0xff]  }
  0x17   :  { %v1251_v2 = vld [vmem:[%s1626_s1 + $0x188] sm:$0xff]   ;;  %v1248_v4 = vld [vmem:[%s1627_s0 + $0xb8] ss:$28 sps:$4 sm:$0xff]   ;;  %v1252_v7 = vld [vmem:[%s1626_s1 + $0x180] sm:$0xff]  }
  0x18   :  { %1030 = vmatpush3.bf16.msra.mxu0 %v1195_v22  ;;  %v1245_v3 = vld [vmem:[%s1627_s0 + $0x10] ss:$28 sps:$4 sm:$0xff]   ;;  %v1255_v6 = vld [vmem:[%s1627_s0 + $0x18] ss:$28 sps:$4 sm:$0xff]   ;;  %v1256_v8 = vld [vmem:[%s1627_s0 + $0x48] ss:$28 sps:$4 sm:$0xff]  }
  0x19   :  { %1070 = vmatpush3.bf16.msra.mxu1 %v1196_v23  ;;  %1031 = vmatprep.subr.bf16.mxu0 %v1197_v24  ;;  %v1253_v5 = vld [vmem:[%s1627_s0 + $0x4c] ss:$28 sps:$4 sm:$0xff]   ;;  %v1258_v10 = vld [vmem:[%s1627_s0 + $0x84] ss:$28 sps:$4 sm:$0xff]  }
  0x1a   :  { %1071 = vmatprep.subr.bf16.mxu1 %v1198_v25  ;;  %v1257_v9 = vld [vmem:[%s1627_s0 + $0x50] ss:$28 sps:$4 sm:$0xff]   ;;  %v1260_v11 = vld [vmem:[%s1627_s0 + $0x88] ss:$28 sps:$4 sm:$0xff]   ;;  %v1261_v12 = vld [vmem:[%s1627_s0 + $0x80] ss:$28 sps:$4 sm:$0xff]  }
  0x1b   :  { %v1262_v13 = vld [vmem:[%s1627_s0 + $0xc0] ss:$28 sps:$4 sm:$0xff]  }
  0x1c   :  { %1032 = vmatpush3.bf16.msra.mxu0 %v1199_v26 }
  0x1d   :  { %1072 = vmatpush3.bf16.msra.mxu1 %v1200_v27  ;;  %1033 = vmatprep.subr.bf16.mxu0 %v1201_v28 }
  0x1e   :  { %1073 = vmatprep.subr.bf16.mxu1 %v1202_v29 }
  0x20   :  { %1034 = vmatpush3.bf16.msra.mxu0 %v1203_v30 }
  0x21   :  { %1074 = vmatpush3.bf16.msra.mxu1 %v1204_v31  ;;  %1099 = vmatprep.subr.bf16.mxu0 %v1211_v36 }
  0x22   :  { %1157 = vmatprep.subr.bf16.mxu1 %v1211_v36 }
  0x23   :  { %633 = vmatmul.mubr.bf16.vlgmr.msra.gmra.mxu0 %v1205_v32 }
  0x24   :  { %698 = vmatmul.mubr.bf16.vlgmr.msra.gmra.mxu1 %v1208_v34  ;;  %1100 = vmatpush3.bf16.msra.mxu0 %v1212_v37 }
  0x25   :  { %1165 = vmatpush3.bf16.msra.mxu1 %v1212_v37  ;;  %1101 = vmatprep.subr.bf16.mxu0 %v1213_v38 }
  0x26   :  { %1158 = vmatprep.subr.bf16.mxu1 %v1213_v38  ;;  %640 = vmatprep.mubr.bf16.mxu0 %v1215_v40 }
  0x27   :  { %705 = vmatprep.mubr.bf16.mxu1 %v1217_v41 }
  0x28   :  { %1102 = vmatpush3.bf16.msra.mxu0 %v1214_v39 }
  0x29   :  { %1166 = vmatpush3.bf16.msra.mxu1 %v1214_v39  ;;  %1103 = vmatprep.subr.bf16.mxu0 %v1221_v44 }
  0x2a   :  { %1159 = vmatprep.subr.bf16.mxu1 %v1221_v44 }
  0x2b   :  { %641 = vmatmul.mubr.bf16.gmra.mxu0 %v1219_v42 }
  0x2c   :  { %706 = vmatmul.mubr.bf16.gmra.mxu1 %v1220_v43  ;;  %1104 = vmatpush3.bf16.msra.mxu0 %v1222_v45 }
  0x2d   :  { %1167 = vmatpush3.bf16.msra.mxu1 %v1222_v45  ;;  %1105 = vmatprep.subr.bf16.mxu0 %v1223_v46 }
  0x2e   :  { %1160 = vmatprep.subr.bf16.mxu1 %v1223_v46  ;;  %648 = vmatprep.mubr.bf16.mxu0 %v1225_v48 }
  0x2f   :  { %713 = vmatprep.mubr.bf16.mxu1 %v1227_v49 }
  0x30   :  { %1106 = vmatpush3.bf16.msra.mxu0 %v1224_v47 }
  0x31   :  { %1168 = vmatpush3.bf16.msra.mxu1 %v1224_v47  ;;  %1107 = vmatprep.subr.bf16.mxu0 %v1231_v51 }
  0x32   :  { %1161 = vmatprep.subr.bf16.mxu1 %v1231_v51 }
  0x33   :  { %649 = vmatmul.mubr.bf16.gmra.mxu0 %v1229_v50 }
  0x34   :  { %714 = vmatmul.mubr.bf16.gmra.mxu1 %v1230_v52  ;;  %1108 = vmatpush3.bf16.msra.mxu0 %v1232_v53 }
  0x35   :  { %656 = vmatprep.mubr.bf16.mxu0 %v1235_v55  ;;  %1169 = vmatpush3.bf16.msra.mxu1 %v1232_v53 }
  0x36   :  { %1109 = vmatprep.subr.bf16.mxu0 %v1233_v54  ;;  %1162 = vmatprep.subr.bf16.mxu1 %v1233_v54 }
  0x37   :  { %721 = vmatprep.mubr.bf16.mxu1 %v1237_v56 }
  0x38   :  { %1110 = vmatpush3.bf16.msra.mxu0 %v1234_v57 }
  0x39   :  { %1170 = vmatpush3.bf16.msra.mxu1 %v1234_v57  ;;  %1111 = vmatprep.subr.bf16.mxu0 %v1241_v58 }
  0x3a   :  { %1163 = vmatprep.subr.bf16.mxu1 %v1241_v58 }
  0x3b   :  { %657 = vmatmul.mubr.bf16.gmra.mxu0 %v1239_v59 }
  0x3c   :  { %722 = vmatmul.mubr.bf16.gmra.mxu1 %v1240_v60  ;;  %762 = vmatprep.mubr.bf16.mxu0 %v1247_v63 }
  0x3d   :  { %1112 = vmatpush3.bf16.msra.mxu0 %v1242_v61  ;;  %1171 = vmatpush3.bf16.msra.mxu1 %v1242_v61 }
  0x3e   :  { %1113 = vmatprep.subr.bf16.mxu0 %v1243_v62  ;;  %1164 = vmatprep.subr.bf16.mxu1 %v1243_v62 }
  0x3f   :  { %786 = vmatprep.mubr.bf16.mxu1 %v1250_v0 }
  0x41   :  { %1114 = vmatpush3.bf16.msra.mxu0 %v1244_v1  ;;  %1172 = vmatpush3.bf16.msra.mxu1 %v1244_v1 }
  0x42   :  { %1145 = vmatprep.subr.bf16.mxu1 %v1251_v2 }
  0x44   :  { %763 = vmatmul.mubr.bf16.vlgmr.msra.gmra.mxu0 %v1245_v3  ;;  %787 = vmatmul.mubr.bf16.vlgmr.msra.gmra.mxu1 %v1248_v4 }
  0x45   :  { %770 = vmatprep.mubr.bf16.mxu0 %v1253_v5  ;;  %1146 = vmatpush3.bf16.msra.mxu1 %v1251_v2 }
  0x46   :  { %1149 = vmatprep.mubr.msk.bf16.mxu1 %vm587_vm0, %v1255_v6  ;;  %1147 = vmatprep.subr.bf16.mxu1 %v1252_v7 }
  0x49   :  { %1148 = vmatpush3.bf16.msra.mxu1 %v1252_v7 }
  0x4c   :  { %771 = vmatmul.mubr.bf16.gmra.mxu0 %v1256_v8  ;;  %1150 = vmatmul.mubr.msk.bf16.vlgmr.msra.gmra.mxu1 %vm587_vm0, %v1257_v9 }
  0x4d   :  { %778 = vmatprep.mubr.bf16.mxu0 %v1258_v10  ;;  %1153 = vmatprep.mubr.msk.bf16.mxu1 %vm587_vm0, %v1260_v11 }
  0x54   :  { %779 = vmatmul.mubr.bf16.gmra.mxu0 %v1261_v12  ;;  %1154 = vmatmul.mubr.msk.bf16.gmra.mxu1 %vm587_vm0, %v1262_v13 }
  0xe3   :  { %v1035_v14 = vpop.f32.mrf.mxu0 }
  0xe4   :  { %v1075_v15 = vpop.f32.mrf.mxu1 }
  0xe5   :  { %v1036_v16 = vpop.f32.mrf.mxu0 }
  0xe6   :  { %v1076_v17 = vpop.f32.mrf.mxu1  ;;  %v1037_v50 = vadd.f32 %v1036_v16, %v1035_v14 }
  0xe7   :  { %v1038_v18 = vpop.f32.mrf.mxu0  ;;  %v1077_v51 = vadd.f32 %v1076_v17, %v1075_v15 }
  0xe8   :  { %v1078_v19 = vpop.f32.mrf.mxu1 }
  0xe9   :  { %v1039_v20 = vpop.f32.mrf.mxu0  ;;  %v700_v59 = vadd.f32 %v1077_v51, %v1037_v50 }
  0xea   :  { %v1079_v21 = vpop.f32.mrf.mxu1  ;;  %v1040_v60 = vadd.f32 %v1039_v20, %v1038_v18 }
  0xeb   :  { %v1041_v22 = vpop.f32.mrf.mxu0  ;;  %v1080_v61 = vadd.f32 %v1079_v21, %v1078_v19 }
  0xec   :  { %v1081_v23 = vpop.f32.mrf.mxu1 }
  0xed   :  { %v1042_v24 = vpop.f32.mrf.mxu0  ;;  %v703_v10 = vadd.f32 %v1080_v61, %v1040_v60 }
  0xee   :  { %v1082_v25 = vpop.f32.mrf.mxu1  ;;  %v1043_v56 = vadd.f32 %v1042_v24, %v1041_v22 }
  0xef   :  { %v1044_v26 = vpop.f32.mrf.mxu0  ;;  %v1083_v57 = vadd.f32 %v1082_v25, %v1081_v23 }
  0xf0   :  { %v1084_v27 = vpop.f32.mrf.mxu1 }
  0xf1   :  { %v1045_v28 = vpop.f32.mrf.mxu0  ;;  %v708_v5 = vadd.f32 %v1083_v57, %v1043_v56 }
  0xf2   :  { %v1085_v29 = vpop.f32.mrf.mxu1  ;;  %v1046_v6 = vadd.f32 %v1045_v28, %v1044_v26 }
  0xf3   :  { %v1047_v30 = vpop.f32.mrf.mxu0  ;;  %v1086_v7 = vadd.f32 %v1085_v29, %v1084_v27 }
  0xf4   :  { %v1087_v31 = vpop.f32.mrf.mxu1 }
  0xf5   :  { %v1048_v32 = vpop.f32.mrf.mxu0  ;;  %v711_v23 = vadd.f32 %v1086_v7, %v1046_v6 }
  0xf6   :  { %v1088_v33 = vpop.f32.mrf.mxu1  ;;  %v1049_v14 = vadd.f32 %v1048_v32, %v1047_v30 }
  0xf7   :  { %v1526_v34 = vpop.f32.mrf.mxu0  ;;  %v1089_v15 = vadd.f32 %v1088_v33, %v1087_v31 }
  0xf8   :  { %v1528_v35 = vpop.f32.mrf.mxu1 }
  0xf9   :  { %v1530_v36 = vpop.f32.mrf.mxu0 }
  0xfa   :  { %v1532_v37 = vpop.f32.mrf.mxu1 }
  0xfb   :  { %v1053_v38 = vpop.f32.mrf.mxu0 }
  0xfc   :  { %v1093_v39 = vpop.f32.mrf.mxu1 }
  0xfd   :  { %v1054_v40 = vpop.f32.mrf.mxu0 }
  0xfe   :  { %v1094_v41 = vpop.f32.mrf.mxu1  ;;  %v1055_v0 = vadd.f32 %v1054_v40, %v1053_v38  ;;  %v716_v38 = vadd.f32 %v1089_v15, %v1049_v14 }
  0xff   :  { %v1056_v42 = vpop.f32.mrf.mxu0  ;;  %v1095_v1 = vadd.f32 %v1094_v41, %v1093_v39  ;;  %v1052_v39 = vadd.f32 %v1530_v36, %v1526_v34 }
 0x100   :  { %v1096_v43 = vpop.f32.mrf.mxu1 }
 0x101   :  { %v1057_v44 = vpop.f32.mrf.mxu0  ;;  %v724_v18 = vadd.f32 %v1095_v1, %v1055_v0 }
 0x102   :  { %v1097_v45 = vpop.f32.mrf.mxu1  ;;  %v1058_v19 = vadd.f32 %v1057_v44, %v1056_v42 }
 0x103   :  { %v1098_v20 = vadd.f32 %v1097_v45, %v1096_v43  ;;  %v1092_v43 = vadd.f32 %v1532_v37, %v1528_v35 }
 0x104   :  { %v1115_v46 = vpop.f32.mrf.mxu0  ;;  %v1133_v47 = vpop.f32.mrf.mxu1 }
 0x105   :  { %v727_v40 = vadd.f32 %v1098_v20, %v1058_v19  ;;  %v719_v37 = vadd.f32 %v1092_v43, %v1052_v39 }
 0x106   :  { %v1116_v48 = vpop.f32.mrf.mxu0  ;;  %v1134_v49 = vpop.f32.mrf.mxu1 }
 0x107   :  { %v1117_v54 = vadd.f32 %v1116_v48, %v1115_v46  ;;  %v1135_v11 = vadd.f32 %v1134_v49, %v1133_v47 }
 0x108   :  { %v1118_v52 = vpop.f32.mrf.mxu0  ;;  %v1136_v53 = vpop.f32.mrf.mxu1 }
 0x109   :  { %v765_v4 = vadd.f32 %v1117_v54, %v700_v59  ;;  %v789_v30 = vadd.f32 %v1135_v11, %v724_v18 }
 0x10a   :  { %v1119_v55 = vpop.f32.mrf.mxu0  ;;  %v1137_v58 = vpop.f32.mrf.mxu1 }
 0x10b   :  { %v1120_v2 = vadd.f32 %v1119_v55, %v1118_v52  ;;  %v1138_v27 = vadd.f32 %v1137_v58, %v1136_v53 }
 0x10c   :  { %v1121_v62 = vpop.f32.mrf.mxu0  ;;  %v1151_v63 = vpop.f32.mrf.mxu1 }
 0x10d   :  { %v768_v22 = vadd.f32 %v1120_v2, %v703_v10  ;;  %v792_v36 = vadd.f32 %v1138_v27, %v727_v40 }
 0x10e   :  { %v1122_v3 = vpop.f32.mrf.mxu0  ;;  %v829_v9 = vpop.f32.mrf.mxu1 }
 0x10f   :  { %v1123_v8 = vadd.f32 %v1122_v3, %v1121_v62  ;;  %v830_v12 = vadd.f32 %v829_v9, %v765_v4 }
 0x110   :  { %v1124_v13 = vpop.f32.mrf.mxu0  ;;  %v1152_v17 = vpop.f32.mrf.mxu1 }
 0x111   :  { %v773_v16 = vadd.f32 %v1123_v8, %v708_v5  ;;  %860 = vst [vmem:[%s1628_s2] sm:$0xff] %v830_v12  ;;  %868 = vadd.xlane.f32.xlu0 %v830_v12  ;;  %v893_v31 = vmul.f32 %v830_v12, %v830_v12 }
 0x112   :  { %v1125_v21 = vpop.f32.mrf.mxu0  ;;  %v832_v25 = vpop.f32.mrf.mxu1 }
 0x113   :  { %v1126_v24 = vadd.f32 %v1125_v21, %v1124_v13  ;;  %v838_v26 = vadd.f32 %v1151_v63, %v773_v16  ;;  %v833_v28 = vadd.f32 %v832_v25, %v768_v22 }
 0x114   :  { %v1127_v29 = vpop.f32.mrf.mxu0  ;;  %v1155_v33 = vpop.f32.mrf.mxu1 }
 0x115   :  { %v776_v32 = vadd.f32 %v1126_v24, %v711_v23  ;;  %872 = vadd.xlane.f32.xlu1 %v838_v26  ;;  %862 = vst [vmem:[%s1628_s2 + $0x10] sm:$0xff] %v838_v26  ;;  %861 = vst [vmem:[%s1628_s2 + $0x8] sm:$0xff] %v833_v28  ;;  %v854_v41 = vadd.f32 %v1155_v33, %v789_v30  ;;  %901 = vadd.xlane.f32.xlu0 %v893_v31 }
 0x116   :  { %v1128_v42 = vpop.f32.mrf.mxu0  ;;  %v845_v45 = vpop.f32.mrf.mxu1  ;;  %v894_v46 = vmul.f32 %v833_v28, %v833_v28  ;;  %v895_v56 = vmul.f32 %v838_v26, %v838_v26 }
 0x117   :  { %v1129_v44 = vadd.f32 %v1128_v42, %v1127_v29  ;;  %v841_v47 = vadd.f32 %v1152_v17, %v776_v32  ;;  %866 = vst [vmem:[%s1628_s2 + $0x30] sm:$0xff] %v854_v41  ;;  %v899_v60 = vmul.f32 %v854_v41, %v854_v41 }
 0x118   :  { %v1130_v34 = vpop.f32.mrf.mxu0  ;;  %v1156_v49 = vpop.f32.mrf.mxu1 }
 0x119   :  { %v781_v48 = vadd.f32 %v1129_v44, %v716_v38  ;;  %903 = vadd.xlane.f32.xlu1 %v894_v46  ;;  %863 = vst [vmem:[%s1628_s2 + $0x18] sm:$0xff] %v841_v47  ;;  %v857_v50 = vadd.f32 %v1156_v49, %v792_v36  ;;  %870 = vadd.xlane.f32.xlu0 %v833_v28 }
 0x11a   :  { %v1131_v35 = vpop.f32.mrf.mxu0  ;;  %v848_v54 = vpop.f32.mrf.mxu1  ;;  %v896_v57 = vmul.f32 %v841_v47, %v841_v47 }
 0x11b   :  { %v846_v51 = vadd.f32 %v845_v45, %v781_v48  ;;  %v1132_v52 = vadd.f32 %v1131_v35, %v1130_v34  ;;  %867 = vst [vmem:[%s1628_s2 + $0x38] sm:$0xff] %v857_v50  ;;  %v900_v61 = vmul.f32 %v857_v50, %v857_v50 }
 0x11d   :  { %864 = vst [vmem:[%s1628_s2 + $0x20] sm:$0xff] %v846_v51  ;;  %v784_v53 = vadd.f32 %v1132_v52, %v719_v37  ;;  %874 = vadd.xlane.f32.xlu1 %v841_v47  ;;  %880 = vadd.xlane.f32.xlu0 %v854_v41  ;;  %v897_v58 = vmul.f32 %v846_v51, %v846_v51 }
 0x11f   :  { %v849_v55 = vadd.f32 %v848_v54, %v784_v53 }
 0x121   :  { %865 = vst [vmem:[%s1628_s2 + $0x28] sm:$0xff] %v849_v55  ;;  %882 = vadd.xlane.f32.xlu1 %v857_v50  ;;  %905 = vadd.xlane.f32.xlu0 %v895_v56  ;;  %v898_v59 = vmul.f32 %v849_v55, %v849_v55 }
 0x125   :  { %907 = vadd.xlane.f32.xlu1 %v896_v57  ;;  %876 = vadd.xlane.f32.xlu0 %v846_v51 }
 0x129   :  { %878 = vadd.xlane.f32.xlu1 %v849_v55  ;;  %909 = vadd.xlane.f32.xlu0 %v897_v58 }
 0x12d   :  { %911 = vadd.xlane.f32.xlu1 %v898_v59  ;;  %913 = vadd.xlane.f32.xlu0 %v899_v60 }
 0x131   :  { %915 = vadd.xlane.f32.xlu1 %v900_v61 }
 0x19a   :  { %v869_v62 = vpop.xlane.xlu0 %868 }
 0x19b   :  { %885 = vst.msk [vmem:[%s1629_s3] sm:$0xff] %vm884_vm1, %v869_v62 }
 0x19e   :  { %v873_v63 = vpop.xlane.xlu1 %872  ;;  %v902_v0 = vpop.xlane.xlu0 %901 }
 0x19f   :  { %887 = vst.msk [vmem:[%s1629_s3 + $0x10] sm:$0xff] %vm884_vm1, %v873_v63  ;;  %917 = vst.msk [vmem:[%s1630_s4] sm:$0xff] %vm884_vm1, %v902_v0 }
 0x1a2   :  { %v904_v1 = vpop.xlane.xlu1 %903  ;;  %v871_v2 = vpop.xlane.xlu0 %870 }
 0x1a3   :  { %918 = vst.msk [vmem:[%s1630_s4 + $0x8] sm:$0xff] %vm884_vm1, %v904_v1  ;;  %886 = vst.msk [vmem:[%s1629_s3 + $0x8] sm:$0xff] %vm884_vm1, %v871_v2 }
 0x1a6   :  { %v875_v3 = vpop.xlane.xlu1 %874  ;;  %v881_v4 = vpop.xlane.xlu0 %880 }
 0x1a7   :  { %888 = vst.msk [vmem:[%s1629_s3 + $0x18] sm:$0xff] %vm884_vm1, %v875_v3  ;;  %891 = vst.msk [vmem:[%s1629_s3 + $0x30] sm:$0xff] %vm884_vm1, %v881_v4 }
 0x1aa   :  { %v883_v5 = vpop.xlane.xlu1 %882  ;;  %v906_v6 = vpop.xlane.xlu0 %905 }
 0x1ab   :  { %892 = vst.msk [vmem:[%s1629_s3 + $0x38] sm:$0xff] %vm884_vm1, %v883_v5  ;;  %919 = vst.msk [vmem:[%s1630_s4 + $0x10] sm:$0xff] %vm884_vm1, %v906_v6 }
 0x1ae   :  { %v908_v7 = vpop.xlane.xlu1 %907  ;;  %v877_v8 = vpop.xlane.xlu0 %876 }
 0x1af   :  { %920 = vst.msk [vmem:[%s1630_s4 + $0x18] sm:$0xff] %vm884_vm1, %v908_v7  ;;  %889 = vst.msk [vmem:[%s1629_s3 + $0x20] sm:$0xff] %vm884_vm1, %v877_v8 }
 0x1b2   :  { %v879_v9 = vpop.xlane.xlu1 %878  ;;  %v910_v10 = vpop.xlane.xlu0 %909 }
 0x1b3   :  { %890 = vst.msk [vmem:[%s1629_s3 + $0x28] sm:$0xff] %vm884_vm1, %v879_v9  ;;  %921 = vst.msk [vmem:[%s1630_s4 + $0x20] sm:$0xff] %vm884_vm1, %v910_v10 }
 0x1b6   :  { %v912_v11 = vpop.xlane.xlu1 %911  ;;  %v914_v12 = vpop.xlane.xlu0 %913 }
 0x1b7   :  { %922 = vst.msk [vmem:[%s1630_s4 + $0x28] sm:$0xff] %vm884_vm1, %v912_v11  ;;  %923 = vst.msk [vmem:[%s1630_s4 + $0x30] sm:$0xff] %vm884_vm1, %v914_v12 }
 0x1ba   :  { %v916_v13 = vpop.xlane.xlu1 %915 }
 0x1bb   :  { %924 = vst.msk [vmem:[%s1630_s4 + $0x38] sm:$0xff] %vm884_vm1, %v916_v13 }

// kernel: dqn_forward.13
= control target key start
LH: loop header
LB: loop body
LE: loop exit
PB: predicated region body
PF: predicated region fallthrough
CT: control target
= control target key end

     0   :  { %v427_v27 = vlaneseq  ;;  %v3029_v35 = vmov 1966171168   ;;  %s3695_s0 = inlined_call_operand.vmem [shape: bf16[2,3136], index: 0, kind: input, shape index: {}]   ;;  %s3696_s1 = inlined_call_operand.vmem [shape: bf16[3136,2], index: 1, kind: input, shape index: {}]   ;;  %s3697_s2 = inlined_call_operand.vmem [shape: f32[1,2], index: 2, kind: input, shape index: {}]   ;;  %s3698_s3 = inlined_call_operand.hbm [shape: f32[2,2], index: 3, kind: output, shape index: {}]  }
   0x1   :  { %v2808_v0 = vld [vmem:[%s3696_s1 + $0x78] sm:$0xff]   ;;  %v2812_v4 = vld [vmem:[%s3696_s1 + $0x70] sm:$0xff]   ;;  %v2816_v8 = vld [vmem:[%s3696_s1 + $0x68] sm:$0xff]   ;;  %v425_v36 = vunpack.c.l.s4 %v3029_v35 }
   0x2   :  { %v2809_v1 = vld [vmem:[%s3696_s1 + $0x38] sm:$0xff]   ;;  %2523 = vmatprep.subr.bf16.mxu0 %v2808_v0  ;;  %v2813_v5 = vld [vmem:[%s3696_s1 + $0x30] sm:$0xff]   ;;  %v2817_v9 = vld [vmem:[%s3696_s1 + $0x28] sm:$0xff]   ;;  %v428_v32 = vshrl.u32 %v427_v27, 7 }
   0x3   :  { %v2810_v2 = vld [vmem:[%s3696_s1 + $0xf8] sm:$0xff]   ;;  %2524 = vmatpush3.bf16.msra.mxu0 %v2809_v1  ;;  %v2814_v6 = vld [vmem:[%s3696_s1 + $0xf0] sm:$0xff]   ;;  %v2818_v10 = vld [vmem:[%s3696_s1 + $0xe8] sm:$0xff]   ;;  %v426_v39 = vunpack.c.0.s8 %v425_v36 }
   0x4   :  { %v2811_v3 = vld [vmem:[%s3696_s1 + $0xb8] sm:$0xff]   ;;  %2545 = vmatprep.subr.bf16.mxu1 %v2810_v2  ;;  %2525 = vmatprep.subr.bf16.mxu0 %v2812_v4  ;;  %v2815_v7 = vld [vmem:[%s3696_s1 + $0xb0] sm:$0xff]   ;;  %v2819_v11 = vld [vmem:[%s3696_s1 + $0xa8] sm:$0xff]  }
   0x5   :  { %2546 = vmatpush3.bf16.msra.mxu1 %v2811_v3  ;;  %v2820_v12 = vld [vmem:[%s3696_s1 + $0x60] sm:$0xff]   ;;  %v2824_v16 = vld [vmem:[%s3696_s1 + $0x58] sm:$0xff]   ;;  %v2828_v20 = vld [vmem:[%s3696_s1 + $0x50] sm:$0xff]   ;;  %v3158_v41 = vsub.s32 %v426_v39, %v428_v32 }
   0x6   :  { %2547 = vmatprep.subr.bf16.mxu1 %v2814_v6  ;;  %v2821_v13 = vld [vmem:[%s3696_s1 + $0x20] sm:$0xff]   ;;  %v2825_v17 = vld [vmem:[%s3696_s1 + $0x18] sm:$0xff]   ;;  %v2829_v21 = vld [vmem:[%s3696_s1 + $0x10] sm:$0xff]  }
   0x7   :  { %2526 = vmatpush3.bf16.msra.mxu0 %v2813_v5  ;;  %v2822_v14 = vld [vmem:[%s3696_s1 + $0xe0] sm:$0xff]   ;;  %v2826_v18 = vld [vmem:[%s3696_s1 + $0xd8] sm:$0xff]   ;;  %v2830_v22 = vld [vmem:[%s3696_s1 + $0xd0] sm:$0xff]  }
   0x8   :  { %2527 = vmatprep.subr.bf16.mxu0 %v2816_v8  ;;  %v2823_v15 = vld [vmem:[%s3696_s1 + $0xa0] sm:$0xff]   ;;  %v2827_v19 = vld [vmem:[%s3696_s1 + $0x98] sm:$0xff]   ;;  %v2831_v23 = vld [vmem:[%s3696_s1 + $0x90] sm:$0xff]  }
   0x9   :  { %2548 = vmatpush3.bf16.msra.mxu1 %v2815_v7  ;;  %v2832_v24 = vld [vmem:[%s3696_s1 + $0x48] sm:$0xff]   ;;  %v2836_v29 = vld [vmem:[%s3696_s1 + $0x40] sm:$0xff]   ;;  %v2841_v37 = vld [vmem:[%s3696_s1 + $0x178] sm:$0xff]  }
   0xa   :  { %2549 = vmatprep.subr.bf16.mxu1 %v2818_v10  ;;  %v2833_v25 = vld [vmem:[%s3696_s1 + $0x8] sm:$0xff]   ;;  %v2837_v30 = vld [vmem:[%s3696_s1] sm:$0xff]   ;;  %v2843_v40 = vld [vmem:[%s3696_s1 + $0x1f8] sm:$0xff]  }
   0xb   :  { %2528 = vmatpush3.bf16.msra.mxu0 %v2817_v9  ;;  %v2834_v26 = vld [vmem:[%s3696_s1 + $0xc8] sm:$0xff]   ;;  %v2838_v31 = vld [vmem:[%s3696_s1 + $0xc0] sm:$0xff]   ;;  %v2842_v48 = vld [vmem:[%s3696_s1 + $0x138] sm:$0xff]  }
   0xc   :  { %2529 = vmatprep.subr.bf16.mxu0 %v2820_v12  ;;  %v2835_v28 = vld [vmem:[%s3696_s1 + $0x88] sm:$0xff]   ;;  %v16_v33 = vld [vmem:[%s3695_s0] sm:$0xff]  ;;  %v2845_v51 = vld [vmem:[%s3696_s1 + $0x170] sm:$0xff]  }
   0xd   :  { %2550 = vmatpush3.bf16.msra.mxu1 %v2819_v11  ;;  %v2840_v34 = vld [vmem:[%s3696_s1 + $0x80] sm:$0xff]   ;;  %v423_v38 = vcombine.high %v16_v33, %v16_v33  ;;  %v430_v42 = vrot.slane %v16_v33, %v3158_v41  ;;  %v2844_v53 = vld [vmem:[%s3696_s1 + $0x1b8] sm:$0xff]   ;;  %v2847_v54 = vld [vmem:[%s3696_s1 + $0x1f0] sm:$0xff]  }
   0xe   :  { %2551 = vmatprep.subr.bf16.mxu1 %v2822_v14  ;;  %v2846_v56 = vld [vmem:[%s3696_s1 + $0x130] sm:$0xff]   ;;  %v2849_v57 = vld [vmem:[%s3696_s1 + $0x168] sm:$0xff]   ;;  %v2853_v61 = vld [vmem:[%s3696_s1 + $0x160] sm:$0xff]  }
   0xf   :  { %2530 = vmatpush3.bf16.msra.mxu0 %v2821_v13  ;;  %v3162_v43 = vrot.slane %v423_v38, %v3158_v41  ;;  %v438_v44 = vcombine.high %v430_v42, %v430_v42  ;;  %v446_v45 = vrot.slane %v430_v42, %v3158_v41  ;;  %v2848_v58 = vld [vmem:[%s3696_s1 + $0x1b0] sm:$0xff]   ;;  %v2851_v59 = vld [vmem:[%s3696_s1 + $0x1e8] sm:$0xff]   ;;  %v2855_v63 = vld [vmem:[%s3696_s1 + $0x1e0] sm:$0xff]  }
  0x10   :  { %2531 = vmatprep.subr.bf16.mxu0 %v2824_v16  ;;  %v2850_v60 = vld [vmem:[%s3696_s1 + $0x128] sm:$0xff]   ;;  %v2854_v0 = vld [vmem:[%s3696_s1 + $0x120] sm:$0xff]   ;;  %v2857_v1 = vld [vmem:[%s3696_s1 + $0x158] sm:$0xff]  }
  0x11   :  { %2552 = vmatpush3.bf16.msra.mxu1 %v2823_v15  ;;  %v439_v46 = vcombine.high %v3162_v43, %v3162_v43  ;;  %v460_v47 = vrot.slane %v438_v44, %v3158_v41  ;;  %v468_v50 = vcombine.high %v446_v45, %v446_v45  ;;  %v2852_v62 = vld [vmem:[%s3696_s1 + $0x1a8] sm:$0xff]   ;;  %v2856_v2 = vld [vmem:[%s3696_s1 + $0x1a0] sm:$0xff]   ;;  %v2859_v3 = vld [vmem:[%s3696_s1 + $0x1d8] sm:$0xff]  }
  0x12   :  { %2553 = vmatprep.subr.bf16.mxu1 %v2826_v18  ;;  %v2858_v4 = vld [vmem:[%s3696_s1 + $0x118] sm:$0xff]   ;;  %v2861_v5 = vld [vmem:[%s3696_s1 + $0x150] sm:$0xff]   ;;  %v2865_v9 = vld [vmem:[%s3696_s1 + $0x148] sm:$0xff]  }
  0x13   :  { %2532 = vmatpush3.bf16.msra.mxu0 %v2825_v17  ;;  %v467_v49 = vrot.slane %v439_v46, %v3158_v41  ;;  %1820 = vmatprep.mubr.bf16.mxu0 %v460_v47  ;;  %v470_v52 = vcombine.high %v460_v47, %v460_v47  ;;  %v2860_v6 = vld [vmem:[%s3696_s1 + $0x198] sm:$0xff]   ;;  %v2863_v7 = vld [vmem:[%s3696_s1 + $0x1d0] sm:$0xff]   ;;  %v2867_v11 = vld [vmem:[%s3696_s1 + $0x1c8] sm:$0xff]   ;;  %v453_v17 = vrot.slane %v3162_v43, %v3158_v41 }
  0x14   :  { %2533 = vmatprep.subr.bf16.mxu0 %v2828_v20  ;;  %v2862_v8 = vld [vmem:[%s3696_s1 + $0x110] sm:$0xff]   ;;  %v2866_v12 = vld [vmem:[%s3696_s1 + $0x108] sm:$0xff]   ;;  %v2869_v13 = vld [vmem:[%s3696_s1 + $0x140] sm:$0xff]  }
  0x15   :  { %2554 = vmatpush3.bf16.msra.mxu1 %v2827_v19  ;;  %v471_v55 = vcombine.high %v467_v49, %v467_v49  ;;  %1860 = vmatprep.mubr.bf16.mxu1 %v470_v52  ;;  %v2864_v10 = vld [vmem:[%s3696_s1 + $0x190] sm:$0xff]   ;;  %v2868_v14 = vld [vmem:[%s3696_s1 + $0x188] sm:$0xff]   ;;  %v2871_v15 = vld [vmem:[%s3696_s1 + $0x1c0] sm:$0xff]  }
  0x16   :  { %2555 = vmatprep.subr.bf16.mxu1 %v2830_v22  ;;  %v2870_v16 = vld [vmem:[%s3696_s1 + $0x100] sm:$0xff]   ;;  %v2873_v18 = vld [vmem:[%s3696_s1 + $0x278] sm:$0xff]   ;;  %v469_v22 = vcombine.high %v453_v17, %v453_v17  ;;  %v2881_v27 = vld [vmem:[%s3696_s1 + $0x268] sm:$0xff]  }
  0x17   :  { %2534 = vmatpush3.bf16.msra.mxu0 %v2829_v21  ;;  %v2872_v19 = vld [vmem:[%s3696_s1 + $0x180] sm:$0xff]   ;;  %v2875_v20 = vld [vmem:[%s3696_s1 + $0x2f8] sm:$0xff]   ;;  %v2884_v32 = vld [vmem:[%s3696_s1 + $0x2a8] sm:$0xff]  }
  0x18   :  { %2535 = vmatprep.subr.bf16.mxu0 %v2832_v24  ;;  %v2874_v21 = vld [vmem:[%s3696_s1 + $0x238] sm:$0xff]   ;;  %v2887_v33 = vld [vmem:[%s3696_s1 + $0x2e0] sm:$0xff]   ;;  %v2893_v39 = vld [vmem:[%s3696_s1 + $0x250] sm:$0xff]  }
  0x19   :  { %2556 = vmatpush3.bf16.msra.mxu1 %v2831_v23  ;;  %v2877_v23 = vld [vmem:[%s3696_s1 + $0x270] sm:$0xff]   ;;  %v2876_v24 = vld [vmem:[%s3696_s1 + $0x2b8] sm:$0xff]   ;;  %v2888_v36 = vld [vmem:[%s3696_s1 + $0x2a0] sm:$0xff]  }
  0x1a   :  { %2557 = vmatprep.subr.bf16.mxu1 %v2834_v26  ;;  %v2878_v26 = vld [vmem:[%s3696_s1 + $0x230] sm:$0xff]   ;;  %v2889_v35 = vld [vmem:[%s3696_s1 + $0x258] sm:$0xff]   ;;  %v2897_v44 = vld [vmem:[%s3696_s1 + $0x248] sm:$0xff]  }
  0x1b   :  { %2536 = vmatpush3.bf16.msra.mxu0 %v2833_v25  ;;  %v2879_v25 = vld [vmem:[%s3696_s1 + $0x2f0] sm:$0xff]   ;;  %v2890_v38 = vld [vmem:[%s3696_s1 + $0x218] sm:$0xff]  }
  0x1c   :  { %2537 = vmatprep.subr.bf16.mxu0 %v2836_v29  ;;  %v2883_v29 = vld [vmem:[%s3696_s1 + $0x2e8] sm:$0xff]   ;;  %v2895_v42 = vld [vmem:[%s3696_s1 + $0x2d0] sm:$0xff]  }
  0x1d   :  { %2558 = vmatpush3.bf16.msra.mxu1 %v2835_v28  ;;  %v2880_v28 = vld [vmem:[%s3696_s1 + $0x2b0] sm:$0xff]  }
  0x1e   :  { %2559 = vmatprep.subr.bf16.mxu1 %v2838_v31  ;;  %v2885_v31 = vld [vmem:[%s3696_s1 + $0x260] sm:$0xff]   ;;  %v2894_v43 = vld [vmem:[%s3696_s1 + $0x210] sm:$0xff]  }
  0x1f   :  { %2538 = vmatpush3.bf16.msra.mxu0 %v2837_v30  ;;  %v2882_v30 = vld [vmem:[%s3696_s1 + $0x228] sm:$0xff]   ;;  %v2896_v46 = vld [vmem:[%s3696_s1 + $0x290] sm:$0xff]  }
  0x20   :  { %2567 = vmatprep.subr.bf16.mxu0 %v2841_v37  ;;  %v2891_v37 = vld [vmem:[%s3696_s1 + $0x2d8] sm:$0xff]  }
  0x21   :  { %2560 = vmatpush3.bf16.msra.mxu1 %v2840_v34  ;;  %v2886_v34 = vld [vmem:[%s3696_s1 + $0x220] sm:$0xff]  }
  0x22   :  { %2589 = vmatprep.subr.bf16.mxu1 %v2843_v40  ;;  %1821 = vmatmul.mubr.bf16.vlgmr.msra.gmra.mxu0 %v446_v45  ;;  %v2892_v40 = vld [vmem:[%s3696_s1 + $0x298] sm:$0xff]   ;;  %v17_v45 = vld [vmem:[%s3695_s0 + $0x8] sm:$0xff] }
  0x23   :  { %2568 = vmatpush3.bf16.msra.mxu0 %v2842_v48  ;;  %1900 = vmatprep.mubr.bf16.mxu0 %v467_v49  ;;  %v479_v47 = vrot.slane %v17_v45, %v3158_v41  ;;  %v472_v48 = vcombine.high %v17_v45, %v17_v45  ;;  %v2899_v49 = vld [vmem:[%s3696_s1 + $0x2c8] sm:$0xff]  }
  0x24   :  { %1861 = vmatmul.mubr.bf16.vlgmr.msra.gmra.mxu1 %v468_v50  ;;  %2569 = vmatprep.subr.bf16.mxu0 %v2845_v51  ;;  %v2898_v50 = vld [vmem:[%s3696_s1 + $0x208] sm:$0xff]  }
  0x25   :  { %2590 = vmatpush3.bf16.msra.mxu1 %v2844_v53  ;;  %1940 = vmatprep.mubr.bf16.mxu1 %v471_v55  ;;  %v487_v51 = vcombine.high %v479_v47, %v479_v47  ;;  %v3347_v52 = vrot.slane %v472_v48, %v3158_v41  ;;  %v2901_v53 = vld [vmem:[%s3696_s1 + $0x240] sm:$0xff]   ;;  %v2948_v45 = vld [vmem:[%s3696_s1 + $0x4e8] sm:$0xff]  }
  0x26   :  { %2591 = vmatprep.subr.bf16.mxu1 %v2847_v54  ;;  %v2900_v54 = vld [vmem:[%s3696_s1 + $0x288] sm:$0xff]  }
  0x27   :  { %2570 = vmatpush3.bf16.msra.mxu0 %v2846_v56  ;;  %v509_v55 = vrot.slane %v487_v51, %v3158_v41  ;;  %v488_v56 = vcombine.high %v3347_v52, %v3347_v52  ;;  %v2949_v48 = vld [vmem:[%s3696_s1 + $0x4a8] sm:$0xff]   ;;  %v2954_v51 = vld [vmem:[%s3696_s1 + $0x458] sm:$0xff]  }
  0x28   :  { %2571 = vmatprep.subr.bf16.mxu0 %v2849_v57  ;;  %v2903_v57 = vld [vmem:[%s3696_s1 + $0x2c0] sm:$0xff]  }
  0x29   :  { %2592 = vmatpush3.bf16.msra.mxu1 %v2848_v58  ;;  %v2902_v58 = vld [vmem:[%s3696_s1 + $0x200] sm:$0xff]  }
  0x2a   :  { %2593 = vmatprep.subr.bf16.mxu1 %v2851_v59  ;;  %v519_v59 = vcombine.high %v509_v55, %v509_v55 }
  0x2b   :  { %2572 = vmatpush3.bf16.msra.mxu0 %v2850_v60  ;;  %v495_v60 = vrot.slane %v479_v47, %v3158_v41  ;;  %v2950_v47 = vld [vmem:[%s3696_s1 + $0x460] sm:$0xff]  }
  0x2c   :  { %2573 = vmatprep.subr.bf16.mxu0 %v2853_v61  ;;  %v2905_v61 = vld [vmem:[%s3696_s1 + $0x378] sm:$0xff]  }
  0x2d   :  { %2594 = vmatpush3.bf16.msra.mxu1 %v2852_v62  ;;  %v2904_v62 = vld [vmem:[%s3696_s1 + $0x280] sm:$0xff]  }
  0x2e   :  { %2595 = vmatprep.subr.bf16.mxu1 %v2855_v63  ;;  %v516_v63 = vrot.slane %v488_v56, %v3158_v41  ;;  %v2957_v56 = vld [vmem:[%s3696_s1 + $0x498] sm:$0xff]  }
  0x2f   :  { %2574 = vmatpush3.bf16.msra.mxu0 %v2854_v0  ;;  %v2907_v0 = vld [vmem:[%s3696_s1 + $0x3f8] sm:$0xff]  }
  0x30   :  { %2575 = vmatprep.subr.bf16.mxu0 %v2857_v1  ;;  %v2906_v1 = vld [vmem:[%s3696_s1 + $0x338] sm:$0xff]  }
  0x31   :  { %2596 = vmatpush3.bf16.msra.mxu1 %v2856_v2  ;;  %v517_v2 = vcombine.high %v495_v60, %v495_v60 }
  0x32   :  { %2597 = vmatprep.subr.bf16.mxu1 %v2859_v3  ;;  %v2909_v3 = vld [vmem:[%s3696_s1 + $0x370] sm:$0xff]  }
  0x33   :  { %2576 = vmatpush3.bf16.msra.mxu0 %v2858_v4  ;;  %v2908_v4 = vld [vmem:[%s3696_s1 + $0x3b8] sm:$0xff]  }
  0x34   :  { %2577 = vmatprep.subr.bf16.mxu0 %v2861_v5  ;;  %v520_v5 = vcombine.high %v516_v63, %v516_v63 }
  0x35   :  { %2598 = vmatpush3.bf16.msra.mxu1 %v2860_v6  ;;  %v2911_v6 = vld [vmem:[%s3696_s1 + $0x3f0] sm:$0xff]  }
  0x36   :  { %2599 = vmatprep.subr.bf16.mxu1 %v2863_v7  ;;  %v2910_v7 = vld [vmem:[%s3696_s1 + $0x330] sm:$0xff]  }
  0x37   :  { %2578 = vmatpush3.bf16.msra.mxu0 %v2862_v8  ;;  %v2913_v8 = vld [vmem:[%s3696_s1 + $0x368] sm:$0xff]  }
  0x38   :  { %2579 = vmatprep.subr.bf16.mxu0 %v2865_v9  ;;  %v2912_v9 = vld [vmem:[%s3696_s1 + $0x3b0] sm:$0xff]  }
  0x39   :  { %2600 = vmatpush3.bf16.msra.mxu1 %v2864_v10  ;;  %v2915_v10 = vld [vmem:[%s3696_s1 + $0x3e8] sm:$0xff]  }
  0x3a   :  { %2601 = vmatprep.subr.bf16.mxu1 %v2867_v11  ;;  %v2914_v11 = vld [vmem:[%s3696_s1 + $0x328] sm:$0xff]  }
  0x3b   :  { %2580 = vmatpush3.bf16.msra.mxu0 %v2866_v12  ;;  %v2917_v12 = vld [vmem:[%s3696_s1 + $0x360] sm:$0xff]  }
  0x3c   :  { %2581 = vmatprep.subr.bf16.mxu0 %v2869_v13  ;;  %v2916_v13 = vld [vmem:[%s3696_s1 + $0x3a8] sm:$0xff]  }
  0x3d   :  { %2602 = vmatpush3.bf16.msra.mxu1 %v2868_v14  ;;  %v2919_v14 = vld [vmem:[%s3696_s1 + $0x3e0] sm:$0xff]  }
  0x3e   :  { %2603 = vmatprep.subr.bf16.mxu1 %v2871_v15  ;;  %v2918_v15 = vld [vmem:[%s3696_s1 + $0x320] sm:$0xff]  }
  0x3f   :  { %2582 = vmatpush3.bf16.msra.mxu0 %v2870_v16  ;;  %v2921_v16 = vld [vmem:[%s3696_s1 + $0x358] sm:$0xff]  }
  0x40   :  { %2611 = vmatprep.subr.bf16.mxu0 %v2873_v18  ;;  %v2923_v18 = vld [vmem:[%s3696_s1 + $0x3d8] sm:$0xff]  }
  0x41   :  { %2604 = vmatpush3.bf16.msra.mxu1 %v2872_v19  ;;  %v2922_v19 = vld [vmem:[%s3696_s1 + $0x318] sm:$0xff]  }
  0x42   :  { %1901 = vmatmul.mubr.bf16.vlgmr.msra.gmra.mxu0 %v453_v17  ;;  %2633 = vmatprep.subr.bf16.mxu1 %v2875_v20  ;;  %v2920_v17 = vld [vmem:[%s3696_s1 + $0x3a0] sm:$0xff]   ;;  %v2925_v20 = vld [vmem:[%s3696_s1 + $0x350] sm:$0xff]  }
  0x43   :  { %2612 = vmatpush3.bf16.msra.mxu0 %v2874_v21  ;;  %1980 = vmatprep.mubr.bf16.mxu0 %v509_v55  ;;  %v2924_v21 = vld [vmem:[%s3696_s1 + $0x398] sm:$0xff]   ;;  %v2958_v55 = vld [vmem:[%s3696_s1 + $0x450] sm:$0xff]  }
  0x44   :  { %1941 = vmatmul.mubr.bf16.vlgmr.msra.gmra.mxu1 %v469_v22  ;;  %2613 = vmatprep.subr.bf16.mxu0 %v2877_v23  ;;  %v2927_v22 = vld [vmem:[%s3696_s1 + $0x3d0] sm:$0xff]  }
  0x45   :  { %2634 = vmatpush3.bf16.msra.mxu1 %v2876_v24  ;;  %2020 = vmatprep.mubr.bf16.mxu1 %v519_v59  ;;  %v2926_v23 = vld [vmem:[%s3696_s1 + $0x310] sm:$0xff]   ;;  %v2929_v24 = vld [vmem:[%s3696_s1 + $0x348] sm:$0xff]  }
  0x46   :  { %2635 = vmatprep.subr.bf16.mxu1 %v2879_v25  ;;  %v2928_v25 = vld [vmem:[%s3696_s1 + $0x390] sm:$0xff]   ;;  %v2962_v59 = vld [vmem:[%s3696_s1 + $0x448] sm:$0xff]  }
  0x47   :  { %2614 = vmatpush3.bf16.msra.mxu0 %v2878_v26  ;;  %v2931_v26 = vld [vmem:[%s3696_s1 + $0x3c8] sm:$0xff]  }
  0x48   :  { %2615 = vmatprep.subr.bf16.mxu0 %v2881_v27  ;;  %v2930_v27 = vld [vmem:[%s3696_s1 + $0x308] sm:$0xff]  }
  0x49   :  { %2636 = vmatpush3.bf16.msra.mxu1 %v2880_v28  ;;  %v2933_v28 = vld [vmem:[%s3696_s1 + $0x340] sm:$0xff]  }
  0x4a   :  { %2637 = vmatprep.subr.bf16.mxu1 %v2883_v29  ;;  %v2932_v29 = vld [vmem:[%s3696_s1 + $0x388] sm:$0xff]  }
  0x4b   :  { %2616 = vmatpush3.bf16.msra.mxu0 %v2882_v30  ;;  %v2935_v30 = vld [vmem:[%s3696_s1 + $0x3c0] sm:$0xff]  }
  0x4c   :  { %2617 = vmatprep.subr.bf16.mxu0 %v2885_v31  ;;  %v2934_v31 = vld [vmem:[%s3696_s1 + $0x300] sm:$0xff]  }
  0x4d   :  { %2638 = vmatpush3.bf16.msra.mxu1 %v2884_v32  ;;  %v502_v32 = vrot.slane %v3347_v52, %v3158_v41  ;;  %v2953_v52 = vld [vmem:[%s3696_s1 + $0x4a0] sm:$0xff]  }
  0x4e   :  { %2639 = vmatprep.subr.bf16.mxu1 %v2887_v33  ;;  %v2938_v33 = vld [vmem:[%s3696_s1 + $0x478] sm:$0xff]  }
  0x4f   :  { %2618 = vmatpush3.bf16.msra.mxu0 %v2886_v34  ;;  %v2937_v34 = vld [vmem:[%s3696_s1 + $0x380] sm:$0xff]  }
  0x50   :  { %2619 = vmatprep.subr.bf16.mxu0 %v2889_v35  ;;  %v2940_v35 = vld [vmem:[%s3696_s1 + $0x4f8] sm:$0xff]  }
  0x51   :  { %2640 = vmatpush3.bf16.msra.mxu1 %v2888_v36  ;;  %v2939_v36 = vld [vmem:[%s3696_s1 + $0x438] sm:$0xff]  }
  0x52   :  { %2641 = vmatprep.subr.bf16.mxu1 %v2891_v37  ;;  %v518_v37 = vcombine.high %v502_v32, %v502_v32 }
  0x53   :  { %2620 = vmatpush3.bf16.msra.mxu0 %v2890_v38  ;;  %v2942_v38 = vld [vmem:[%s3696_s1 + $0x470] sm:$0xff]  }
  0x54   :  { %2621 = vmatprep.subr.bf16.mxu0 %v2893_v39  ;;  %v2941_v39 = vld [vmem:[%s3696_s1 + $0x4b8] sm:$0xff]  }
  0x55   :  { %2642 = vmatpush3.bf16.msra.mxu1 %v2892_v40  ;;  %v2944_v40 = vld [vmem:[%s3696_s1 + $0x4f0] sm:$0xff]  }
  0x56   :  { %2643 = vmatprep.subr.bf16.mxu1 %v2895_v42  ;;  %v2943_v42 = vld [vmem:[%s3696_s1 + $0x430] sm:$0xff]  }
  0x57   :  { %2622 = vmatpush3.bf16.msra.mxu0 %v2894_v43  ;;  %v2946_v43 = vld [vmem:[%s3696_s1 + $0x468] sm:$0xff]  }
  0x58   :  { %2623 = vmatprep.subr.bf16.mxu0 %v2897_v44  ;;  %v2945_v44 = vld [vmem:[%s3696_s1 + $0x4b0] sm:$0xff]  }
  0x59   :  { %2644 = vmatpush3.bf16.msra.mxu1 %v2896_v46  ;;  %v2947_v46 = vld [vmem:[%s3696_s1 + $0x428] sm:$0xff]  }
  0x5a   :  { %2645 = vmatprep.subr.bf16.mxu1 %v2899_v49  ;;  %v2952_v49 = vld [vmem:[%s3696_s1 + $0x4e0] sm:$0xff]  }
  0x5b   :  { %2624 = vmatpush3.bf16.msra.mxu0 %v2898_v50  ;;  %v2951_v50 = vld [vmem:[%s3696_s1 + $0x420] sm:$0xff]  }
  0x5c   :  { %2625 = vmatprep.subr.bf16.mxu0 %v2901_v53  ;;  %v2956_v53 = vld [vmem:[%s3696_s1 + $0x4d8] sm:$0xff]  }
  0x5d   :  { %2646 = vmatpush3.bf16.msra.mxu1 %v2900_v54  ;;  %v2955_v54 = vld [vmem:[%s3696_s1 + $0x418] sm:$0xff]  }
  0x5e   :  { %2647 = vmatprep.subr.bf16.mxu1 %v2903_v57  ;;  %v2960_v57 = vld [vmem:[%s3696_s1 + $0x4d0] sm:$0xff]  }
  0x5f   :  { %2626 = vmatpush3.bf16.msra.mxu0 %v2902_v58  ;;  %v2959_v58 = vld [vmem:[%s3696_s1 + $0x410] sm:$0xff]  }
  0x60   :  { %2655 = vmatprep.subr.bf16.mxu0 %v2905_v61  ;;  %v2961_v61 = vld [vmem:[%s3696_s1 + $0x490] sm:$0xff]  }
  0x61   :  { %2648 = vmatpush3.bf16.msra.mxu1 %v2904_v62 }
  0x62   :  { %1981 = vmatmul.mubr.bf16.vlgmr.msra.gmra.mxu0 %v495_v60  ;;  %2677 = vmatprep.subr.bf16.mxu1 %v2907_v0  ;;  %v18_v60 = vld [vmem:[%s3695_s0 + $0x10] sm:$0xff]  ;;  %v2964_v0 = vld [vmem:[%s3696_s1 + $0x4c8] sm:$0xff]  }
  0x63   :  { %2656 = vmatpush3.bf16.msra.mxu0 %v2906_v1  ;;  %2060 = vmatprep.mubr.bf16.mxu0 %v516_v63  ;;  %v528_v62 = vrot.slane %v18_v60, %v3158_v41  ;;  %v521_v63 = vcombine.high %v18_v60, %v18_v60  ;;  %v2963_v1 = vld [vmem:[%s3696_s1 + $0x408] sm:$0xff]  }
  0x64   :  { %2021 = vmatmul.mubr.bf16.vlgmr.msra.gmra.mxu1 %v517_v2  ;;  %2657 = vmatprep.subr.bf16.mxu0 %v2909_v3 }
  0x65   :  { %2678 = vmatpush3.bf16.msra.mxu1 %v2908_v4  ;;  %2100 = vmatprep.mubr.bf16.mxu1 %v520_v5  ;;  %v536_v2 = vcombine.high %v528_v62, %v528_v62  ;;  %v3553_v3 = vrot.slane %v521_v63, %v3158_v41  ;;  %v2966_v4 = vld [vmem:[%s3696_s1 + $0x440] sm:$0xff]   ;;  %v2965_v5 = vld [vmem:[%s3696_s1 + $0x488] sm:$0xff]  }
  0x66   :  { %2679 = vmatprep.subr.bf16.mxu1 %v2911_v6 }
  0x67   :  { %2658 = vmatpush3.bf16.msra.mxu0 %v2910_v7  ;;  %v558_v6 = vrot.slane %v536_v2, %v3158_v41  ;;  %v537_v7 = vcombine.high %v3553_v3, %v3553_v3 }
  0x68   :  { %2659 = vmatprep.subr.bf16.mxu0 %v2913_v8  ;;  %v2968_v8 = vld [vmem:[%s3696_s1 + $0x4c0] sm:$0xff]  }
  0x69   :  { %2680 = vmatpush3.bf16.msra.mxu1 %v2912_v9  ;;  %v2967_v9 = vld [vmem:[%s3696_s1 + $0x400] sm:$0xff]  }
  0x6a   :  { %2681 = vmatprep.subr.bf16.mxu1 %v2915_v10  ;;  %v568_v10 = vcombine.high %v558_v6, %v558_v6 }
  0x6b   :  { %2660 = vmatpush3.bf16.msra.mxu0 %v2914_v11  ;;  %v544_v11 = vrot.slane %v528_v62, %v3158_v41 }
  0x6c   :  { %2661 = vmatprep.subr.bf16.mxu0 %v2917_v12  ;;  %v2970_v12 = vld [vmem:[%s3696_s1 + $0x578] sm:$0xff]  }
  0x6d   :  { %2682 = vmatpush3.bf16.msra.mxu1 %v2916_v13  ;;  %v2969_v13 = vld [vmem:[%s3696_s1 + $0x480] sm:$0xff]  }
  0x6e   :  { %2683 = vmatprep.subr.bf16.mxu1 %v2919_v14  ;;  %v565_v14 = vrot.slane %v537_v7, %v3158_v41 }
  0x6f   :  { %2662 = vmatpush3.bf16.msra.mxu0 %v2918_v15  ;;  %v2972_v15 = vld [vmem:[%s3696_s1 + $0x5f8] sm:$0xff]  }
  0x70   :  { %2663 = vmatprep.subr.bf16.mxu0 %v2921_v16  ;;  %v2971_v16 = vld [vmem:[%s3696_s1 + $0x538] sm:$0xff]  }
  0x71   :  { %2684 = vmatpush3.bf16.msra.mxu1 %v2920_v17  ;;  %v566_v17 = vcombine.high %v544_v11, %v544_v11 }
  0x72   :  { %2685 = vmatprep.subr.bf16.mxu1 %v2923_v18  ;;  %v2974_v18 = vld [vmem:[%s3696_s1 + $0x570] sm:$0xff]  }
  0x73   :  { %2664 = vmatpush3.bf16.msra.mxu0 %v2922_v19  ;;  %v2973_v19 = vld [vmem:[%s3696_s1 + $0x5b8] sm:$0xff]  }
  0x74   :  { %2665 = vmatprep.subr.bf16.mxu0 %v2925_v20  ;;  %v569_v20 = vcombine.high %v565_v14, %v565_v14 }
  0x75   :  { %2686 = vmatpush3.bf16.msra.mxu1 %v2924_v21  ;;  %v2976_v21 = vld [vmem:[%s3696_s1 + $0x5f0] sm:$0xff]  }
  0x76   :  { %2687 = vmatprep.subr.bf16.mxu1 %v2927_v22  ;;  %v2975_v22 = vld [vmem:[%s3696_s1 + $0x530] sm:$0xff]  }
  0x77   :  { %2666 = vmatpush3.bf16.msra.mxu0 %v2926_v23  ;;  %v2978_v23 = vld [vmem:[%s3696_s1 + $0x568] sm:$0xff]  }
  0x78   :  { %2667 = vmatprep.subr.bf16.mxu0 %v2929_v24  ;;  %v2977_v24 = vld [vmem:[%s3696_s1 + $0x5b0] sm:$0xff]  }
  0x79   :  { %2688 = vmatpush3.bf16.msra.mxu1 %v2928_v25  ;;  %v2980_v25 = vld [vmem:[%s3696_s1 + $0x5e8] sm:$0xff]  }
  0x7a   :  { %2689 = vmatprep.subr.bf16.mxu1 %v2931_v26  ;;  %v2979_v26 = vld [vmem:[%s3696_s1 + $0x528] sm:$0xff]  }
  0x7b   :  { %2668 = vmatpush3.bf16.msra.mxu0 %v2930_v27  ;;  %v2982_v27 = vld [vmem:[%s3696_s1 + $0x560] sm:$0xff]  }
  0x7c   :  { %2669 = vmatprep.subr.bf16.mxu0 %v2933_v28  ;;  %v2981_v28 = vld [vmem:[%s3696_s1 + $0x5a8] sm:$0xff]  }
  0x7d   :  { %2690 = vmatpush3.bf16.msra.mxu1 %v2932_v29  ;;  %v2984_v29 = vld [vmem:[%s3696_s1 + $0x5e0] sm:$0xff]  }
  0x7e   :  { %2691 = vmatprep.subr.bf16.mxu1 %v2935_v30  ;;  %v2983_v30 = vld [vmem:[%s3696_s1 + $0x520] sm:$0xff]  }
  0x7f   :  { %2670 = vmatpush3.bf16.msra.mxu0 %v2934_v31  ;;  %v2986_v31 = vld [vmem:[%s3696_s1 + $0x558] sm:$0xff]  }
  0x80   :  { %2699 = vmatprep.subr.bf16.mxu0 %v2938_v33  ;;  %v2988_v33 = vld [vmem:[%s3696_s1 + $0x5d8] sm:$0xff]  }
  0x81   :  { %2692 = vmatpush3.bf16.msra.mxu1 %v2937_v34  ;;  %v2987_v34 = vld [vmem:[%s3696_s1 + $0x518] sm:$0xff]  }
  0x82   :  { %2061 = vmatmul.mubr.bf16.vlgmr.msra.gmra.mxu0 %v502_v32  ;;  %2721 = vmatprep.subr.bf16.mxu1 %v2940_v35  ;;  %v2985_v32 = vld [vmem:[%s3696_s1 + $0x5a0] sm:$0xff]   ;;  %v2990_v35 = vld [vmem:[%s3696_s1 + $0x550] sm:$0xff]  }
  0x83   :  { %2700 = vmatpush3.bf16.msra.mxu0 %v2939_v36  ;;  %2140 = vmatprep.mubr.bf16.mxu0 %v558_v6  ;;  %v2989_v36 = vld [vmem:[%s3696_s1 + $0x598] sm:$0xff]  }
  0x84   :  { %2101 = vmatmul.mubr.bf16.vlgmr.msra.gmra.mxu1 %v518_v37  ;;  %2701 = vmatprep.subr.bf16.mxu0 %v2942_v38  ;;  %v2992_v37 = vld [vmem:[%s3696_s1 + $0x5d0] sm:$0xff]  }
  0x85   :  { %2722 = vmatpush3.bf16.msra.mxu1 %v2941_v39  ;;  %2180 = vmatprep.mubr.bf16.mxu1 %v568_v10  ;;  %v2991_v38 = vld [vmem:[%s3696_s1 + $0x510] sm:$0xff]   ;;  %v2994_v39 = vld [vmem:[%s3696_s1 + $0x548] sm:$0xff]  }
  0x86   :  { %2723 = vmatprep.subr.bf16.mxu1 %v2944_v40  ;;  %v2993_v40 = vld [vmem:[%s3696_s1 + $0x590] sm:$0xff]  }
  0x87   :  { %2702 = vmatpush3.bf16.msra.mxu0 %v2943_v42  ;;  %v2996_v42 = vld [vmem:[%s3696_s1 + $0x5c8] sm:$0xff]  }
  0x88   :  { %2703 = vmatprep.subr.bf16.mxu0 %v2946_v43  ;;  %v2995_v43 = vld [vmem:[%s3696_s1 + $0x508] sm:$0xff]  }
  0x89   :  { %2724 = vmatpush3.bf16.msra.mxu1 %v2945_v44  ;;  %v2998_v44 = vld [vmem:[%s3696_s1 + $0x540] sm:$0xff]  }
  0x8a   :  { %2725 = vmatprep.subr.bf16.mxu1 %v2948_v45  ;;  %v2997_v45 = vld [vmem:[%s3696_s1 + $0x588] sm:$0xff]  }
  0x8b   :  { %2704 = vmatpush3.bf16.msra.mxu0 %v2947_v46  ;;  %v3000_v46 = vld [vmem:[%s3696_s1 + $0x5c0] sm:$0xff]  }
  0x8c   :  { %2705 = vmatprep.subr.bf16.mxu0 %v2950_v47  ;;  %v2999_v47 = vld [vmem:[%s3696_s1 + $0x500] sm:$0xff]  }
  0x8d   :  { %2726 = vmatpush3.bf16.msra.mxu1 %v2949_v48 }
  0x8e   :  { %2727 = vmatprep.subr.bf16.mxu1 %v2952_v49 }
  0x8f   :  { %2706 = vmatpush3.bf16.msra.mxu0 %v2951_v50 }
  0x90   :  { %2707 = vmatprep.subr.bf16.mxu0 %v2954_v51 }
  0x91   :  { %2728 = vmatpush3.bf16.msra.mxu1 %v2953_v52 }
  0x92   :  { %2729 = vmatprep.subr.bf16.mxu1 %v2956_v53 }
  0x93   :  { %2708 = vmatpush3.bf16.msra.mxu0 %v2955_v54 }
  0x94   :  { %2709 = vmatprep.subr.bf16.mxu0 %v2958_v55 }
  0x95   :  { %2730 = vmatpush3.bf16.msra.mxu1 %v2957_v56 }
  0x96   :  { %2731 = vmatprep.subr.bf16.mxu1 %v2960_v57 }
  0x97   :  { %2710 = vmatpush3.bf16.msra.mxu0 %v2959_v58 }
  0x98   :  { %2711 = vmatprep.subr.bf16.mxu0 %v2962_v59 }
  0x99   :  { %2732 = vmatpush3.bf16.msra.mxu1 %v2961_v61 }
  0x9a   :  { %2733 = vmatprep.subr.bf16.mxu1 %v2964_v0 }
  0x9b   :  { %2712 = vmatpush3.bf16.msra.mxu0 %v2963_v1 }
  0x9c   :  { %2713 = vmatprep.subr.bf16.mxu0 %v2966_v4 }
  0x9d   :  { %2734 = vmatpush3.bf16.msra.mxu1 %v2965_v5 }
  0x9e   :  { %2735 = vmatprep.subr.bf16.mxu1 %v2968_v8 }
  0x9f   :  { %2714 = vmatpush3.bf16.msra.mxu0 %v2967_v9 }
  0xa0   :  { %2743 = vmatprep.subr.bf16.mxu0 %v2970_v12 }
  0xa1   :  { %2736 = vmatpush3.bf16.msra.mxu1 %v2969_v13 }
  0xa2   :  { %2141 = vmatmul.mubr.bf16.vlgmr.msra.gmra.mxu0 %v544_v11  ;;  %2765 = vmatprep.subr.bf16.mxu1 %v2972_v15 }
  0xa3   :  { %2744 = vmatpush3.bf16.msra.mxu0 %v2971_v16  ;;  %2220 = vmatprep.mubr.bf16.mxu0 %v565_v14 }
  0xa4   :  { %2181 = vmatmul.mubr.bf16.vlgmr.msra.gmra.mxu1 %v566_v17  ;;  %2745 = vmatprep.subr.bf16.mxu0 %v2974_v18 }
  0xa5   :  { %2766 = vmatpush3.bf16.msra.mxu1 %v2973_v19  ;;  %2260 = vmatprep.mubr.bf16.mxu1 %v569_v20 }
  0xa6   :  { %2767 = vmatprep.subr.bf16.mxu1 %v2976_v21 }
  0xa7   :  { %2746 = vmatpush3.bf16.msra.mxu0 %v2975_v22 }
  0xa8   :  { %2747 = vmatprep.subr.bf16.mxu0 %v2978_v23 }
  0xa9   :  { %2768 = vmatpush3.bf16.msra.mxu1 %v2977_v24 }
  0xaa   :  { %2769 = vmatprep.subr.bf16.mxu1 %v2980_v25 }
  0xab   :  { %2748 = vmatpush3.bf16.msra.mxu0 %v2979_v26 }
  0xac   :  { %2749 = vmatprep.subr.bf16.mxu0 %v2982_v27 }
  0xad   :  { %2770 = vmatpush3.bf16.msra.mxu1 %v2981_v28 }
  0xae   :  { %2771 = vmatprep.subr.bf16.mxu1 %v2984_v29 }
  0xaf   :  { %2750 = vmatpush3.bf16.msra.mxu0 %v2983_v30 }
  0xb0   :  { %2751 = vmatprep.subr.bf16.mxu0 %v2986_v31 }
  0xb1   :  { %2772 = vmatpush3.bf16.msra.mxu1 %v2985_v32 }
  0xb2   :  { %2773 = vmatprep.subr.bf16.mxu1 %v2988_v33 }
  0xb3   :  { %2752 = vmatpush3.bf16.msra.mxu0 %v2987_v34 }
  0xb4   :  { %2753 = vmatprep.subr.bf16.mxu0 %v2990_v35 }
  0xb5   :  { %2774 = vmatpush3.bf16.msra.mxu1 %v2989_v36 }
  0xb6   :  { %2775 = vmatprep.subr.bf16.mxu1 %v2992_v37 }
  0xb7   :  { %2754 = vmatpush3.bf16.msra.mxu0 %v2991_v38 }
  0xb8   :  { %2755 = vmatprep.subr.bf16.mxu0 %v2994_v39 }
  0xb9   :  { %2776 = vmatpush3.bf16.msra.mxu1 %v2993_v40 }
  0xba   :  { %2777 = vmatprep.subr.bf16.mxu1 %v2996_v42 }
  0xbb   :  { %2756 = vmatpush3.bf16.msra.mxu0 %v2995_v43 }
  0xbc   :  { %8 = vsyncpa [#allocation3], 0  ;;  %2757 = vmatprep.subr.bf16.mxu0 %v2998_v44  ;;  %v551_v48 = vrot.slane %v3553_v3, %v3158_v41  ;;  %v3002_v49 = vld [vmem:[%s3696_s1 + $0x580] sm:$0xff]   ;;  %v3003_v50 = vld [vmem:[%s3696_s1 + $0x618] sm:$0xff]   ;;  %v3030_v51 = vmov 0.0   ;;  %vm3031_vm0 = vmmov 0  }
  0xbd   :  { %2778 = vmatpush3.bf16.msra.mxu1 %v2997_v45  ;;  %v3004_v53 = vld [vmem:[%s3696_s1 + $0x610] sm:$0xff]   ;;  %v3005_v54 = vld [vmem:[%s3696_s1 + $0x608] sm:$0xff]   ;;  %v3006_v55 = vld [vmem:[%s3696_s1 + $0x600] sm:$0xff]   ;;  %vm1784_vm1 = vcmask 523264   ;;  %vm2308_vm2 = vcmask 9216  }
  0xbe   :  { %2779 = vmatprep.subr.bf16.mxu1 %v3000_v46  ;;  %v567_v52 = vcombine.high %v551_v48, %v551_v48  ;;  %v2325_v56 = vld.sshfl [vmem:[%s3695_s0 + $0x18] sm:$0x1 pattern:$0x75316420]  ;;  %v2324_v59 = vld [vmem:[%s3697_s2] ss:$0 sm:$0xff] }
  0xbf   :  { %2758 = vmatpush3.bf16.msra.mxu0 %v2999_v47  ;;  %v583_v57 = vrot.slane %v2325_v56, %v3158_v41  ;;  %s3032_s0 = smov [#allocation2]  }
  0xc0   :  { %2792 = vmatprep.subr.bf16.mxu0 %v3030_v51  ;;  %s2316_s1 = sshll.u32 %s3032_s0, 4  ;;  %s2317_s1 = int_to_ptr.vmem [resolvable:$true] %s2316_s1 }
  0xc1   :  { %2780 = vmatpush3.bf16.msra.mxu1 %v3002_v49  ;;  %s3007_s2 = scalar_lea.vmem %s2317_s1, 32  ;;  %p3012_p1 = scmp.lt.s32.totalorder %s2317_s1, %s2317_s1 }
  0xc2   :  { %2221 = vmatmul.mubr.bf16.vlgmr.msra.gmra.mxu0 %v551_v48  ;;  %p3008_p0 = scmp.ne.s32.totalorder %s2317_s1, %s3007_s2  ;;  %p3013_p2 = scmp.lt.s32.totalorder %s3007_s2, %s3007_s2 }
  0xc3   :  { %2793 = vmatpush3.bf16.msra.mxu0 %v3003_v50  ;;  %2800 = vmatprep.mubr.msk.bf16.mxu0 %vm3031_vm0, %v3030_v51 }
  0xc4   :  { %2261 = vmatmul.mubr.bf16.vlgmr.msra.gmra.mxu1 %v567_v52  ;;  %2794 = vmatprep.subr.bf16.mxu0 %v3030_v51  ;;  %p3014_p3 = por %p3013_p2, %p3012_p1 }
  0xc6   :  { %p3015_p4 = pnand %p3014_p3, %p3008_p0 }
  0xc7   :  { %2795 = vmatpush3.bf16.msra.mxu0 %v3004_v53 }
  0xc8   :  { %2796 = vmatprep.subr.bf16.mxu0 %v3030_v51 }
  0xcb   :  { %2797 = vmatpush3.bf16.msra.mxu0 %v3005_v54 }
  0xcc   :  { %2798 = vmatprep.subr.bf16.mxu0 %v3030_v51 }
  0xcf   :  { %2799 = vmatpush3.bf16.msra.mxu0 %v3006_v55 }
  0xd2   :  { %2801 = vmatmul.mubr.msk.bf16.vlgmr.msra.gmra.mxu0 %vm1784_vm1, %v583_v57 }
  0xe2   :  { %v2539_v58 = vpop.f32.mrf.mxu0 }
  0xe4   :  { %v2540_v60 = vpop.f32.mrf.mxu0  ;;  %v2561_v61 = vpop.f32.mrf.mxu1 }
  0xe5   :  { %v2541_v62 = vadd.f32 %v2540_v60, %v2539_v58 }
  0xe6   :  { %v2542_v63 = vpop.f32.mrf.mxu0  ;;  %v2562_v0 = vpop.f32.mrf.mxu1 }
  0xe7   :  { %v1823_v1 = vadd.f32 %v2541_v62, %v2324_v59  ;;  %v2563_v2 = vadd.f32 %v2562_v0, %v2561_v61 }
  0xe8   :  { %v2543_v3 = vpop.f32.mrf.mxu0  ;;  %v2564_v4 = vpop.f32.mrf.mxu1 }
  0xe9   :  { %v1863_v5 = vadd.f32 %v2563_v2, %v1823_v1 }
  0xea   :  { %v2565_v6 = vpop.f32.mrf.mxu1 }
 0x102   :  { %v2583_v41 = vpop.f32.mrf.mxu0 }
 0x104   :  { %v2584_v7 = vpop.f32.mrf.mxu0  ;;  %v2605_v8 = vpop.f32.mrf.mxu1 }
 0x105   :  { %v2585_v9 = vadd.f32 %v2584_v7, %v2583_v41 }
 0x106   :  { %v2586_v10 = vpop.f32.mrf.mxu0  ;;  %v2606_v11 = vpop.f32.mrf.mxu1 }
 0x107   :  { %v1903_v12 = vadd.f32 %v2585_v9, %v1863_v5  ;;  %v2607_v13 = vadd.f32 %v2606_v11, %v2605_v8 }
 0x108   :  { %v2587_v14 = vpop.f32.mrf.mxu0  ;;  %v2608_v15 = vpop.f32.mrf.mxu1 }
 0x109   :  { %v1943_v16 = vadd.f32 %v2607_v13, %v1903_v12 }
 0x10a   :  { %v2609_v17 = vpop.f32.mrf.mxu1 }
 0x122   :  { %v2627_v18 = vpop.f32.mrf.mxu0 }
 0x124   :  { %v2628_v19 = vpop.f32.mrf.mxu0  ;;  %v2649_v20 = vpop.f32.mrf.mxu1 }
 0x125   :  { %v2629_v21 = vadd.f32 %v2628_v19, %v2627_v18 }
 0x126   :  { %v2630_v22 = vpop.f32.mrf.mxu0  ;;  %v2650_v23 = vpop.f32.mrf.mxu1 }
 0x127   :  { %v1983_v24 = vadd.f32 %v2629_v21, %v1943_v16  ;;  %v2651_v25 = vadd.f32 %v2650_v23, %v2649_v20 }
 0x128   :  { %v2631_v26 = vpop.f32.mrf.mxu0  ;;  %v2652_v27 = vpop.f32.mrf.mxu1 }
 0x129   :  { %v2023_v28 = vadd.f32 %v2651_v25, %v1983_v24 }
 0x12a   :  { %v2653_v29 = vpop.f32.mrf.mxu1 }
 0x142   :  { %v2671_v30 = vpop.f32.mrf.mxu0 }
 0x144   :  { %v2672_v31 = vpop.f32.mrf.mxu0  ;;  %v2693_v32 = vpop.f32.mrf.mxu1 }
 0x145   :  { %v2673_v33 = vadd.f32 %v2672_v31, %v2671_v30 }
 0x146   :  { %v2674_v34 = vpop.f32.mrf.mxu0  ;;  %v2694_v35 = vpop.f32.mrf.mxu1 }
 0x147   :  { %v2063_v36 = vadd.f32 %v2673_v33, %v2023_v28  ;;  %v2695_v37 = vadd.f32 %v2694_v35, %v2693_v32 }
 0x148   :  { %v2675_v38 = vpop.f32.mrf.mxu0  ;;  %v2696_v39 = vpop.f32.mrf.mxu1 }
 0x149   :  { %v2103_v40 = vadd.f32 %v2695_v37, %v2063_v36 }
 0x14a   :  { %v2697_v42 = vpop.f32.mrf.mxu1 }
 0x162   :  { %v2715_v43 = vpop.f32.mrf.mxu0 }
 0x164   :  { %v2716_v44 = vpop.f32.mrf.mxu0  ;;  %v2737_v45 = vpop.f32.mrf.mxu1 }
 0x165   :  { %v2717_v52 = vadd.f32 %v2716_v44, %v2715_v43 }
 0x166   :  { %v2718_v46 = vpop.f32.mrf.mxu0  ;;  %v2738_v47 = vpop.f32.mrf.mxu1 }
 0x167   :  { %v2143_v57 = vadd.f32 %v2717_v52, %v2103_v40  ;;  %v2739_v58 = vadd.f32 %v2738_v47, %v2737_v45 }
 0x168   :  { %v2719_v48 = vpop.f32.mrf.mxu0  ;;  %v2740_v49 = vpop.f32.mrf.mxu1 }
 0x169   :  { %v2183_v63 = vadd.f32 %v2739_v58, %v2143_v57 }
 0x16a   :  { %v2741_v50 = vpop.f32.mrf.mxu1 }
 0x182   :  { %v2759_v51 = vpop.f32.mrf.mxu0 }
 0x184   :  { %v2760_v53 = vpop.f32.mrf.mxu0  ;;  %v2781_v54 = vpop.f32.mrf.mxu1 }
 0x185   :  { %v2761_v61 = vadd.f32 %v2760_v53, %v2759_v51 }
 0x186   :  { %v2762_v55 = vpop.f32.mrf.mxu0  ;;  %v2782_v56 = vpop.f32.mrf.mxu1 }
 0x187   :  { %v2223_v0 = vadd.f32 %v2761_v61, %v2183_v63  ;;  %v2783_v1 = vadd.f32 %v2782_v56, %v2781_v54 }
 0x188   :  { %v2763_v59 = vpop.f32.mrf.mxu0  ;;  %v2784_v60 = vpop.f32.mrf.mxu1 }
 0x189   :  { %v2263_v2 = vadd.f32 %v2783_v1, %v2223_v0 }
 0x18a   :  { %v2785_v62 = vpop.f32.mrf.mxu1 }
 0x192   :  { %v2302_v3 = vpop.f32.mrf.mxu0 }
 0x193   :  { %v2303_v4 = vadd.f32 %v2302_v3, %v2263_v2 }
 0x194   :  { %v2802_v5 = vpop.f32.mrf.mxu0 }
 0x195   :  { %2309 = vst.msk [vmem:[#allocation2] sm:$0x3] %vm2308_vm2, %v2303_v4 }
 0x196   :  { %v2305_v6 = vpop.f32.mrf.mxu0 }
 0x197   :  { %3018 = shalt.err (!%p3015_p4)
}
 0x198   :  { %2319 = dma.vmem_to_hbm [thread:$0]  %s2317_s1, 32, %s3698_s3, [#allocation3]   ;;  %v2803_v41 = vpop.f32.mrf.mxu0 }
 0x199   :  { %3027 = dma.done.wait [#allocation3], 32  }
 0x19a   :  { %3028 = vsyncadd [#allocation3], 4294967264 }
 0x19b   :  { %2323 = vsyncpa [#allocation3], 1 }

</bundles_post_ra>
